<compile_context>
chip_gen: v5e
topology: v5e:2x2
jax: 0.10.0
libtpu: 0.0.40
codegen_flags: <defaults>
</compile_context>

<pallas_src>
import jax
import jax.numpy as jnp
from jax import lax
from jax.experimental import pallas as pl
from jax.experimental.pallas import tpu as pltpu


def _pad_axis(x, axis, target):
    pad = target - x.shape[axis]
    if pad <= 0:
        return x
    widths = [(0, 0)] * x.ndim
    widths[axis] = (0, pad)
    return jnp.pad(x, widths)


def _reorder_gates(w, H):
    """Reorder 4H gate columns from PyTorch (i, f, g, o) to (i, f, o, g)."""
    return jnp.concatenate(
        [w[..., :2 * H], w[..., 3 * H:], w[..., 2 * H:3 * H]], axis=-1)


# --------------------------------------------------------------------------
# (Bi)LSTM recurrence kernel.
#   lens   : (B, 1)            int32
#   gates  : (D, Tpad, B, 4H)  bf16   precomputed x @ W_ih + b (time-major),
#                                     gate columns in (i, f, o | g) order.
#   whh    : (D, H, 4H)        f32
#   outs   : D arrays (Tpad, B, H) f32, both in forward time order.
# grid = (nb, Tpad//tc).  Direction 0 walks chunks forward, direction 1 walks
# them backward (through the index_map), and both are interleaved inside one
# grid step so their independent h@W_hh chains overlap.
# --------------------------------------------------------------------------
def _make_lstm_kernel(num_dirs, unroll):
    D = num_dirs

    def kernel(*refs):
        lens_ref = refs[0]
        gates_refs = refs[1:1 + D]
        whh_ref = refs[1 + D]
        out_refs = refs[2 + D:2 + 2 * D]
        h_sc = refs[2 + 2 * D]
        c_sc = refs[3 + 2 * D]

        c = pl.program_id(1)
        ncg = pl.num_programs(1)
        tc = gates_refs[0].shape[0]
        H = h_sc.shape[-1]

        @pl.when(c == 0)
        def _():
            h_sc[...] = jnp.zeros_like(h_sc)
            c_sc[...] = jnp.zeros_like(c_sc)

        lens = lens_ref[...]                         # (Bblk, 1) int32
        whh = [whh_ref[d] for d in range(D)]         # (H, 4H) f32, hoisted

        def step(j, carry):
            hs, cs = carry
            new_h, new_c = [], []
            for d in range(D):
                if d == 0:                           # forward direction
                    tt = j
                    t_abs = c * tc + tt
                else:                                # backward direction
                    tt = tc - 1 - j
                    t_abs = (ncg - 1 - c) * tc + tt
                g = gates_refs[d][tt].astype(jnp.float32) + jnp.dot(
                    hs[d], whh[d], preferred_element_type=jnp.float32)
                m = (t_abs < lens).astype(jnp.float32)       # (Bblk, 1)
                # (i, f, o | g) layout: one sigmoid slab + one tanh slab.
                ifo = jax.nn.sigmoid(g[:, :3 * H])
                g_g = jnp.tanh(g[:, 3 * H:])
                i_g = ifo[:, :H]
                f_g = ifo[:, H:2 * H]
                o_g = ifo[:, 2 * H:]
                cell = (f_g * cs[d] + i_g * g_g) * m
                h = (o_g * jnp.tanh(cell)) * m
                out_refs[d][tt] = h
                new_h.append(h)
                new_c.append(cell)
            return tuple(new_h), tuple(new_c)

        init = (tuple(h_sc[d] for d in range(D)),
                tuple(c_sc[d] for d in range(D)))
        hs, cs = lax.fori_loop(0, tc, step, init, unroll=unroll)
        for d in range(D):
            h_sc[d] = hs[d]
            c_sc[d] = cs[d]

    return kernel


def bilstm_pallas(gates, lens_col, whh, *, time_chunk=16, batch_block=None,
                  unroll=8):
    D, T, B, G = gates.shape
    H = whh.shape[1]
    tc = min(time_chunk, T)
    Tp = int(pl.cdiv(T, tc)) * tc
    ncg = Tp // tc
    gates = _pad_axis(gates, 1, Tp)

    Bblk = B if batch_block is None else min(batch_block, B)
    assert Bblk % 8 == 0 and B % Bblk == 0
    nb = B // Bblk

    def gates_idx(d):
        if d == 0:
            return lambda b, c: (0, c, b, 0)
        return lambda b, c: (1, ncg - 1 - c, b, 0)

    def out_idx(d):
        if d == 0:
            return lambda b, c: (c, b, 0)
        return lambda b, c: (ncg - 1 - c, b, 0)

    in_specs = [pl.BlockSpec((Bblk, 1), lambda b, c: (b, 0))]          # lens
    in_specs += [pl.BlockSpec((None, tc, Bblk, G), gates_idx(d))
                 for d in range(D)]
    in_specs += [pl.BlockSpec((D, H, G), lambda b, c: (0, 0, 0))]      # whh

    outs = pl.pallas_call(
        _make_lstm_kernel(D, min(unroll, tc)),
        grid=(nb, ncg),
        in_specs=in_specs,
        out_specs=[pl.BlockSpec((tc, Bblk, H), out_idx(d)) for d in range(D)],
        out_shape=[jax.ShapeDtypeStruct((Tp, B, H), jnp.float32)
                   for _ in range(D)],
        scratch_shapes=[pltpu.VMEM((D, Bblk, H), jnp.float32),
                        pltpu.VMEM((D, Bblk, H), jnp.float32)],
        compiler_params=pltpu.CompilerParams(
            dimension_semantics=("parallel", "arbitrary"),
            vmem_limit_bytes=48 * 1024 * 1024),
    )(lens_col, *([gates] * D), whh)
    if not isinstance(outs, (list, tuple)):
        outs = [outs]
    return [o[:T] for o in outs]


# --------------------------------------------------------------------------
# Fused sentence-attention pooling + cross attention, tiled over batch blocks.
# --------------------------------------------------------------------------
def _attention_kernel(slens_ref, s_ref, vfs_ref, wsatt_ref, bsatt_ref,
                      wq_ref, wk_ref, wv_ref, bv_ref, vatt_ref, satt_ref):
    s = s_ref[...]                                   # (Ts, Bblk, Hs) f32
    Ts, Bblk, _ = s.shape
    lens = slens_ref[...]                            # (Bblk, 1) int32
    # sentence-attention logits as a lane reduction; validity mask in-kernel.
    t_ids = lax.broadcasted_iota(jnp.int32, (Ts, Bblk, 1), 0)
    valid = t_ids < lens[None]                       # (Ts, Bblk, 1)
    logits = (jnp.sum(s * wsatt_ref[...][None], axis=-1, keepdims=True)
              + bsatt_ref[...])                      # (Ts, Bblk, 1)
    logits = jnp.where(valid, logits, -1.0e10)
    logits = logits - jnp.max(logits, axis=0, keepdims=True)
    e = jnp.exp(logits)
    att = e / jnp.sum(e, axis=0, keepdims=True)
    s_att = jnp.sum(att * s, axis=0)                 # (Bblk, Hs)
    satt_ref[...] = s_att

    # cross attention on a (Bblk*Tv, Dv) slab.
    # TODO(synk): the merge/split reshapes are free relayouts only when
    # Tv % 8 == 0 (true in the demo; production Tv=100 pays a VMEM copy).
    _, Tv, Dv = vfs_ref.shape
    vf2 = vfs_ref[...].reshape(Bblk * Tv, Dv)
    q = jnp.dot(vf2, wq_ref[...],
                preferred_element_type=jnp.float32).reshape(Bblk, Tv, -1)
    v = (jnp.dot(vf2, wv_ref[...], preferred_element_type=jnp.float32)
         + bv_ref[...]).reshape(Bblk, Tv, -1)
    k = jnp.dot(s_att, wk_ref[...],
                preferred_element_type=jnp.float32)               # (Bblk, A)
    score = jnp.sum(q * k[:, None, :], axis=-1, keepdims=True)    # (Bblk,Tv,1)
    vatt_ref[...] = jnp.exp(jnp.tanh(score)) * v


def attention_pallas(slens_col, s_short, vfs, w_satt, b_satt, wq, wk, wv, bv,
                     *, batch_block=8):
    Ts, B, Hs = s_short.shape
    _, Tv, Dv = vfs.shape
    A, Vo = wq.shape[1], wv.shape[1]
    Bblk = min(batch_block, B)
    assert Bblk % 8 == 0 and B % Bblk == 0
    nb = B // Bblk

    def const2(shape):
        return pl.BlockSpec(shape, lambda b: (0, 0))

    outs = pl.pallas_call(
        _attention_kernel,
        grid=(nb,),
        in_specs=[
            pl.BlockSpec((Bblk, 1), lambda b: (b, 0)),           # slens
            pl.BlockSpec((Ts, Bblk, Hs), lambda b: (0, b, 0)),   # s_short
            pl.BlockSpec((Bblk, Tv, Dv), lambda b: (b, 0, 0)),   # vfs
            const2((1, Hs)), const2((1, 1)),                     # s_att W, b
            const2((Dv, A)), const2((Hs, A)),                    # Wq, Wk
            const2((Dv, Vo)), const2((1, Vo)),                   # Wv, bv
        ],
        out_specs=[
            pl.BlockSpec((Bblk, Tv, Vo), lambda b: (b, 0, 0)),
            pl.BlockSpec((Bblk, Hs), lambda b: (b, 0)),
        ],
        out_shape=[jax.ShapeDtypeStruct((B, Tv, Vo), jnp.float32),
                   jax.ShapeDtypeStruct((B, Hs), jnp.float32)],
        compiler_params=pltpu.CompilerParams(
            dimension_semantics=("parallel",),
            vmem_limit_bytes=32 * 1024 * 1024),
    )(slens_col, s_short, vfs, w_satt, b_satt, wq, wk, wv, bv)
    return outs[0], outs[1]


# --------------------------------------------------------------------------
# Fused tail: BatchNorm1d(eval) -> ReLU -> Linear(2Hm,Ppre) -> ReLU ->
#             Linear(Ppre,1) -> Sigmoid  (predictor_pre, squeeze) followed by
#             predictor: Linear(Tv,Ph) -> Tanh -> Linear(Ph,2).
# Tiled over batch blocks; consumes the fwd/bwd LSTM outputs in time-major
# layout so the (B,Tv,2Hm) concat/transpose is never materialized.
# --------------------------------------------------------------------------
def _tail_kernel(fwd_ref, bwd_ref, gamma_ref, beta_ref, mean_ref, var_ref,
                 w1_ref, b1_ref, w2_ref, b2_ref, w3_ref, b3_ref, w4_ref, b4_ref,
                 y_ref, se_ref):
    Tv, Bblk, Hm = fwd_ref.shape

    def bn_relu(x, lo):   # x: (Tv*Bblk, Hm); BN params channel slice [lo:lo+Hm]
        xn = ((x - mean_ref[:, lo:lo + Hm])
              * lax.rsqrt(var_ref[:, lo:lo + Hm] + 1e-5)
              * gamma_ref[:, lo:lo + Hm] + beta_ref[:, lo:lo + Hm])
        return jnp.maximum(xn, 0.0)

    # merging (Tv, Bblk) rows is a free relayout since Bblk % 8 == 0.
    xf = bn_relu(fwd_ref[...].reshape(Tv * Bblk, Hm), 0)
    xb = bn_relu(bwd_ref[...].reshape(Tv * Bblk, Hm), Hm)
    # Linear(2Hm -> Ppre) split over the [fwd, bwd] channel halves.
    h1 = (jnp.dot(xf, w1_ref[:Hm], preferred_element_type=jnp.float32)
          + jnp.dot(xb, w1_ref[Hm:], preferred_element_type=jnp.float32)
          + b1_ref[...])
    h1 = jnp.maximum(h1, 0.0).reshape(Tv, Bblk, -1)
    # Linear(Ppre -> 1) as a lane reduction (no N=1 matmul, no last-dim-1 store)
    logit = jnp.sum(h1 * w2_ref[...][None], axis=-1) + b2_ref[...]   # (Tv, Bblk)
    y_bt = jax.nn.sigmoid(logit).T        # (Bblk, Tv): the transpose is needed
    y_ref[...] = y_bt                     # for the predictor matmul anyway.

    # predictor head
    h2 = jnp.tanh(jnp.dot(y_bt, w3_ref[...], preferred_element_type=jnp.float32)
                  + b3_ref[...])
    se_ref[...] = (jnp.dot(h2, w4_ref[...], preferred_element_type=jnp.float32)
                   + b4_ref[...])


def tail_pallas(fwd_tm, bwd_tm, gamma, beta, mean, var,
                w1, b1, w2_row, b2, w3, b3, w4, b4, *, batch_block=8):
    Tv, B, Hm = fwd_tm.shape
    Ppre, Ph = w1.shape[1], w3.shape[1]
    Bblk = min(batch_block, B)
    assert Bblk % 8 == 0 and B % Bblk == 0
    nb = B // Bblk

    def const2(shape):
        return pl.BlockSpec(shape, lambda b: (0, 0))

    outs = pl.pallas_call(
        _tail_kernel,
        grid=(nb,),
        in_specs=[
            pl.BlockSpec((Tv, Bblk, Hm), lambda b: (0, b, 0)),
            pl.BlockSpec((Tv, Bblk, Hm), lambda b: (0, b, 0)),
            const2((1, 2 * Hm)), const2((1, 2 * Hm)),
            const2((1, 2 * Hm)), const2((1, 2 * Hm)),
            const2((2 * Hm, Ppre)), const2((1, Ppre)),
            const2((1, Ppre)), const2((1, 1)),
            const2((Tv, Ph)), const2((1, Ph)),
            const2((Ph, 2)), const2((1, 2)),
        ],
        out_specs=[
            pl.BlockSpec((Bblk, Tv), lambda b: (b, 0)),
            pl.BlockSpec((Bblk, 2), lambda b: (b, 0)),
        ],
        out_shape=[jax.ShapeDtypeStruct((B, Tv), jnp.float32),
                   jax.ShapeDtypeStruct((B, 2), jnp.float32)],
        compiler_params=pltpu.CompilerParams(
            dimension_semantics=("parallel",),
            vmem_limit_bytes=32 * 1024 * 1024),
    )(fwd_tm, bwd_tm, gamma, beta, mean, var, w1, b1, w2_row, b2, w3, b3, w4, b4)
    return outs[0], outs[1]


# --------------------------------------------------------------------------
# Full VideoConv forward (eval mode).
# --------------------------------------------------------------------------
def video_conv_forward(params, vfs, sfs, vlens, slens, *, time_chunk=16,
                       lstm_batch_block=None, head_batch_block=8):
    B, Tv, _ = vfs.shape
    _, Ts, _ = sfs.shape
    vlens = jnp.asarray(vlens, jnp.int32)
    slens = jnp.asarray(slens, jnp.int32)
    bf16 = jnp.bfloat16

    # pad batch to a multiple of 8 sublanes; padded rows have len=0 (fully
    # masked) and are sliced off at the end.
    Bp = int(pl.cdiv(B, 8)) * 8
    vfs_p = _pad_axis(vfs, 0, Bp)
    sfs_p = _pad_axis(sfs, 0, Bp)
    vlens_col = _pad_axis(vlens, 0, Bp).reshape(Bp, 1)
    slens_col = _pad_axis(slens, 0, Bp).reshape(Bp, 1)

    if lstm_batch_block is None:
        # split the batch in two when possible so both v7x TensorCores get
        # recurrence work; the few extra grid steps are cheap on v5e/v6e.
        lstm_batch_block = Bp // 2 if Bp % 16 == 0 else Bp

    # (dropout layers are identity in eval mode)

    # --- sentence LSTM: gate columns reordered to (i,f,o|g); input projection
    #     hoisted out of the recurrence as one f32 MXU matmul produced directly
    #     time-major; gates stored bf16 in HBM; chunked recurrence kernel. ---
    s_wih, s_whh, s_b = params["s_lstm"]
    Hs = s_whh.shape[0]
    s_wih, s_whh, s_b = (_reorder_gates(s_wih, Hs), _reorder_gates(s_whh, Hs),
                         _reorder_gates(s_b, Hs))
    s_gates = (jnp.einsum("btd,dg->tbg", sfs_p, s_wih) + s_b).astype(bf16)
    s_short = bilstm_pallas(s_gates[None], slens_col, s_whh[None],
                            time_chunk=time_chunk,
                            batch_block=lstm_batch_block)[0]      # (Ts, Bp, Hs)

    # --- fused sentence attention pooling + cross attention (batch-tiled) ---
    w_satt, b_satt = params["s_att"]
    wq, wk, wv, bv = params["guid"]
    v_attned, s_attned = attention_pallas(slens_col, s_short, vfs_p,
                                          w_satt, b_satt, wq, wk, wv, bv,
                                          batch_block=head_batch_block)

    # --- bidirectional mix LSTM.  mix_in = concat([v_attned, bcast(s_attned)])
    #     is decomposed so the concat/broadcast never materializes. ---
    mix_wih, mix_whh, mix_b = params["mix_lstm"]
    Hm = mix_whh.shape[1]
    mix_wih, mix_whh, mix_b = (_reorder_gates(mix_wih, Hm),
                               _reorder_gates(mix_whh, Hm),
                               _reorder_gates(mix_b, Hm))
    Vo = wv.shape[1]
    base = jnp.einsum("bh,dhg->dbg", s_attned, mix_wih[:, Vo:]) + mix_b
    mix_gates = (jnp.einsum("btv,dvg->dtbg", v_attned, mix_wih[:, :Vo])
                 + base[:, None]).astype(bf16)                    # (2,Tv,Bp,4Hm)
    mix_fwd, mix_bwd = bilstm_pallas(mix_gates, vlens_col, mix_whh,
                                     time_chunk=time_chunk,
                                     batch_block=lstm_batch_block)

    # --- fused predictor head (batch-tiled) ---
    y_p, se_p = tail_pallas(mix_fwd, mix_bwd,
                            *params["pred_pre"], *params["predictor"],
                            batch_block=head_batch_block)
    return y_p[:B], se_p[:B]


# --------------------------------------------------------------------------
# Deterministic parameter init (shapes follow the module's __init__;
# gate columns in PyTorch (i, f, g, o) order, reordered in the forward).
# --------------------------------------------------------------------------
def init_params(key, cfg):
    def nrm(k, shape, scale=0.1):
        return jax.random.normal(k, shape, dtype=jnp.float32) * scale

    ks = iter(jax.random.split(key, 32))
    Dv, Ds = cfg["v_dim"], cfg["s_dim"]
    Hs, Hm = cfg["s_lstm_hidden_dim"], cfg["mix_lstm_hidden_dim"]
    A, Vo = cfg["att_hidden_dim"], cfg["v_att_out_dim"]
    Ppre, Ph, Tt = (cfg["predictor_pre_hidden_dim"], cfg["predictor_hidden_dim"],
                    cfg["time_steps"])
    Dmix = Vo + Hs
    C = 2 * Hm

    params = {
        "s_lstm": (nrm(next(ks), (Ds, 4 * Hs)), nrm(next(ks), (Hs, 4 * Hs)),
                   nrm(next(ks), (1, 4 * Hs))),
        "s_att": (nrm(next(ks), (1, Hs)), nrm(next(ks), (1, 1))),
        "guid": (nrm(next(ks), (Dv, A)), nrm(next(ks), (Hs, A)),
                 nrm(next(ks), (Dv, Vo)), nrm(next(ks), (1, Vo))),
        # forward / backward direction stacked on a leading axis of size 2
        "mix_lstm": (nrm(next(ks), (2, Dmix, 4 * Hm)),
                     nrm(next(ks), (2, Hm, 4 * Hm)),
                     nrm(next(ks), (2, 1, 4 * Hm))),
        "pred_pre": (jnp.ones((1, C), jnp.float32) + nrm(next(ks), (1, C)),  # gamma
                     nrm(next(ks), (1, C)),                                  # beta
                     jnp.zeros((1, C), jnp.float32),                         # run mean
                     jnp.ones((1, C), jnp.float32),                          # run var
                     nrm(next(ks), (C, Ppre)), nrm(next(ks), (1, Ppre)),
                     nrm(next(ks), (1, Ppre)),                               # W(Ppre->1)
                     nrm(next(ks), (1, 1))),
        "predictor": (nrm(next(ks), (Tt, Ph)), nrm(next(ks), (1, Ph)),
                      nrm(next(ks), (Ph, 2)), nrm(next(ks), (1, 2))),
    }
    return params


if __name__ == "__main__":
    cfg = dict(v_dim=32, s_dim=16, time_steps=8, v_att_out_dim=16,
               att_hidden_dim=16, s_lstm_hidden_dim=16, mix_lstm_hidden_dim=16,
               predictor_pre_hidden_dim=16, predictor_hidden_dim=8)
    B, Tv, Ts = 2, cfg["time_steps"], 6
    vlens = jnp.array([8, 6], jnp.int32)     # max(vlens) == Tv
    slens = jnp.array([6, 4], jnp.int32)     # max(slens) == Ts

    key = jax.random.PRNGKey(0)
    kp, kv, ksf = jax.random.split(key, 3)
    params = init_params(kp, cfg)
    vfs = jax.random.normal(kv, (B, Tv, cfg["v_dim"]), dtype=jnp.float32)
    sfs = jax.random.normal(ksf, (B, Ts, cfg["s_dim"]), dtype=jnp.float32)

    y, se = jax.jit(video_conv_forward)(params, vfs, sfs, vlens, slens)
    jax.block_until_ready(y)
    jax.block_until_ready(se)
    assert y.shape == (B, Tv) and se.shape == (B, 2)
    print("KERNEL_OK")
</pallas_src>

<mosaic_0001>
module attributes {stable_mosaic.version = 11 : i64} {
  func.func @kernel(%arg0: i32, %arg1: i32, %arg2: memref<8x1xi32, #tpu.memory_space<vmem>>, %arg3: memref<1x6x8x64xbf16, #tpu.memory_space<vmem>>, %arg4: memref<1x16x64xf32, #tpu.memory_space<vmem>>, %arg5: memref<6x8x16xf32, #tpu.memory_space<vmem>>, %arg6: memref<1x8x16xf32, #tpu.memory_space<vmem>>, %arg7: memref<1x8x16xf32, #tpu.memory_space<vmem>>) attributes {dimension_semantics = [#tpu.dimension_semantics<parallel>, #tpu.dimension_semantics<arbitrary>], iteration_bounds = array<i64: 1, 1>, scalar_prefetch = 0 : i64, scratch_operands = 2 : i64, tpu.core_type = #tpu.core_type<tc>, window_params = [{transform_indices = @transform_0, window_bounds = array<i64: 8, 1>}, {transform_indices = @transform_1, window_bounds = array<i64: 1, 6, 8, 64>}, {pipeline_mode = #tpu.pipeline_mode<synchronous>, transform_indices = @transform_2, window_bounds = array<i64: 1, 16, 64>}, {transform_indices = @transform_3, window_bounds = array<i64: 6, 8, 16>}]} {
    %c0_i32 = arith.constant 0 : i32
    %0 = arith.cmpi eq, %arg1, %c0_i32 : i32
    %1 = arith.extui %0 : i1 to i32
    %c0_i32_0 = arith.constant 0 : i32
    %2 = arith.cmpi ne, %1, %c0_i32_0 : i32
    scf.if %2 {
      %cst_65 = arith.constant 0.000000e+00 : f32
      %232 = vector.broadcast %cst_65 : f32 to vector<1x8x16xf32>
      %c0_66 = arith.constant 0 : index
      %c0_67 = arith.constant 0 : index
      %c0_68 = arith.constant 0 : index
      %233 = vector.load %arg6[%c0_66, %c0_67, %c0_68] : memref<1x8x16xf32, #tpu.memory_space<vmem>>, vector<1x8x16xf32>
      tpu.vector_store %arg6[%c0_66, %c0_67, %c0_68], %232 {strides = array<i32>} : memref<1x8x16xf32, #tpu.memory_space<vmem>>, vector<1x8x16xf32>,
      %cst_69 = arith.constant 0.000000e+00 : f32
      %234 = vector.broadcast %cst_69 : f32 to vector<1x8x16xf32>
      %c0_70 = arith.constant 0 : index
      %c0_71 = arith.constant 0 : index
      %c0_72 = arith.constant 0 : index
      %235 = vector.load %arg7[%c0_70, %c0_71, %c0_72] : memref<1x8x16xf32, #tpu.memory_space<vmem>>, vector<1x8x16xf32>
      tpu.vector_store %arg7[%c0_70, %c0_71, %c0_72], %234 {strides = array<i32>} : memref<1x8x16xf32, #tpu.memory_space<vmem>>, vector<1x8x16xf32>,
    } else {
    }
    %c0 = arith.constant 0 : index
    %c0_1 = arith.constant 0 : index
    %3 = vector.load %arg2[%c0, %c0_1] : memref<8x1xi32, #tpu.memory_space<vmem>>, vector<8x1xi32>
    %c0_2 = arith.constant 0 : index
    %c0_3 = arith.constant 0 : index
    %c0_4 = arith.constant 0 : index
    %4 = vector.load %arg4[%c0_2, %c0_3, %c0_4] : memref<1x16x64xf32, #tpu.memory_space<vmem>>, vector<1x16x64xf32>
    %5 = vector.shape_cast %4 : vector<1x16x64xf32> to vector<16x64xf32>
    %c0_5 = arith.constant 0 : index
    %c0_6 = arith.constant 0 : index
    %c0_7 = arith.constant 0 : index
    %6 = vector.load %arg6[%c0_5, %c0_6, %c0_7] : memref<1x8x16xf32, #tpu.memory_space<vmem>>, vector<1x8x16xf32>
    %7 = vector.shape_cast %6 : vector<1x8x16xf32> to vector<8x16xf32>
    %c0_8 = arith.constant 0 : index
    %c0_9 = arith.constant 0 : index
    %c0_10 = arith.constant 0 : index
    %8 = vector.load %arg7[%c0_8, %c0_9, %c0_10] : memref<1x8x16xf32, #tpu.memory_space<vmem>>, vector<1x8x16xf32>
    %9 = vector.shape_cast %8 : vector<1x8x16xf32> to vector<8x16xf32>
    %c0_i32_11 = arith.constant 0 : i32
    %c6_i32 = arith.constant 6 : i32
    %10 = arith.muli %arg1, %c6_i32 : i32
    %11 = arith.addi %10, %c0_i32_11 : i32
    %c0_12 = arith.constant 0 : index
    %12 = arith.index_cast %c0_i32_11 : i32 to index
    %c0_13 = arith.constant 0 : index
    %c0_14 = arith.constant 0 : index
    %13 = vector.load %arg3[%c0_12, %12, %c0_13, %c0_14] : memref<1x6x8x64xbf16, #tpu.memory_space<vmem>>, vector<1x1x8x64xbf16>
    %14 = vector.shape_cast %13 : vector<1x1x8x64xbf16> to vector<8x64xbf16>
    %15 = arith.extf %14 : vector<8x64xbf16> to vector<8x64xf32>
    %cst = arith.constant dense<0.000000e+00> : vector<8x64xf32>
    %16 = tpu.matmul %7, %5, %cst {dimension_numbers = #tpu.dot_dimension_numbers<[1], [0], [0], [1], [0, 0, 1, 1], [], []>} : vector<8x16xf32>, vector<16x64xf32>, vector<8x64xf32> -> vector<8x64xf32>
    %17 = arith.addf %15, %16 : vector<8x64xf32>
    %18 = vector.broadcast %11 : i32 to vector<8x1xi32>
    %19 = arith.cmpi slt, %18, %3 : vector<8x1xi32>
    %20 = arith.extui %19 : vector<8x1xi1> to vector<8x1xi32>
    %21 = arith.sitofp %20 : vector<8x1xi32> to vector<8x1xf32>
    %22 = vector.extract_strided_slice %17 {offsets = [0, 0], sizes = [8, 48], strides = [1, 1]} : vector<8x64xf32> to vector<8x48xf32>
    %23 = arith.negf %22 : vector<8x48xf32>
    %24 = math.exp %23 : vector<8x48xf32>
    %cst_15 = arith.constant 1.000000e+00 : f32
    %25 = vector.broadcast %cst_15 : f32 to vector<8x48xf32>
    %26 = arith.addf %25, %24 : vector<8x48xf32>
    %27 = arith.divf %25, %26 : vector<8x48xf32>
    %28 = vector.extract_strided_slice %17 {offsets = [0, 48], sizes = [8, 16], strides = [1, 1]} : vector<8x64xf32> to vector<8x16xf32>
    %29 = math.tanh %28 : vector<8x16xf32>
    %30 = vector.extract_strided_slice %27 {offsets = [0, 0], sizes = [8, 16], strides = [1, 1]} : vector<8x48xf32> to vector<8x16xf32>
    %31 = vector.extract_strided_slice %27 {offsets = [0, 16], sizes = [8, 16], strides = [1, 1]} : vector<8x48xf32> to vector<8x16xf32>
    %32 = vector.extract_strided_slice %27 {offsets = [0, 32], sizes = [8, 16], strides = [1, 1]} : vector<8x48xf32> to vector<8x16xf32>
    %33 = arith.mulf %31, %9 : vector<8x16xf32>
    %34 = arith.mulf %30, %29 : vector<8x16xf32>
    %35 = arith.addf %33, %34 : vector<8x16xf32>
    %36 = vector.broadcast %21 : vector<8x1xf32> to vector<8x16xf32>
    %37 = arith.mulf %35, %36 : vector<8x16xf32>
    %38 = math.tanh %37 : vector<8x16xf32>
    %39 = arith.mulf %32, %38 : vector<8x16xf32>
    %40 = vector.broadcast %21 : vector<8x1xf32> to vector<8x16xf32>
    %41 = arith.mulf %39, %40 : vector<8x16xf32>
    %42 = arith.index_cast %c0_i32_11 : i32 to index
    %c0_16 = arith.constant 0 : index
    %c0_17 = arith.constant 0 : index
    %43 = vector.load %arg5[%42, %c0_16, %c0_17] : memref<6x8x16xf32, #tpu.memory_space<vmem>>, vector<1x8x16xf32>
    %44 = vector.shape_cast %43 : vector<1x8x16xf32> to vector<8x16xf32>
    %45 = vector.shape_cast %41 : vector<8x16xf32> to vector<1x8x16xf32>
    tpu.vector_store %arg5[%42, %c0_16, %c0_17], %45 {strides = array<i32>} : memref<6x8x16xf32, #tpu.memory_space<vmem>>, vector<1x8x16xf32>,
    %c1_i32 = arith.constant 1 : i32
    %c6_i32_18 = arith.constant 6 : i32
    %46 = arith.muli %arg1, %c6_i32_18 : i32
    %47 = arith.addi %46, %c1_i32 : i32
    %c0_19 = arith.constant 0 : index
    %48 = arith.index_cast %c1_i32 : i32 to index
    %c0_20 = arith.constant 0 : index
    %c0_21 = arith.constant 0 : index
    %49 = vector.load %arg3[%c0_19, %48, %c0_20, %c0_21] : memref<1x6x8x64xbf16, #tpu.memory_space<vmem>>, vector<1x1x8x64xbf16>
    %50 = vector.shape_cast %49 : vector<1x1x8x64xbf16> to vector<8x64xbf16>
    %51 = arith.extf %50 : vector<8x64xbf16> to vector<8x64xf32>
    %cst_22 = arith.constant dense<0.000000e+00> : vector<8x64xf32>
    %52 = tpu.matmul %41, %5, %cst_22 {dimension_numbers = #tpu.dot_dimension_numbers<[1], [0], [0], [1], [0, 0, 1, 1], [], []>} : vector<8x16xf32>, vector<16x64xf32>, vector<8x64xf32> -> vector<8x64xf32>
    %53 = arith.addf %51, %52 : vector<8x64xf32>
    %54 = vector.broadcast %47 : i32 to vector<8x1xi32>
    %55 = arith.cmpi slt, %54, %3 : vector<8x1xi32>
    %56 = arith.extui %55 : vector<8x1xi1> to vector<8x1xi32>
    %57 = arith.sitofp %56 : vector<8x1xi32> to vector<8x1xf32>
    %58 = vector.extract_strided_slice %53 {offsets = [0, 0], sizes = [8, 48], strides = [1, 1]} : vector<8x64xf32> to vector<8x48xf32>
    %59 = arith.negf %58 : vector<8x48xf32>
    %60 = math.exp %59 : vector<8x48xf32>
    %cst_23 = arith.constant 1.000000e+00 : f32
    %61 = vector.broadcast %cst_23 : f32 to vector<8x48xf32>
    %62 = arith.addf %61, %60 : vector<8x48xf32>
    %63 = arith.divf %61, %62 : vector<8x48xf32>
    %64 = vector.extract_strided_slice %53 {offsets = [0, 48], sizes = [8, 16], strides = [1, 1]} : vector<8x64xf32> to vector<8x16xf32>
    %65 = math.tanh %64 : vector<8x16xf32>
    %66 = vector.extract_strided_slice %63 {offsets = [0, 0], sizes = [8, 16], strides = [1, 1]} : vector<8x48xf32> to vector<8x16xf32>
    %67 = vector.extract_strided_slice %63 {offsets = [0, 16], sizes = [8, 16], strides = [1, 1]} : vector<8x48xf32> to vector<8x16xf32>
    %68 = vector.extract_strided_slice %63 {offsets = [0, 32], sizes = [8, 16], strides = [1, 1]} : vector<8x48xf32> to vector<8x16xf32>
    %69 = arith.mulf %67, %37 : vector<8x16xf32>
    %70 = arith.mulf %66, %65 : vector<8x16xf32>
    %71 = arith.addf %69, %70 : vector<8x16xf32>
    %72 = vector.broadcast %57 : vector<8x1xf32> to vector<8x16xf32>
    %73 = arith.mulf %71, %72 : vector<8x16xf32>
    %74 = math.tanh %73 : vector<8x16xf32>
    %75 = arith.mulf %68, %74 : vector<8x16xf32>
    %76 = vector.broadcast %57 : vector<8x1xf32> to vector<8x16xf32>
    %77 = arith.mulf %75, %76 : vector<8x16xf32>
    %78 = arith.index_cast %c1_i32 : i32 to index
    %c0_24 = arith.constant 0 : index
    %c0_25 = arith.constant 0 : index
    %79 = vector.load %arg5[%78, %c0_24, %c0_25] : memref<6x8x16xf32, #tpu.memory_space<vmem>>, vector<1x8x16xf32>
    %80 = vector.shape_cast %79 : vector<1x8x16xf32> to vector<8x16xf32>
    %81 = vector.shape_cast %77 : vector<8x16xf32> to vector<1x8x16xf32>
    tpu.vector_store %arg5[%78, %c0_24, %c0_25], %81 {strides = array<i32>} : memref<6x8x16xf32, #tpu.memory_space<vmem>>, vector<1x8x16xf32>,
    %c2_i32 = arith.constant 2 : i32
    %c6_i32_26 = arith.constant 6 : i32
    %82 = arith.muli %arg1, %c6_i32_26 : i32
    %83 = arith.addi %82, %c2_i32 : i32
    %c0_27 = arith.constant 0 : index
    %84 = arith.index_cast %c2_i32 : i32 to index
    %c0_28 = arith.constant 0 : index
    %c0_29 = arith.constant 0 : index
    %85 = vector.load %arg3[%c0_27, %84, %c0_28, %c0_29] : memref<1x6x8x64xbf16, #tpu.memory_space<vmem>>, vector<1x1x8x64xbf16>
    %86 = vector.shape_cast %85 : vector<1x1x8x64xbf16> to vector<8x64xbf16>
    %87 = arith.extf %86 : vector<8x64xbf16> to vector<8x64xf32>
    %cst_30 = arith.constant dense<0.000000e+00> : vector<8x64xf32>
    %88 = tpu.matmul %77, %5, %cst_30 {dimension_numbers = #tpu.dot_dimension_numbers<[1], [0], [0], [1], [0, 0, 1, 1], [], []>} : vector<8x16xf32>, vector<16x64xf32>, vector<8x64xf32> -> vector<8x64xf32>
    %89 = arith.addf %87, %88 : vector<8x64xf32>
    %90 = vector.broadcast %83 : i32 to vector<8x1xi32>
    %91 = arith.cmpi slt, %90, %3 : vector<8x1xi32>
    %92 = arith.extui %91 : vector<8x1xi1> to vector<8x1xi32>
    %93 = arith.sitofp %92 : vector<8x1xi32> to vector<8x1xf32>
    %94 = vector.extract_strided_slice %89 {offsets = [0, 0], sizes = [8, 48], strides = [1, 1]} : vector<8x64xf32> to vector<8x48xf32>
    %95 = arith.negf %94 : vector<8x48xf32>
    %96 = math.exp %95 : vector<8x48xf32>
    %cst_31 = arith.constant 1.000000e+00 : f32
    %97 = vector.broadcast %cst_31 : f32 to vector<8x48xf32>
    %98 = arith.addf %97, %96 : vector<8x48xf32>
    %99 = arith.divf %97, %98 : vector<8x48xf32>
    %100 = vector.extract_strided_slice %89 {offsets = [0, 48], sizes = [8, 16], strides = [1, 1]} : vector<8x64xf32> to vector<8x16xf32>
    %101 = math.tanh %100 : vector<8x16xf32>
    %102 = vector.extract_strided_slice %99 {offsets = [0, 0], sizes = [8, 16], strides = [1, 1]} : vector<8x48xf32> to vector<8x16xf32>
    %103 = vector.extract_strided_slice %99 {offsets = [0, 16], sizes = [8, 16], strides = [1, 1]} : vector<8x48xf32> to vector<8x16xf32>
    %104 = vector.extract_strided_slice %99 {offsets = [0, 32], sizes = [8, 16], strides = [1, 1]} : vector<8x48xf32> to vector<8x16xf32>
    %105 = arith.mulf %103, %73 : vector<8x16xf32>
    %106 = arith.mulf %102, %101 : vector<8x16xf32>
    %107 = arith.addf %105, %106 : vector<8x16xf32>
    %108 = vector.broadcast %93 : vector<8x1xf32> to vector<8x16xf32>
    %109 = arith.mulf %107, %108 : vector<8x16xf32>
    %110 = math.tanh %109 : vector<8x16xf32>
    %111 = arith.mulf %104, %110 : vector<8x16xf32>
    %112 = vector.broadcast %93 : vector<8x1xf32> to vector<8x16xf32>
    %113 = arith.mulf %111, %112 : vector<8x16xf32>
    %114 = arith.index_cast %c2_i32 : i32 to index
    %c0_32 = arith.constant 0 : index
    %c0_33 = arith.constant 0 : index
    %115 = vector.load %arg5[%114, %c0_32, %c0_33] : memref<6x8x16xf32, #tpu.memory_space<vmem>>, vector<1x8x16xf32>
    %116 = vector.shape_cast %115 : vector<1x8x16xf32> to vector<8x16xf32>
    %117 = vector.shape_cast %113 : vector<8x16xf32> to vector<1x8x16xf32>
    tpu.vector_store %arg5[%114, %c0_32, %c0_33], %117 {strides = array<i32>} : memref<6x8x16xf32, #tpu.memory_space<vmem>>, vector<1x8x16xf32>,
    %c3_i32 = arith.constant 3 : i32
    %c6_i32_34 = arith.constant 6 : i32
    %118 = arith.muli %arg1, %c6_i32_34 : i32
    %119 = arith.addi %118, %c3_i32 : i32
    %c0_35 = arith.constant 0 : index
    %120 = arith.index_cast %c3_i32 : i32 to index
    %c0_36 = arith.constant 0 : index
    %c0_37 = arith.constant 0 : index
    %121 = vector.load %arg3[%c0_35, %120, %c0_36, %c0_37] : memref<1x6x8x64xbf16, #tpu.memory_space<vmem>>, vector<1x1x8x64xbf16>
    %122 = vector.shape_cast %121 : vector<1x1x8x64xbf16> to vector<8x64xbf16>
    %123 = arith.extf %122 : vector<8x64xbf16> to vector<8x64xf32>
    %cst_38 = arith.constant dense<0.000000e+00> : vector<8x64xf32>
    %124 = tpu.matmul %113, %5, %cst_38 {dimension_numbers = #tpu.dot_dimension_numbers<[1], [0], [0], [1], [0, 0, 1, 1], [], []>} : vector<8x16xf32>, vector<16x64xf32>, vector<8x64xf32> -> vector<8x64xf32>
    %125 = arith.addf %123, %124 : vector<8x64xf32>
    %126 = vector.broadcast %119 : i32 to vector<8x1xi32>
    %127 = arith.cmpi slt, %126, %3 : vector<8x1xi32>
    %128 = arith.extui %127 : vector<8x1xi1> to vector<8x1xi32>
    %129 = arith.sitofp %128 : vector<8x1xi32> to vector<8x1xf32>
    %130 = vector.extract_strided_slice %125 {offsets = [0, 0], sizes = [8, 48], strides = [1, 1]} : vector<8x64xf32> to vector<8x48xf32>
    %131 = arith.negf %130 : vector<8x48xf32>
    %132 = math.exp %131 : vector<8x48xf32>
    %cst_39 = arith.constant 1.000000e+00 : f32
    %133 = vector.broadcast %cst_39 : f32 to vector<8x48xf32>
    %134 = arith.addf %133, %132 : vector<8x48xf32>
    %135 = arith.divf %133, %134 : vector<8x48xf32>
    %136 = vector.extract_strided_slice %125 {offsets = [0, 48], sizes = [8, 16], strides = [1, 1]} : vector<8x64xf32> to vector<8x16xf32>
    %137 = math.tanh %136 : vector<8x16xf32>
    %138 = vector.extract_strided_slice %135 {offsets = [0, 0], sizes = [8, 16], strides = [1, 1]} : vector<8x48xf32> to vector<8x16xf32>
    %139 = vector.extract_strided_slice %135 {offsets = [0, 16], sizes = [8, 16], strides = [1, 1]} : vector<8x48xf32> to vector<8x16xf32>
    %140 = vector.extract_strided_slice %135 {offsets = [0, 32], sizes = [8, 16], strides = [1, 1]} : vector<8x48xf32> to vector<8x16xf32>
    %141 = arith.mulf %139, %109 : vector<8x16xf32>
    %142 = arith.mulf %138, %137 : vector<8x16xf32>
    %143 = arith.addf %141, %142 : vector<8x16xf32>
    %144 = vector.broadcast %129 : vector<8x1xf32> to vector<8x16xf32>
    %145 = arith.mulf %143, %144 : vector<8x16xf32>
    %146 = math.tanh %145 : vector<8x16xf32>
    %147 = arith.mulf %140, %146 : vector<8x16xf32>
    %148 = vector.broadcast %129 : vector<8x1xf32> to vector<8x16xf32>
    %149 = arith.mulf %147, %148 : vector<8x16xf32>
    %150 = arith.index_cast %c3_i32 : i32 to index
    %c0_40 = arith.constant 0 : index
    %c0_41 = arith.constant 0 : index
    %151 = vector.load %arg5[%150, %c0_40, %c0_41] : memref<6x8x16xf32, #tpu.memory_space<vmem>>, vector<1x8x16xf32>
    %152 = vector.shape_cast %151 : vector<1x8x16xf32> to vector<8x16xf32>
    %153 = vector.shape_cast %149 : vector<8x16xf32> to vector<1x8x16xf32>
    tpu.vector_store %arg5[%150, %c0_40, %c0_41], %153 {strides = array<i32>} : memref<6x8x16xf32, #tpu.memory_space<vmem>>, vector<1x8x16xf32>,
    %c4_i32 = arith.constant 4 : i32
    %c6_i32_42 = arith.constant 6 : i32
    %154 = arith.muli %arg1, %c6_i32_42 : i32
    %155 = arith.addi %154, %c4_i32 : i32
    %c0_43 = arith.constant 0 : index
    %156 = arith.index_cast %c4_i32 : i32 to index
    %c0_44 = arith.constant 0 : index
    %c0_45 = arith.constant 0 : index
    %157 = vector.load %arg3[%c0_43, %156, %c0_44, %c0_45] : memref<1x6x8x64xbf16, #tpu.memory_space<vmem>>, vector<1x1x8x64xbf16>
    %158 = vector.shape_cast %157 : vector<1x1x8x64xbf16> to vector<8x64xbf16>
    %159 = arith.extf %158 : vector<8x64xbf16> to vector<8x64xf32>
    %cst_46 = arith.constant dense<0.000000e+00> : vector<8x64xf32>
    %160 = tpu.matmul %149, %5, %cst_46 {dimension_numbers = #tpu.dot_dimension_numbers<[1], [0], [0], [1], [0, 0, 1, 1], [], []>} : vector<8x16xf32>, vector<16x64xf32>, vector<8x64xf32> -> vector<8x64xf32>
    %161 = arith.addf %159, %160 : vector<8x64xf32>
    %162 = vector.broadcast %155 : i32 to vector<8x1xi32>
    %163 = arith.cmpi slt, %162, %3 : vector<8x1xi32>
    %164 = arith.extui %163 : vector<8x1xi1> to vector<8x1xi32>
    %165 = arith.sitofp %164 : vector<8x1xi32> to vector<8x1xf32>
    %166 = vector.extract_strided_slice %161 {offsets = [0, 0], sizes = [8, 48], strides = [1, 1]} : vector<8x64xf32> to vector<8x48xf32>
    %167 = arith.negf %166 : vector<8x48xf32>
    %168 = math.exp %167 : vector<8x48xf32>
    %cst_47 = arith.constant 1.000000e+00 : f32
    %169 = vector.broadcast %cst_47 : f32 to vector<8x48xf32>
    %170 = arith.addf %169, %168 : vector<8x48xf32>
    %171 = arith.divf %169, %170 : vector<8x48xf32>
    %172 = vector.extract_strided_slice %161 {offsets = [0, 48], sizes = [8, 16], strides = [1, 1]} : vector<8x64xf32> to vector<8x16xf32>
    %173 = math.tanh %172 : vector<8x16xf32>
    %174 = vector.extract_strided_slice %171 {offsets = [0, 0], sizes = [8, 16], strides = [1, 1]} : vector<8x48xf32> to vector<8x16xf32>
    %175 = vector.extract_strided_slice %171 {offsets = [0, 16], sizes = [8, 16], strides = [1, 1]} : vector<8x48xf32> to vector<8x16xf32>
    %176 = vector.extract_strided_slice %171 {offsets = [0, 32], sizes = [8, 16], strides = [1, 1]} : vector<8x48xf32> to vector<8x16xf32>
    %177 = arith.mulf %175, %145 : vector<8x16xf32>
    %178 = arith.mulf %174, %173 : vector<8x16xf32>
    %179 = arith.addf %177, %178 : vector<8x16xf32>
    %180 = vector.broadcast %165 : vector<8x1xf32> to vector<8x16xf32>
    %181 = arith.mulf %179, %180 : vector<8x16xf32>
    %182 = math.tanh %181 : vector<8x16xf32>
    %183 = arith.mulf %176, %182 : vector<8x16xf32>
    %184 = vector.broadcast %165 : vector<8x1xf32> to vector<8x16xf32>
    %185 = arith.mulf %183, %184 : vector<8x16xf32>
    %186 = arith.index_cast %c4_i32 : i32 to index
    %c0_48 = arith.constant 0 : index
    %c0_49 = arith.constant 0 : index
    %187 = vector.load %arg5[%186, %c0_48, %c0_49] : memref<6x8x16xf32, #tpu.memory_space<vmem>>, vector<1x8x16xf32>
    %188 = vector.shape_cast %187 : vector<1x8x16xf32> to vector<8x16xf32>
    %189 = vector.shape_cast %185 : vector<8x16xf32> to vector<1x8x16xf32>
    tpu.vector_store %arg5[%186, %c0_48, %c0_49], %189 {strides = array<i32>} : memref<6x8x16xf32, #tpu.memory_space<vmem>>, vector<1x8x16xf32>,
    %c5_i32 = arith.constant 5 : i32
    %c6_i32_50 = arith.constant 6 : i32
    %190 = arith.muli %arg1, %c6_i32_50 : i32
    %191 = arith.addi %190, %c5_i32 : i32
    %c0_51 = arith.constant 0 : index
    %192 = arith.index_cast %c5_i32 : i32 to index
    %c0_52 = arith.constant 0 : index
    %c0_53 = arith.constant 0 : index
    %193 = vector.load %arg3[%c0_51, %192, %c0_52, %c0_53] : memref<1x6x8x64xbf16, #tpu.memory_space<vmem>>, vector<1x1x8x64xbf16>
    %194 = vector.shape_cast %193 : vector<1x1x8x64xbf16> to vector<8x64xbf16>
    %195 = arith.extf %194 : vector<8x64xbf16> to vector<8x64xf32>
    %cst_54 = arith.constant dense<0.000000e+00> : vector<8x64xf32>
    %196 = tpu.matmul %185, %5, %cst_54 {dimension_numbers = #tpu.dot_dimension_numbers<[1], [0], [0], [1], [0, 0, 1, 1], [], []>} : vector<8x16xf32>, vector<16x64xf32>, vector<8x64xf32> -> vector<8x64xf32>
    %197 = arith.addf %195, %196 : vector<8x64xf32>
    %198 = vector.broadcast %191 : i32 to vector<8x1xi32>
    %199 = arith.cmpi slt, %198, %3 : vector<8x1xi32>
    %200 = arith.extui %199 : vector<8x1xi1> to vector<8x1xi32>
    %201 = arith.sitofp %200 : vector<8x1xi32> to vector<8x1xf32>
    %202 = vector.extract_strided_slice %197 {offsets = [0, 0], sizes = [8, 48], strides = [1, 1]} : vector<8x64xf32> to vector<8x48xf32>
    %203 = arith.negf %202 : vector<8x48xf32>
    %204 = math.exp %203 : vector<8x48xf32>
    %cst_55 = arith.constant 1.000000e+00 : f32
    %205 = vector.broadcast %cst_55 : f32 to vector<8x48xf32>
    %206 = arith.addf %205, %204 : vector<8x48xf32>
    %207 = arith.divf %205, %206 : vector<8x48xf32>
    %208 = vector.extract_strided_slice %197 {offsets = [0, 48], sizes = [8, 16], strides = [1, 1]} : vector<8x64xf32> to vector<8x16xf32>
    %209 = math.tanh %208 : vector<8x16xf32>
    %210 = vector.extract_strided_slice %207 {offsets = [0, 0], sizes = [8, 16], strides = [1, 1]} : vector<8x48xf32> to vector<8x16xf32>
    %211 = vector.extract_strided_slice %207 {offsets = [0, 16], sizes = [8, 16], strides = [1, 1]} : vector<8x48xf32> to vector<8x16xf32>
    %212 = vector.extract_strided_slice %207 {offsets = [0, 32], sizes = [8, 16], strides = [1, 1]} : vector<8x48xf32> to vector<8x16xf32>
    %213 = arith.mulf %211, %181 : vector<8x16xf32>
    %214 = arith.mulf %210, %209 : vector<8x16xf32>
    %215 = arith.addf %213, %214 : vector<8x16xf32>
    %216 = vector.broadcast %201 : vector<8x1xf32> to vector<8x16xf32>
    %217 = arith.mulf %215, %216 : vector<8x16xf32>
    %218 = math.tanh %217 : vector<8x16xf32>
    %219 = arith.mulf %212, %218 : vector<8x16xf32>
    %220 = vector.broadcast %201 : vector<8x1xf32> to vector<8x16xf32>
    %221 = arith.mulf %219, %220 : vector<8x16xf32>
    %222 = arith.index_cast %c5_i32 : i32 to index
    %c0_56 = arith.constant 0 : index
    %c0_57 = arith.constant 0 : index
    %223 = vector.load %arg5[%222, %c0_56, %c0_57] : memref<6x8x16xf32, #tpu.memory_space<vmem>>, vector<1x8x16xf32>
    %224 = vector.shape_cast %223 : vector<1x8x16xf32> to vector<8x16xf32>
    %225 = vector.shape_cast %221 : vector<8x16xf32> to vector<1x8x16xf32>
    tpu.vector_store %arg5[%222, %c0_56, %c0_57], %225 {strides = array<i32>} : memref<6x8x16xf32, #tpu.memory_space<vmem>>, vector<1x8x16xf32>,
    %c6_i32_58 = arith.constant 6 : i32
    %c0_59 = arith.constant 0 : index
    %c0_60 = arith.constant 0 : index
    %c0_61 = arith.constant 0 : index
    %226 = vector.load %arg6[%c0_59, %c0_60, %c0_61] : memref<1x8x16xf32, #tpu.memory_space<vmem>>, vector<1x8x16xf32>
    %227 = vector.shape_cast %226 : vector<1x8x16xf32> to vector<8x16xf32>
    %228 = vector.shape_cast %221 : vector<8x16xf32> to vector<1x8x16xf32>
    tpu.vector_store %arg6[%c0_59, %c0_60, %c0_61], %228 {strides = array<i32>} : memref<1x8x16xf32, #tpu.memory_space<vmem>>, vector<1x8x16xf32>,
    %c0_62 = arith.constant 0 : index
    %c0_63 = arith.constant 0 : index
    %c0_64 = arith.constant 0 : index
    %229 = vector.load %arg7[%c0_62, %c0_63, %c0_64] : memref<1x8x16xf32, #tpu.memory_space<vmem>>, vector<1x8x16xf32>
    %230 = vector.shape_cast %229 : vector<1x8x16xf32> to vector<8x16xf32>
    %231 = vector.shape_cast %217 : vector<8x16xf32> to vector<1x8x16xf32>
    tpu.vector_store %arg7[%c0_62, %c0_63, %c0_64], %231 {strides = array<i32>} : memref<1x8x16xf32, #tpu.memory_space<vmem>>, vector<1x8x16xf32>,
    return
  }
  func.func @transform_0(%arg0: i32, %arg1: i32) -> (i32, i32) {
    %c0_i32 = arith.constant 0 : i32
    %c0_i32_0 = arith.constant 0 : i32
    return %arg0, %c0_i32 : i32, i32
  }
  func.func @transform_1(%arg0: i32, %arg1: i32) -> (i32, i32, i32, i32) {
    %c0_i32 = arith.constant 0 : i32
    %c0_i32_0 = arith.constant 0 : i32
    %c0_i32_1 = arith.constant 0 : i32
    return %c0_i32, %arg1, %arg0, %c0_i32_0 : i32, i32, i32, i32
  }
  func.func @transform_2(%arg0: i32, %arg1: i32) -> (i32, i32, i32) {
    %c0_i32 = arith.constant 0 : i32
    %c0_i32_0 = arith.constant 0 : i32
    %c0_i32_1 = arith.constant 0 : i32
    %c0_i32_2 = arith.constant 0 : i32
    return %c0_i32, %c0_i32_0, %c0_i32_1 : i32, i32, i32
  }
  func.func @transform_3(%arg0: i32, %arg1: i32) -> (i32, i32, i32) {
    %c0_i32 = arith.constant 0 : i32
    %c0_i32_0 = arith.constant 0 : i32
    return %arg1, %arg0, %c0_i32 : i32, i32, i32
  }
}

module attributes {stable_mosaic.version = 11 : i64} {
  func.func @_attention_kernel(%arg0: i32, %arg1: memref<8x1xi32, #tpu.memory_space<vmem>>, %arg2: memref<6x8x16xf32, #tpu.memory_space<vmem>>, %arg3: memref<8x8x32xf32, #tpu.memory_space<vmem>>, %arg4: memref<1x16xf32, #tpu.memory_space<vmem>>, %arg5: memref<1x1xf32, #tpu.memory_space<vmem>>, %arg6: memref<32x16xf32, #tpu.memory_space<vmem>>, %arg7: memref<16x16xf32, #tpu.memory_space<vmem>>, %arg8: memref<32x16xf32, #tpu.memory_space<vmem>>, %arg9: memref<1x16xf32, #tpu.memory_space<vmem>>, %arg10: memref<8x8x16xf32, #tpu.memory_space<vmem>>, %arg11: memref<8x16xf32, #tpu.memory_space<vmem>>) attributes {dimension_semantics = [#tpu.dimension_semantics<parallel>], iteration_bounds = array<i64: 1>, scalar_prefetch = 0 : i64, scratch_operands = 0 : i64, tpu.core_type = #tpu.core_type<tc>, window_params = [{transform_indices = @transform_0, window_bounds = array<i64: 8, 1>}, {transform_indices = @transform_1, window_bounds = array<i64: 6, 8, 16>}, {transform_indices = @transform_2, window_bounds = array<i64: 8, 8, 32>}, {pipeline_mode = #tpu.pipeline_mode<synchronous>, transform_indices = @transform_3, window_bounds = array<i64: 1, 16>}, {pipeline_mode = #tpu.pipeline_mode<synchronous>, transform_indices = @transform_4, window_bounds = array<i64: 1, 1>}, {pipeline_mode = #tpu.pipeline_mode<synchronous>, transform_indices = @transform_5, window_bounds = array<i64: 32, 16>}, {pipeline_mode = #tpu.pipeline_mode<synchronous>, transform_indices = @transform_6, window_bounds = array<i64: 16, 16>}, {pipeline_mode = #tpu.pipeline_mode<synchronous>, transform_indices = @transform_7, window_bounds = array<i64: 32, 16>}, {pipeline_mode = #tpu.pipeline_mode<synchronous>, transform_indices = @transform_8, window_bounds = array<i64: 1, 16>}, {transform_indices = @transform_9, window_bounds = array<i64: 8, 8, 16>}, {transform_indices = @transform_10, window_bounds = array<i64: 8, 16>}]} {
    %c0 = arith.constant 0 : index
    %c0_0 = arith.constant 0 : index
    %c0_1 = arith.constant 0 : index
    %0 = vector.load %arg2[%c0, %c0_0, %c0_1] : memref<6x8x16xf32, #tpu.memory_space<vmem>>, vector<6x8x16xf32>
    %c0_2 = arith.constant 0 : index
    %c0_3 = arith.constant 0 : index
    %1 = vector.load %arg1[%c0_2, %c0_3] : memref<8x1xi32, #tpu.memory_space<vmem>>, vector<8x1xi32>
    %2 = tpu.iota {dimensions = array<i32: 0>} : vector<6x8x1xi32>
    %3 = vector.shape_cast %1 : vector<8x1xi32> to vector<1x8x1xi32>
    %4 = vector.broadcast %3 : vector<1x8x1xi32> to vector<6x8x1xi32>
    %5 = arith.cmpi slt, %2, %4 : vector<6x8x1xi32>
    %c0_4 = arith.constant 0 : index
    %c0_5 = arith.constant 0 : index
    %6 = vector.load %arg4[%c0_4, %c0_5] : memref<1x16xf32, #tpu.memory_space<vmem>>, vector<1x16xf32>
    %7 = vector.shape_cast %6 : vector<1x16xf32> to vector<1x1x16xf32>
    %8 = vector.broadcast %7 : vector<1x1x16xf32> to vector<6x8x16xf32>
    %9 = arith.mulf %0, %8 : vector<6x8x16xf32>
    %cst = arith.constant dense<0.000000e+00> : vector<6x8xf32>
    %10 = vector.multi_reduction <add>, %9, %cst [2] : vector<6x8x16xf32> to vector<6x8xf32>
    %11 = vector.shape_cast %10 : vector<6x8xf32> to vector<6x8x1xf32>
    %c0_6 = arith.constant 0 : index
    %c0_7 = arith.constant 0 : index
    %12 = vector.load %arg5[%c0_6, %c0_7] : memref<1x1xf32, #tpu.memory_space<vmem>>, vector<1x1xf32>
    %13 = vector.shape_cast %12 : vector<1x1xf32> to vector<1x1x1xf32>
    %14 = vector.broadcast %13 : vector<1x1x1xf32> to vector<6x8x1xf32>
    %15 = arith.addf %11, %14 : vector<6x8x1xf32>
    %cst_8 = arith.constant -1.000000e+10 : f32
    %16 = vector.broadcast %cst_8 : f32 to vector<6x8x1xf32>
    %17 = arith.select %5, %15, %16 : vector<6x8x1xi1>, vector<6x8x1xf32>
    %cst_9 = arith.constant dense<0xFF800000> : vector<8x1xf32>
    %18 = vector.multi_reduction <maximumf>, %17, %cst_9 [0] : vector<6x8x1xf32> to vector<8x1xf32>
    %19 = vector.shape_cast %18 : vector<8x1xf32> to vector<1x8x1xf32>
    %20 = vector.broadcast %19 : vector<1x8x1xf32> to vector<6x8x1xf32>
    %21 = arith.subf %17, %20 : vector<6x8x1xf32>
    %22 = math.exp %21 : vector<6x8x1xf32>
    %cst_10 = arith.constant dense<0.000000e+00> : vector<8x1xf32>
    %23 = vector.multi_reduction <add>, %22, %cst_10 [0] : vector<6x8x1xf32> to vector<8x1xf32>
    %24 = vector.shape_cast %23 : vector<8x1xf32> to vector<1x8x1xf32>
    %25 = vector.broadcast %24 : vector<1x8x1xf32> to vector<6x8x1xf32>
    %26 = arith.divf %22, %25 : vector<6x8x1xf32>
    %27 = vector.broadcast %26 : vector<6x8x1xf32> to vector<6x8x16xf32>
    %28 = arith.mulf %27, %0 : vector<6x8x16xf32>
    %cst_11 = arith.constant dense<0.000000e+00> : vector<8x16xf32>
    %29 = vector.multi_reduction <add>, %28, %cst_11 [0] : vector<6x8x16xf32> to vector<8x16xf32>
    %c0_12 = arith.constant 0 : index
    %c0_13 = arith.constant 0 : index
    %30 = vector.load %arg11[%c0_12, %c0_13] : memref<8x16xf32, #tpu.memory_space<vmem>>, vector<8x16xf32>
    tpu.vector_store %arg11[%c0_12, %c0_13], %29 {strides = array<i32>} : memref<8x16xf32, #tpu.memory_space<vmem>>, vector<8x16xf32>,
    %c0_14 = arith.constant 0 : index
    %c0_15 = arith.constant 0 : index
    %c0_16 = arith.constant 0 : index
    %31 = vector.load %arg3[%c0_14, %c0_15, %c0_16] : memref<8x8x32xf32, #tpu.memory_space<vmem>>, vector<8x8x32xf32>
    %32 = vector.shape_cast %31 : vector<8x8x32xf32> to vector<64x32xf32>
    %c0_17 = arith.constant 0 : index
    %c0_18 = arith.constant 0 : index
    %33 = vector.load %arg6[%c0_17, %c0_18] : memref<32x16xf32, #tpu.memory_space<vmem>>, vector<32x16xf32>
    %cst_19 = arith.constant dense<0.000000e+00> : vector<64x16xf32>
    %34 = tpu.matmul %32, %33, %cst_19 {dimension_numbers = #tpu.dot_dimension_numbers<[1], [0], [0], [1], [0, 0, 1, 1], [], []>} : vector<64x32xf32>, vector<32x16xf32>, vector<64x16xf32> -> vector<64x16xf32>
    %35 = vector.shape_cast %34 : vector<64x16xf32> to vector<8x8x16xf32>
    %c0_20 = arith.constant 0 : index
    %c0_21 = arith.constant 0 : index
    %36 = vector.load %arg8[%c0_20, %c0_21] : memref<32x16xf32, #tpu.memory_space<vmem>>, vector<32x16xf32>
    %cst_22 = arith.constant dense<0.000000e+00> : vector<64x16xf32>
    %37 = tpu.matmul %32, %36, %cst_22 {dimension_numbers = #tpu.dot_dimension_numbers<[1], [0], [0], [1], [0, 0, 1, 1], [], []>} : vector<64x32xf32>, vector<32x16xf32>, vector<64x16xf32> -> vector<64x16xf32>
    %c0_23 = arith.constant 0 : index
    %c0_24 = arith.constant 0 : index
    %38 = vector.load %arg9[%c0_23, %c0_24] : memref<1x16xf32, #tpu.memory_space<vmem>>, vector<1x16xf32>
    %39 = vector.broadcast %38 : vector<1x16xf32> to vector<64x16xf32>
    %40 = arith.addf %37, %39 : vector<64x16xf32>
    %41 = vector.shape_cast %40 : vector<64x16xf32> to vector<8x8x16xf32>
    %c0_25 = arith.constant 0 : index
    %c0_26 = arith.constant 0 : index
    %42 = vector.load %arg7[%c0_25, %c0_26] : memref<16x16xf32, #tpu.memory_space<vmem>>, vector<16x16xf32>
    %cst_27 = arith.constant dense<0.000000e+00> : vector<8x16xf32>
    %43 = tpu.matmul %29, %42, %cst_27 {dimension_numbers = #tpu.dot_dimension_numbers<[1], [0], [0], [1], [0, 0, 1, 1], [], []>} : vector<8x16xf32>, vector<16x16xf32>, vector<8x16xf32> -> vector<8x16xf32>
    %44 = vector.shape_cast %43 : vector<8x16xf32> to vector<8x1x16xf32>
    %45 = vector.broadcast %44 : vector<8x1x16xf32> to vector<8x8x16xf32>
    %46 = arith.mulf %35, %45 : vector<8x8x16xf32>
    %cst_28 = arith.constant dense<0.000000e+00> : vector<8x8xf32>
    %47 = vector.multi_reduction <add>, %46, %cst_28 [2] : vector<8x8x16xf32> to vector<8x8xf32>
    %48 = vector.shape_cast %47 : vector<8x8xf32> to vector<8x8x1xf32>
    %49 = math.tanh %48 : vector<8x8x1xf32>
    %50 = math.exp %49 : vector<8x8x1xf32>
    %51 = vector.broadcast %50 : vector<8x8x1xf32> to vector<8x8x16xf32>
    %52 = arith.mulf %51, %41 : vector<8x8x16xf32>
    %c0_29 = arith.constant 0 : index
    %c0_30 = arith.constant 0 : index
    %c0_31 = arith.constant 0 : index
    %53 = vector.load %arg10[%c0_29, %c0_30, %c0_31] : memref<8x8x16xf32, #tpu.memory_space<vmem>>, vector<8x8x16xf32>
    tpu.vector_store %arg10[%c0_29, %c0_30, %c0_31], %52 {strides = array<i32>} : memref<8x8x16xf32, #tpu.memory_space<vmem>>, vector<8x8x16xf32>,
    return
  }
  func.func @transform_0(%arg0: i32) -> (i32, i32) {
    %c0_i32 = arith.constant 0 : i32
    %c0_i32_0 = arith.constant 0 : i32
    return %arg0, %c0_i32 : i32, i32
  }
  func.func @transform_1(%arg0: i32) -> (i32, i32, i32) {
    %c0_i32 = arith.constant 0 : i32
    %c0_i32_0 = arith.constant 0 : i32
    %c0_i32_1 = arith.constant 0 : i32
    return %c0_i32, %arg0, %c0_i32_0 : i32, i32, i32
  }
  func.func @transform_2(%arg0: i32) -> (i32, i32, i32) {
    %c0_i32 = arith.constant 0 : i32
    %c0_i32_0 = arith.constant 0 : i32
    %c0_i32_1 = arith.constant 0 : i32
    return %arg0, %c0_i32, %c0_i32_0 : i32, i32, i32
  }
  func.func @transform_3(%arg0: i32) -> (i32, i32) {
    %c0_i32 = arith.constant 0 : i32
    %c0_i32_0 = arith.constant 0 : i32
    %c0_i32_1 = arith.constant 0 : i32
    return %c0_i32, %c0_i32_0 : i32, i32
  }
  func.func @transform_4(%arg0: i32) -> (i32, i32) {
    %c0_i32 = arith.constant 0 : i32
    %c0_i32_0 = arith.constant 0 : i32
    %c0_i32_1 = arith.constant 0 : i32
    return %c0_i32, %c0_i32_0 : i32, i32
  }
  func.func @transform_5(%arg0: i32) -> (i32, i32) {
    %c0_i32 = arith.constant 0 : i32
    %c0_i32_0 = arith.constant 0 : i32
    %c0_i32_1 = arith.constant 0 : i32
    return %c0_i32, %c0_i32_0 : i32, i32
  }
  func.func @transform_6(%arg0: i32) -> (i32, i32) {
    %c0_i32 = arith.constant 0 : i32
    %c0_i32_0 = arith.constant 0 : i32
    %c0_i32_1 = arith.constant 0 : i32
    return %c0_i32, %c0_i32_0 : i32, i32
  }
  func.func @transform_7(%arg0: i32) -> (i32, i32) {
    %c0_i32 = arith.constant 0 : i32
    %c0_i32_0 = arith.constant 0 : i32
    %c0_i32_1 = arith.constant 0 : i32
    return %c0_i32, %c0_i32_0 : i32, i32
  }
  func.func @transform_8(%arg0: i32) -> (i32, i32) {
    %c0_i32 = arith.constant 0 : i32
    %c0_i32_0 = arith.constant 0 : i32
    %c0_i32_1 = arith.constant 0 : i32
    return %c0_i32, %c0_i32_0 : i32, i32
  }
  func.func @transform_9(%arg0: i32) -> (i32, i32, i32) {
    %c0_i32 = arith.constant 0 : i32
    %c0_i32_0 = arith.constant 0 : i32
    %c0_i32_1 = arith.constant 0 : i32
    return %arg0, %c0_i32, %c0_i32_0 : i32, i32, i32
  }
  func.func @transform_10(%arg0: i32) -> (i32, i32) {
    %c0_i32 = arith.constant 0 : i32
    %c0_i32_0 = arith.constant 0 : i32
    return %arg0, %c0_i32 : i32, i32
  }
}

module attributes {stable_mosaic.version = 11 : i64} {
  func.func @kernel(%arg0: i32, %arg1: i32, %arg2: memref<8x1xi32, #tpu.memory_space<vmem>>, %arg3: memref<1x8x8x64xbf16, #tpu.memory_space<vmem>>, %arg4: memref<1x8x8x64xbf16, #tpu.memory_space<vmem>>, %arg5: memref<2x16x64xf32, #tpu.memory_space<vmem>>, %arg6: memref<8x8x16xf32, #tpu.memory_space<vmem>>, %arg7: memref<8x8x16xf32, #tpu.memory_space<vmem>>, %arg8: memref<2x8x16xf32, #tpu.memory_space<vmem>>, %arg9: memref<2x8x16xf32, #tpu.memory_space<vmem>>) attributes {dimension_semantics = [#tpu.dimension_semantics<parallel>, #tpu.dimension_semantics<arbitrary>], iteration_bounds = array<i64: 1, 1>, scalar_prefetch = 0 : i64, scratch_operands = 2 : i64, tpu.core_type = #tpu.core_type<tc>, window_params = [{transform_indices = @transform_0, window_bounds = array<i64: 8, 1>}, {transform_indices = @transform_1, window_bounds = array<i64: 1, 8, 8, 64>}, {transform_indices = @transform_2, window_bounds = array<i64: 1, 8, 8, 64>}, {pipeline_mode = #tpu.pipeline_mode<synchronous>, transform_indices = @transform_3, window_bounds = array<i64: 2, 16, 64>}, {transform_indices = @transform_4, window_bounds = array<i64: 8, 8, 16>}, {transform_indices = @transform_5, window_bounds = array<i64: 8, 8, 16>}]} {
    %c0_i32 = arith.constant 0 : i32
    %0 = arith.cmpi eq, %arg1, %c0_i32 : i32
    %1 = arith.extui %0 : i1 to i32
    %c0_i32_0 = arith.constant 0 : i32
    %2 = arith.cmpi ne, %1, %c0_i32_0 : i32
    scf.if %2 {
      %cst_175 = arith.constant 0.000000e+00 : f32
      %620 = vector.broadcast %cst_175 : f32 to vector<2x8x16xf32>
      %c0_176 = arith.constant 0 : index
      %c0_177 = arith.constant 0 : index
      %c0_178 = arith.constant 0 : index
      %621 = vector.load %arg8[%c0_176, %c0_177, %c0_178] : memref<2x8x16xf32, #tpu.memory_space<vmem>>, vector<2x8x16xf32>
      tpu.vector_store %arg8[%c0_176, %c0_177, %c0_178], %620 {strides = array<i32>} : memref<2x8x16xf32, #tpu.memory_space<vmem>>, vector<2x8x16xf32>,
      %cst_179 = arith.constant 0.000000e+00 : f32
      %622 = vector.broadcast %cst_179 : f32 to vector<2x8x16xf32>
      %c0_180 = arith.constant 0 : index
      %c0_181 = arith.constant 0 : index
      %c0_182 = arith.constant 0 : index
      %623 = vector.load %arg9[%c0_180, %c0_181, %c0_182] : memref<2x8x16xf32, #tpu.memory_space<vmem>>, vector<2x8x16xf32>
      tpu.vector_store %arg9[%c0_180, %c0_181, %c0_182], %622 {strides = array<i32>} : memref<2x8x16xf32, #tpu.memory_space<vmem>>, vector<2x8x16xf32>,
    } else {
    }
    %c0 = arith.constant 0 : index
    %c0_1 = arith.constant 0 : index
    %3 = vector.load %arg2[%c0, %c0_1] : memref<8x1xi32, #tpu.memory_space<vmem>>, vector<8x1xi32>
    %c0_2 = arith.constant 0 : index
    %c0_3 = arith.constant 0 : index
    %c0_4 = arith.constant 0 : index
    %4 = vector.load %arg5[%c0_2, %c0_3, %c0_4] : memref<2x16x64xf32, #tpu.memory_space<vmem>>, vector<1x16x64xf32>
    %5 = vector.shape_cast %4 : vector<1x16x64xf32> to vector<16x64xf32>
    %c1 = arith.constant 1 : index
    %c0_5 = arith.constant 0 : index
    %c0_6 = arith.constant 0 : index
    %6 = vector.load %arg5[%c1, %c0_5, %c0_6] : memref<2x16x64xf32, #tpu.memory_space<vmem>>, vector<1x16x64xf32>
    %7 = vector.shape_cast %6 : vector<1x16x64xf32> to vector<16x64xf32>
    %c0_7 = arith.constant 0 : index
    %c0_8 = arith.constant 0 : index
    %c0_9 = arith.constant 0 : index
    %8 = vector.load %arg8[%c0_7, %c0_8, %c0_9] : memref<2x8x16xf32, #tpu.memory_space<vmem>>, vector<1x8x16xf32>
    %9 = vector.shape_cast %8 : vector<1x8x16xf32> to vector<8x16xf32>
    %c1_10 = arith.constant 1 : index
    %c0_11 = arith.constant 0 : index
    %c0_12 = arith.constant 0 : index
    %10 = vector.load %arg8[%c1_10, %c0_11, %c0_12] : memref<2x8x16xf32, #tpu.memory_space<vmem>>, vector<1x8x16xf32>
    %11 = vector.shape_cast %10 : vector<1x8x16xf32> to vector<8x16xf32>
    %c0_13 = arith.constant 0 : index
    %c0_14 = arith.constant 0 : index
    %c0_15 = arith.constant 0 : index
    %12 = vector.load %arg9[%c0_13, %c0_14, %c0_15] : memref<2x8x16xf32, #tpu.memory_space<vmem>>, vector<1x8x16xf32>
    %13 = vector.shape_cast %12 : vector<1x8x16xf32> to vector<8x16xf32>
    %c1_16 = arith.constant 1 : index
    %c0_17 = arith.constant 0 : index
    %c0_18 = arith.constant 0 : index
    %14 = vector.load %arg9[%c1_16, %c0_17, %c0_18] : memref<2x8x16xf32, #tpu.memory_space<vmem>>, vector<1x8x16xf32>
    %15 = vector.shape_cast %14 : vector<1x8x16xf32> to vector<8x16xf32>
    %c0_i32_19 = arith.constant 0 : i32
    %c8_i32 = arith.constant 8 : i32
    %16 = arith.muli %arg1, %c8_i32 : i32
    %17 = arith.addi %16, %c0_i32_19 : i32
    %c0_20 = arith.constant 0 : index
    %18 = arith.index_cast %c0_i32_19 : i32 to index
    %c0_21 = arith.constant 0 : index
    %c0_22 = arith.constant 0 : index
    %19 = vector.load %arg3[%c0_20, %18, %c0_21, %c0_22] : memref<1x8x8x64xbf16, #tpu.memory_space<vmem>>, vector<1x1x8x64xbf16>
    %20 = vector.shape_cast %19 : vector<1x1x8x64xbf16> to vector<8x64xbf16>
    %21 = arith.extf %20 : vector<8x64xbf16> to vector<8x64xf32>
    %cst = arith.constant dense<0.000000e+00> : vector<8x64xf32>
    %22 = tpu.matmul %9, %5, %cst {dimension_numbers = #tpu.dot_dimension_numbers<[1], [0], [0], [1], [0, 0, 1, 1], [], []>} : vector<8x16xf32>, vector<16x64xf32>, vector<8x64xf32> -> vector<8x64xf32>
    %23 = arith.addf %21, %22 : vector<8x64xf32>
    %24 = vector.broadcast %17 : i32 to vector<8x1xi32>
    %25 = arith.cmpi slt, %24, %3 : vector<8x1xi32>
    %26 = arith.extui %25 : vector<8x1xi1> to vector<8x1xi32>
    %27 = arith.sitofp %26 : vector<8x1xi32> to vector<8x1xf32>
    %28 = vector.extract_strided_slice %23 {offsets = [0, 0], sizes = [8, 48], strides = [1, 1]} : vector<8x64xf32> to vector<8x48xf32>
    %29 = arith.negf %28 : vector<8x48xf32>
    %30 = math.exp %29 : vector<8x48xf32>
    %cst_23 = arith.constant 1.000000e+00 : f32
    %31 = vector.broadcast %cst_23 : f32 to vector<8x48xf32>
    %32 = arith.addf %31, %30 : vector<8x48xf32>
    %33 = arith.divf %31, %32 : vector<8x48xf32>
    %34 = vector.extract_strided_slice %23 {offsets = [0, 48], sizes = [8, 16], strides = [1, 1]} : vector<8x64xf32> to vector<8x16xf32>
    %35 = math.tanh %34 : vector<8x16xf32>
    %36 = vector.extract_strided_slice %33 {offsets = [0, 0], sizes = [8, 16], strides = [1, 1]} : vector<8x48xf32> to vector<8x16xf32>
    %37 = vector.extract_strided_slice %33 {offsets = [0, 16], sizes = [8, 16], strides = [1, 1]} : vector<8x48xf32> to vector<8x16xf32>
    %38 = vector.extract_strided_slice %33 {offsets = [0, 32], sizes = [8, 16], strides = [1, 1]} : vector<8x48xf32> to vector<8x16xf32>
    %39 = arith.mulf %37, %13 : vector<8x16xf32>
    %40 = arith.mulf %36, %35 : vector<8x16xf32>
    %41 = arith.addf %39, %40 : vector<8x16xf32>
    %42 = vector.broadcast %27 : vector<8x1xf32> to vector<8x16xf32>
    %43 = arith.mulf %41, %42 : vector<8x16xf32>
    %44 = math.tanh %43 : vector<8x16xf32>
    %45 = arith.mulf %38, %44 : vector<8x16xf32>
    %46 = vector.broadcast %27 : vector<8x1xf32> to vector<8x16xf32>
    %47 = arith.mulf %45, %46 : vector<8x16xf32>
    %48 = arith.index_cast %c0_i32_19 : i32 to index
    %c0_24 = arith.constant 0 : index
    %c0_25 = arith.constant 0 : index
    %49 = vector.load %arg6[%48, %c0_24, %c0_25] : memref<8x8x16xf32, #tpu.memory_space<vmem>>, vector<1x8x16xf32>
    %50 = vector.shape_cast %49 : vector<1x8x16xf32> to vector<8x16xf32>
    %51 = vector.shape_cast %47 : vector<8x16xf32> to vector<1x8x16xf32>
    tpu.vector_store %arg6[%48, %c0_24, %c0_25], %51 {strides = array<i32>} : memref<8x8x16xf32, #tpu.memory_space<vmem>>, vector<1x8x16xf32>,
    %c7_i32 = arith.constant 7 : i32
    %52 = arith.subi %c7_i32, %c0_i32_19 : i32
    %c0_i32_26 = arith.constant 0 : i32
    %53 = arith.subi %c0_i32_26, %arg1 : i32
    %c8_i32_27 = arith.constant 8 : i32
    %54 = arith.muli %53, %c8_i32_27 : i32
    %55 = arith.addi %54, %52 : i32
    %c0_28 = arith.constant 0 : index
    %56 = arith.index_cast %52 : i32 to index
    %c0_29 = arith.constant 0 : index
    %c0_30 = arith.constant 0 : index
    %57 = vector.load %arg4[%c0_28, %56, %c0_29, %c0_30] : memref<1x8x8x64xbf16, #tpu.memory_space<vmem>>, vector<1x1x8x64xbf16>
    %58 = vector.shape_cast %57 : vector<1x1x8x64xbf16> to vector<8x64xbf16>
    %59 = arith.extf %58 : vector<8x64xbf16> to vector<8x64xf32>
    %cst_31 = arith.constant dense<0.000000e+00> : vector<8x64xf32>
    %60 = tpu.matmul %11, %7, %cst_31 {dimension_numbers = #tpu.dot_dimension_numbers<[1], [0], [0], [1], [0, 0, 1, 1], [], []>} : vector<8x16xf32>, vector<16x64xf32>, vector<8x64xf32> -> vector<8x64xf32>
    %61 = arith.addf %59, %60 : vector<8x64xf32>
    %62 = vector.broadcast %55 : i32 to vector<8x1xi32>
    %63 = arith.cmpi slt, %62, %3 : vector<8x1xi32>
    %64 = arith.extui %63 : vector<8x1xi1> to vector<8x1xi32>
    %65 = arith.sitofp %64 : vector<8x1xi32> to vector<8x1xf32>
    %66 = vector.extract_strided_slice %61 {offsets = [0, 0], sizes = [8, 48], strides = [1, 1]} : vector<8x64xf32> to vector<8x48xf32>
    %67 = arith.negf %66 : vector<8x48xf32>
    %68 = math.exp %67 : vector<8x48xf32>
    %cst_32 = arith.constant 1.000000e+00 : f32
    %69 = vector.broadcast %cst_32 : f32 to vector<8x48xf32>
    %70 = arith.addf %69, %68 : vector<8x48xf32>
    %71 = arith.divf %69, %70 : vector<8x48xf32>
    %72 = vector.extract_strided_slice %61 {offsets = [0, 48], sizes = [8, 16], strides = [1, 1]} : vector<8x64xf32> to vector<8x16xf32>
    %73 = math.tanh %72 : vector<8x16xf32>
    %74 = vector.extract_strided_slice %71 {offsets = [0, 0], sizes = [8, 16], strides = [1, 1]} : vector<8x48xf32> to vector<8x16xf32>
    %75 = vector.extract_strided_slice %71 {offsets = [0, 16], sizes = [8, 16], strides = [1, 1]} : vector<8x48xf32> to vector<8x16xf32>
    %76 = vector.extract_strided_slice %71 {offsets = [0, 32], sizes = [8, 16], strides = [1, 1]} : vector<8x48xf32> to vector<8x16xf32>
    %77 = arith.mulf %75, %15 : vector<8x16xf32>
    %78 = arith.mulf %74, %73 : vector<8x16xf32>
    %79 = arith.addf %77, %78 : vector<8x16xf32>
    %80 = vector.broadcast %65 : vector<8x1xf32> to vector<8x16xf32>
    %81 = arith.mulf %79, %80 : vector<8x16xf32>
    %82 = math.tanh %81 : vector<8x16xf32>
    %83 = arith.mulf %76, %82 : vector<8x16xf32>
    %84 = vector.broadcast %65 : vector<8x1xf32> to vector<8x16xf32>
    %85 = arith.mulf %83, %84 : vector<8x16xf32>
    %86 = arith.index_cast %52 : i32 to index
    %c0_33 = arith.constant 0 : index
    %c0_34 = arith.constant 0 : index
    %87 = vector.load %arg7[%86, %c0_33, %c0_34] : memref<8x8x16xf32, #tpu.memory_space<vmem>>, vector<1x8x16xf32>
    %88 = vector.shape_cast %87 : vector<1x8x16xf32> to vector<8x16xf32>
    %89 = vector.shape_cast %85 : vector<8x16xf32> to vector<1x8x16xf32>
    tpu.vector_store %arg7[%86, %c0_33, %c0_34], %89 {strides = array<i32>} : memref<8x8x16xf32, #tpu.memory_space<vmem>>, vector<1x8x16xf32>,
    %c1_i32 = arith.constant 1 : i32
    %c8_i32_35 = arith.constant 8 : i32
    %90 = arith.muli %arg1, %c8_i32_35 : i32
    %91 = arith.addi %90, %c1_i32 : i32
    %c0_36 = arith.constant 0 : index
    %92 = arith.index_cast %c1_i32 : i32 to index
    %c0_37 = arith.constant 0 : index
    %c0_38 = arith.constant 0 : index
    %93 = vector.load %arg3[%c0_36, %92, %c0_37, %c0_38] : memref<1x8x8x64xbf16, #tpu.memory_space<vmem>>, vector<1x1x8x64xbf16>
    %94 = vector.shape_cast %93 : vector<1x1x8x64xbf16> to vector<8x64xbf16>
    %95 = arith.extf %94 : vector<8x64xbf16> to vector<8x64xf32>
    %cst_39 = arith.constant dense<0.000000e+00> : vector<8x64xf32>
    %96 = tpu.matmul %47, %5, %cst_39 {dimension_numbers = #tpu.dot_dimension_numbers<[1], [0], [0], [1], [0, 0, 1, 1], [], []>} : vector<8x16xf32>, vector<16x64xf32>, vector<8x64xf32> -> vector<8x64xf32>
    %97 = arith.addf %95, %96 : vector<8x64xf32>
    %98 = vector.broadcast %91 : i32 to vector<8x1xi32>
    %99 = arith.cmpi slt, %98, %3 : vector<8x1xi32>
    %100 = arith.extui %99 : vector<8x1xi1> to vector<8x1xi32>
    %101 = arith.sitofp %100 : vector<8x1xi32> to vector<8x1xf32>
    %102 = vector.extract_strided_slice %97 {offsets = [0, 0], sizes = [8, 48], strides = [1, 1]} : vector<8x64xf32> to vector<8x48xf32>
    %103 = arith.negf %102 : vector<8x48xf32>
    %104 = math.exp %103 : vector<8x48xf32>
    %cst_40 = arith.constant 1.000000e+00 : f32
    %105 = vector.broadcast %cst_40 : f32 to vector<8x48xf32>
    %106 = arith.addf %105, %104 : vector<8x48xf32>
    %107 = arith.divf %105, %106 : vector<8x48xf32>
    %108 = vector.extract_strided_slice %97 {offsets = [0, 48], sizes = [8, 16], strides = [1, 1]} : vector<8x64xf32> to vector<8x16xf32>
    %109 = math.tanh %108 : vector<8x16xf32>
    %110 = vector.extract_strided_slice %107 {offsets = [0, 0], sizes = [8, 16], strides = [1, 1]} : vector<8x48xf32> to vector<8x16xf32>
    %111 = vector.extract_strided_slice %107 {offsets = [0, 16], sizes = [8, 16], strides = [1, 1]} : vector<8x48xf32> to vector<8x16xf32>
    %112 = vector.extract_strided_slice %107 {offsets = [0, 32], sizes = [8, 16], strides = [1, 1]} : vector<8x48xf32> to vector<8x16xf32>
    %113 = arith.mulf %111, %43 : vector<8x16xf32>
    %114 = arith.mulf %110, %109 : vector<8x16xf32>
    %115 = arith.addf %113, %114 : vector<8x16xf32>
    %116 = vector.broadcast %101 : vector<8x1xf32> to vector<8x16xf32>
    %117 = arith.mulf %115, %116 : vector<8x16xf32>
    %118 = math.tanh %117 : vector<8x16xf32>
    %119 = arith.mulf %112, %118 : vector<8x16xf32>
    %120 = vector.broadcast %101 : vector<8x1xf32> to vector<8x16xf32>
    %121 = arith.mulf %119, %120 : vector<8x16xf32>
    %122 = arith.index_cast %c1_i32 : i32 to index
    %c0_41 = arith.constant 0 : index
    %c0_42 = arith.constant 0 : index
    %123 = vector.load %arg6[%122, %c0_41, %c0_42] : memref<8x8x16xf32, #tpu.memory_space<vmem>>, vector<1x8x16xf32>
    %124 = vector.shape_cast %123 : vector<1x8x16xf32> to vector<8x16xf32>
    %125 = vector.shape_cast %121 : vector<8x16xf32> to vector<1x8x16xf32>
    tpu.vector_store %arg6[%122, %c0_41, %c0_42], %125 {strides = array<i32>} : memref<8x8x16xf32, #tpu.memory_space<vmem>>, vector<1x8x16xf32>,
    %c7_i32_43 = arith.constant 7 : i32
    %126 = arith.subi %c7_i32_43, %c1_i32 : i32
    %c0_i32_44 = arith.constant 0 : i32
    %127 = arith.subi %c0_i32_44, %arg1 : i32
    %c8_i32_45 = arith.constant 8 : i32
    %128 = arith.muli %127, %c8_i32_45 : i32
    %129 = arith.addi %128, %126 : i32
    %c0_46 = arith.constant 0 : index
    %130 = arith.index_cast %126 : i32 to index
    %c0_47 = arith.constant 0 : index
    %c0_48 = arith.constant 0 : index
    %131 = vector.load %arg4[%c0_46, %130, %c0_47, %c0_48] : memref<1x8x8x64xbf16, #tpu.memory_space<vmem>>, vector<1x1x8x64xbf16>
    %132 = vector.shape_cast %131 : vector<1x1x8x64xbf16> to vector<8x64xbf16>
    %133 = arith.extf %132 : vector<8x64xbf16> to vector<8x64xf32>
    %cst_49 = arith.constant dense<0.000000e+00> : vector<8x64xf32>
    %134 = tpu.matmul %85, %7, %cst_49 {dimension_numbers = #tpu.dot_dimension_numbers<[1], [0], [0], [1], [0, 0, 1, 1], [], []>} : vector<8x16xf32>, vector<16x64xf32>, vector<8x64xf32> -> vector<8x64xf32>
    %135 = arith.addf %133, %134 : vector<8x64xf32>
    %136 = vector.broadcast %129 : i32 to vector<8x1xi32>
    %137 = arith.cmpi slt, %136, %3 : vector<8x1xi32>
    %138 = arith.extui %137 : vector<8x1xi1> to vector<8x1xi32>
    %139 = arith.sitofp %138 : vector<8x1xi32> to vector<8x1xf32>
    %140 = vector.extract_strided_slice %135 {offsets = [0, 0], sizes = [8, 48], strides = [1, 1]} : vector<8x64xf32> to vector<8x48xf32>
    %141 = arith.negf %140 : vector<8x48xf32>
    %142 = math.exp %141 : vector<8x48xf32>
    %cst_50 = arith.constant 1.000000e+00 : f32
    %143 = vector.broadcast %cst_50 : f32 to vector<8x48xf32>
    %144 = arith.addf %143, %142 : vector<8x48xf32>
    %145 = arith.divf %143, %144 : vector<8x48xf32>
    %146 = vector.extract_strided_slice %135 {offsets = [0, 48], sizes = [8, 16], strides = [1, 1]} : vector<8x64xf32> to vector<8x16xf32>
    %147 = math.tanh %146 : vector<8x16xf32>
    %148 = vector.extract_strided_slice %145 {offsets = [0, 0], sizes = [8, 16], strides = [1, 1]} : vector<8x48xf32> to vector<8x16xf32>
    %149 = vector.extract_strided_slice %145 {offsets = [0, 16], sizes = [8, 16], strides = [1, 1]} : vector<8x48xf32> to vector<8x16xf32>
    %150 = vector.extract_strided_slice %145 {offsets = [0, 32], sizes = [8, 16], strides = [1, 1]} : vector<8x48xf32> to vector<8x16xf32>
    %151 = arith.mulf %149, %81 : vector<8x16xf32>
    %152 = arith.mulf %148, %147 : vector<8x16xf32>
    %153 = arith.addf %151, %152 : vector<8x16xf32>
    %154 = vector.broadcast %139 : vector<8x1xf32> to vector<8x16xf32>
    %155 = arith.mulf %153, %154 : vector<8x16xf32>
    %156 = math.tanh %155 : vector<8x16xf32>
    %157 = arith.mulf %150, %156 : vector<8x16xf32>
    %158 = vector.broadcast %139 : vector<8x1xf32> to vector<8x16xf32>
    %159 = arith.mulf %157, %158 : vector<8x16xf32>
    %160 = arith.index_cast %126 : i32 to index
    %c0_51 = arith.constant 0 : index
    %c0_52 = arith.constant 0 : index
    %161 = vector.load %arg7[%160, %c0_51, %c0_52] : memref<8x8x16xf32, #tpu.memory_space<vmem>>, vector<1x8x16xf32>
    %162 = vector.shape_cast %161 : vector<1x8x16xf32> to vector<8x16xf32>
    %163 = vector.shape_cast %159 : vector<8x16xf32> to vector<1x8x16xf32>
    tpu.vector_store %arg7[%160, %c0_51, %c0_52], %163 {strides = array<i32>} : memref<8x8x16xf32, #tpu.memory_space<vmem>>, vector<1x8x16xf32>,
    %c2_i32 = arith.constant 2 : i32
    %c8_i32_53 = arith.constant 8 : i32
    %164 = arith.muli %arg1, %c8_i32_53 : i32
    %165 = arith.addi %164, %c2_i32 : i32
    %c0_54 = arith.constant 0 : index
    %166 = arith.index_cast %c2_i32 : i32 to index
    %c0_55 = arith.constant 0 : index
    %c0_56 = arith.constant 0 : index
    %167 = vector.load %arg3[%c0_54, %166, %c0_55, %c0_56] : memref<1x8x8x64xbf16, #tpu.memory_space<vmem>>, vector<1x1x8x64xbf16>
    %168 = vector.shape_cast %167 : vector<1x1x8x64xbf16> to vector<8x64xbf16>
    %169 = arith.extf %168 : vector<8x64xbf16> to vector<8x64xf32>
    %cst_57 = arith.constant dense<0.000000e+00> : vector<8x64xf32>
    %170 = tpu.matmul %121, %5, %cst_57 {dimension_numbers = #tpu.dot_dimension_numbers<[1], [0], [0], [1], [0, 0, 1, 1], [], []>} : vector<8x16xf32>, vector<16x64xf32>, vector<8x64xf32> -> vector<8x64xf32>
    %171 = arith.addf %169, %170 : vector<8x64xf32>
    %172 = vector.broadcast %165 : i32 to vector<8x1xi32>
    %173 = arith.cmpi slt, %172, %3 : vector<8x1xi32>
    %174 = arith.extui %173 : vector<8x1xi1> to vector<8x1xi32>
    %175 = arith.sitofp %174 : vector<8x1xi32> to vector<8x1xf32>
    %176 = vector.extract_strided_slice %171 {offsets = [0, 0], sizes = [8, 48], strides = [1, 1]} : vector<8x64xf32> to vector<8x48xf32>
    %177 = arith.negf %176 : vector<8x48xf32>
    %178 = math.exp %177 : vector<8x48xf32>
    %cst_58 = arith.constant 1.000000e+00 : f32
    %179 = vector.broadcast %cst_58 : f32 to vector<8x48xf32>
    %180 = arith.addf %179, %178 : vector<8x48xf32>
    %181 = arith.divf %179, %180 : vector<8x48xf32>
    %182 = vector.extract_strided_slice %171 {offsets = [0, 48], sizes = [8, 16], strides = [1, 1]} : vector<8x64xf32> to vector<8x16xf32>
    %183 = math.tanh %182 : vector<8x16xf32>
    %184 = vector.extract_strided_slice %181 {offsets = [0, 0], sizes = [8, 16], strides = [1, 1]} : vector<8x48xf32> to vector<8x16xf32>
    %185 = vector.extract_strided_slice %181 {offsets = [0, 16], sizes = [8, 16], strides = [1, 1]} : vector<8x48xf32> to vector<8x16xf32>
    %186 = vector.extract_strided_slice %181 {offsets = [0, 32], sizes = [8, 16], strides = [1, 1]} : vector<8x48xf32> to vector<8x16xf32>
    %187 = arith.mulf %185, %117 : vector<8x16xf32>
    %188 = arith.mulf %184, %183 : vector<8x16xf32>
    %189 = arith.addf %187, %188 : vector<8x16xf32>
    %190 = vector.broadcast %175 : vector<8x1xf32> to vector<8x16xf32>
    %191 = arith.mulf %189, %190 : vector<8x16xf32>
    %192 = math.tanh %191 : vector<8x16xf32>
    %193 = arith.mulf %186, %192 : vector<8x16xf32>
    %194 = vector.broadcast %175 : vector<8x1xf32> to vector<8x16xf32>
    %195 = arith.mulf %193, %194 : vector<8x16xf32>
    %196 = arith.index_cast %c2_i32 : i32 to index
    %c0_59 = arith.constant 0 : index
    %c0_60 = arith.constant 0 : index
    %197 = vector.load %arg6[%196, %c0_59, %c0_60] : memref<8x8x16xf32, #tpu.memory_space<vmem>>, vector<1x8x16xf32>
    %198 = vector.shape_cast %197 : vector<1x8x16xf32> to vector<8x16xf32>
    %199 = vector.shape_cast %195 : vector<8x16xf32> to vector<1x8x16xf32>
    tpu.vector_store %arg6[%196, %c0_59, %c0_60], %199 {strides = array<i32>} : memref<8x8x16xf32, #tpu.memory_space<vmem>>, vector<1x8x16xf32>,
    %c7_i32_61 = arith.constant 7 : i32
    %200 = arith.subi %c7_i32_61, %c2_i32 : i32
    %c0_i32_62 = arith.constant 0 : i32
    %201 = arith.subi %c0_i32_62, %arg1 : i32
    %c8_i32_63 = arith.constant 8 : i32
    %202 = arith.muli %201, %c8_i32_63 : i32
    %203 = arith.addi %202, %200 : i32
    %c0_64 = arith.constant 0 : index
    %204 = arith.index_cast %200 : i32 to index
    %c0_65 = arith.constant 0 : index
    %c0_66 = arith.constant 0 : index
    %205 = vector.load %arg4[%c0_64, %204, %c0_65, %c0_66] : memref<1x8x8x64xbf16, #tpu.memory_space<vmem>>, vector<1x1x8x64xbf16>
    %206 = vector.shape_cast %205 : vector<1x1x8x64xbf16> to vector<8x64xbf16>
    %207 = arith.extf %206 : vector<8x64xbf16> to vector<8x64xf32>
    %cst_67 = arith.constant dense<0.000000e+00> : vector<8x64xf32>
    %208 = tpu.matmul %159, %7, %cst_67 {dimension_numbers = #tpu.dot_dimension_numbers<[1], [0], [0], [1], [0, 0, 1, 1], [], []>} : vector<8x16xf32>, vector<16x64xf32>, vector<8x64xf32> -> vector<8x64xf32>
    %209 = arith.addf %207, %208 : vector<8x64xf32>
    %210 = vector.broadcast %203 : i32 to vector<8x1xi32>
    %211 = arith.cmpi slt, %210, %3 : vector<8x1xi32>
    %212 = arith.extui %211 : vector<8x1xi1> to vector<8x1xi32>
    %213 = arith.sitofp %212 : vector<8x1xi32> to vector<8x1xf32>
    %214 = vector.extract_strided_slice %209 {offsets = [0, 0], sizes = [8, 48], strides = [1, 1]} : vector<8x64xf32> to vector<8x48xf32>
    %215 = arith.negf %214 : vector<8x48xf32>
    %216 = math.exp %215 : vector<8x48xf32>
    %cst_68 = arith.constant 1.000000e+00 : f32
    %217 = vector.broadcast %cst_68 : f32 to vector<8x48xf32>
    %218 = arith.addf %217, %216 : vector<8x48xf32>
    %219 = arith.divf %217, %218 : vector<8x48xf32>
    %220 = vector.extract_strided_slice %209 {offsets = [0, 48], sizes = [8, 16], strides = [1, 1]} : vector<8x64xf32> to vector<8x16xf32>
    %221 = math.tanh %220 : vector<8x16xf32>
    %222 = vector.extract_strided_slice %219 {offsets = [0, 0], sizes = [8, 16], strides = [1, 1]} : vector<8x48xf32> to vector<8x16xf32>
    %223 = vector.extract_strided_slice %219 {offsets = [0, 16], sizes = [8, 16], strides = [1, 1]} : vector<8x48xf32> to vector<8x16xf32>
    %224 = vector.extract_strided_slice %219 {offsets = [0, 32], sizes = [8, 16], strides = [1, 1]} : vector<8x48xf32> to vector<8x16xf32>
    %225 = arith.mulf %223, %155 : vector<8x16xf32>
    %226 = arith.mulf %222, %221 : vector<8x16xf32>
    %227 = arith.addf %225, %226 : vector<8x16xf32>
    %228 = vector.broadcast %213 : vector<8x1xf32> to vector<8x16xf32>
    %229 = arith.mulf %227, %228 : vector<8x16xf32>
    %230 = math.tanh %229 : vector<8x16xf32>
    %231 = arith.mulf %224, %230 : vector<8x16xf32>
    %232 = vector.broadcast %213 : vector<8x1xf32> to vector<8x16xf32>
    %233 = arith.mulf %231, %232 : vector<8x16xf32>
    %234 = arith.index_cast %200 : i32 to index
    %c0_69 = arith.constant 0 : index
    %c0_70 = arith.constant 0 : index
    %235 = vector.load %arg7[%234, %c0_69, %c0_70] : memref<8x8x16xf32, #tpu.memory_space<vmem>>, vector<1x8x16xf32>
    %236 = vector.shape_cast %235 : vector<1x8x16xf32> to vector<8x16xf32>
    %237 = vector.shape_cast %233 : vector<8x16xf32> to vector<1x8x16xf32>
    tpu.vector_store %arg7[%234, %c0_69, %c0_70], %237 {strides = array<i32>} : memref<8x8x16xf32, #tpu.memory_space<vmem>>, vector<1x8x16xf32>,
    %c3_i32 = arith.constant 3 : i32
    %c8_i32_71 = arith.constant 8 : i32
    %238 = arith.muli %arg1, %c8_i32_71 : i32
    %239 = arith.addi %238, %c3_i32 : i32
    %c0_72 = arith.constant 0 : index
    %240 = arith.index_cast %c3_i32 : i32 to index
    %c0_73 = arith.constant 0 : index
    %c0_74 = arith.constant 0 : index
    %241 = vector.load %arg3[%c0_72, %240, %c0_73, %c0_74] : memref<1x8x8x64xbf16, #tpu.memory_space<vmem>>, vector<1x1x8x64xbf16>
    %242 = vector.shape_cast %241 : vector<1x1x8x64xbf16> to vector<8x64xbf16>
    %243 = arith.extf %242 : vector<8x64xbf16> to vector<8x64xf32>
    %cst_75 = arith.constant dense<0.000000e+00> : vector<8x64xf32>
    %244 = tpu.matmul %195, %5, %cst_75 {dimension_numbers = #tpu.dot_dimension_numbers<[1], [0], [0], [1], [0, 0, 1, 1], [], []>} : vector<8x16xf32>, vector<16x64xf32>, vector<8x64xf32> -> vector<8x64xf32>
    %245 = arith.addf %243, %244 : vector<8x64xf32>
    %246 = vector.broadcast %239 : i32 to vector<8x1xi32>
    %247 = arith.cmpi slt, %246, %3 : vector<8x1xi32>
    %248 = arith.extui %247 : vector<8x1xi1> to vector<8x1xi32>
    %249 = arith.sitofp %248 : vector<8x1xi32> to vector<8x1xf32>
    %250 = vector.extract_strided_slice %245 {offsets = [0, 0], sizes = [8, 48], strides = [1, 1]} : vector<8x64xf32> to vector<8x48xf32>
    %251 = arith.negf %250 : vector<8x48xf32>
    %252 = math.exp %251 : vector<8x48xf32>
    %cst_76 = arith.constant 1.000000e+00 : f32
    %253 = vector.broadcast %cst_76 : f32 to vector<8x48xf32>
    %254 = arith.addf %253, %252 : vector<8x48xf32>
    %255 = arith.divf %253, %254 : vector<8x48xf32>
    %256 = vector.extract_strided_slice %245 {offsets = [0, 48], sizes = [8, 16], strides = [1, 1]} : vector<8x64xf32> to vector<8x16xf32>
    %257 = math.tanh %256 : vector<8x16xf32>
    %258 = vector.extract_strided_slice %255 {offsets = [0, 0], sizes = [8, 16], strides = [1, 1]} : vector<8x48xf32> to vector<8x16xf32>
    %259 = vector.extract_strided_slice %255 {offsets = [0, 16], sizes = [8, 16], strides = [1, 1]} : vector<8x48xf32> to vector<8x16xf32>
    %260 = vector.extract_strided_slice %255 {offsets = [0, 32], sizes = [8, 16], strides = [1, 1]} : vector<8x48xf32> to vector<8x16xf32>
    %261 = arith.mulf %259, %191 : vector<8x16xf32>
    %262 = arith.mulf %258, %257 : vector<8x16xf32>
    %263 = arith.addf %261, %262 : vector<8x16xf32>
    %264 = vector.broadcast %249 : vector<8x1xf32> to vector<8x16xf32>
    %265 = arith.mulf %263, %264 : vector<8x16xf32>
    %266 = math.tanh %265 : vector<8x16xf32>
    %267 = arith.mulf %260, %266 : vector<8x16xf32>
    %268 = vector.broadcast %249 : vector<8x1xf32> to vector<8x16xf32>
    %269 = arith.mulf %267, %268 : vector<8x16xf32>
    %270 = arith.index_cast %c3_i32 : i32 to index
    %c0_77 = arith.constant 0 : index
    %c0_78 = arith.constant 0 : index
    %271 = vector.load %arg6[%270, %c0_77, %c0_78] : memref<8x8x16xf32, #tpu.memory_space<vmem>>, vector<1x8x16xf32>
    %272 = vector.shape_cast %271 : vector<1x8x16xf32> to vector<8x16xf32>
    %273 = vector.shape_cast %269 : vector<8x16xf32> to vector<1x8x16xf32>
    tpu.vector_store %arg6[%270, %c0_77, %c0_78], %273 {strides = array<i32>} : memref<8x8x16xf32, #tpu.memory_space<vmem>>, vector<1x8x16xf32>,
    %c7_i32_79 = arith.constant 7 : i32
    %274 = arith.subi %c7_i32_79, %c3_i32 : i32
    %c0_i32_80 = arith.constant 0 : i32
    %275 = arith.subi %c0_i32_80, %arg1 : i32
    %c8_i32_81 = arith.constant 8 : i32
    %276 = arith.muli %275, %c8_i32_81 : i32
    %277 = arith.addi %276, %274 : i32
    %c0_82 = arith.constant 0 : index
    %278 = arith.index_cast %274 : i32 to index
    %c0_83 = arith.constant 0 : index
    %c0_84 = arith.constant 0 : index
    %279 = vector.load %arg4[%c0_82, %278, %c0_83, %c0_84] : memref<1x8x8x64xbf16, #tpu.memory_space<vmem>>, vector<1x1x8x64xbf16>
    %280 = vector.shape_cast %279 : vector<1x1x8x64xbf16> to vector<8x64xbf16>
    %281 = arith.extf %280 : vector<8x64xbf16> to vector<8x64xf32>
    %cst_85 = arith.constant dense<0.000000e+00> : vector<8x64xf32>
    %282 = tpu.matmul %233, %7, %cst_85 {dimension_numbers = #tpu.dot_dimension_numbers<[1], [0], [0], [1], [0, 0, 1, 1], [], []>} : vector<8x16xf32>, vector<16x64xf32>, vector<8x64xf32> -> vector<8x64xf32>
    %283 = arith.addf %281, %282 : vector<8x64xf32>
    %284 = vector.broadcast %277 : i32 to vector<8x1xi32>
    %285 = arith.cmpi slt, %284, %3 : vector<8x1xi32>
    %286 = arith.extui %285 : vector<8x1xi1> to vector<8x1xi32>
    %287 = arith.sitofp %286 : vector<8x1xi32> to vector<8x1xf32>
    %288 = vector.extract_strided_slice %283 {offsets = [0, 0], sizes = [8, 48], strides = [1, 1]} : vector<8x64xf32> to vector<8x48xf32>
    %289 = arith.negf %288 : vector<8x48xf32>
    %290 = math.exp %289 : vector<8x48xf32>
    %cst_86 = arith.constant 1.000000e+00 : f32
    %291 = vector.broadcast %cst_86 : f32 to vector<8x48xf32>
    %292 = arith.addf %291, %290 : vector<8x48xf32>
    %293 = arith.divf %291, %292 : vector<8x48xf32>
    %294 = vector.extract_strided_slice %283 {offsets = [0, 48], sizes = [8, 16], strides = [1, 1]} : vector<8x64xf32> to vector<8x16xf32>
    %295 = math.tanh %294 : vector<8x16xf32>
    %296 = vector.extract_strided_slice %293 {offsets = [0, 0], sizes = [8, 16], strides = [1, 1]} : vector<8x48xf32> to vector<8x16xf32>
    %297 = vector.extract_strided_slice %293 {offsets = [0, 16], sizes = [8, 16], strides = [1, 1]} : vector<8x48xf32> to vector<8x16xf32>
    %298 = vector.extract_strided_slice %293 {offsets = [0, 32], sizes = [8, 16], strides = [1, 1]} : vector<8x48xf32> to vector<8x16xf32>
    %299 = arith.mulf %297, %229 : vector<8x16xf32>
    %300 = arith.mulf %296, %295 : vector<8x16xf32>
    %301 = arith.addf %299, %300 : vector<8x16xf32>
    %302 = vector.broadcast %287 : vector<8x1xf32> to vector<8x16xf32>
    %303 = arith.mulf %301, %302 : vector<8x16xf32>
    %304 = math.tanh %303 : vector<8x16xf32>
    %305 = arith.mulf %298, %304 : vector<8x16xf32>
    %306 = vector.broadcast %287 : vector<8x1xf32> to vector<8x16xf32>
    %307 = arith.mulf %305, %306 : vector<8x16xf32>
    %308 = arith.index_cast %274 : i32 to index
    %c0_87 = arith.constant 0 : index
    %c0_88 = arith.constant 0 : index
    %309 = vector.load %arg7[%308, %c0_87, %c0_88] : memref<8x8x16xf32, #tpu.memory_space<vmem>>, vector<1x8x16xf32>
    %310 = vector.shape_cast %309 : vector<1x8x16xf32> to vector<8x16xf32>
    %311 = vector.shape_cast %307 : vector<8x16xf32> to vector<1x8x16xf32>
    tpu.vector_store %arg7[%308, %c0_87, %c0_88], %311 {strides = array<i32>} : memref<8x8x16xf32, #tpu.memory_space<vmem>>, vector<1x8x16xf32>,
    %c4_i32 = arith.constant 4 : i32
    %c8_i32_89 = arith.constant 8 : i32
    %312 = arith.muli %arg1, %c8_i32_89 : i32
    %313 = arith.addi %312, %c4_i32 : i32
    %c0_90 = arith.constant 0 : index
    %314 = arith.index_cast %c4_i32 : i32 to index
    %c0_91 = arith.constant 0 : index
    %c0_92 = arith.constant 0 : index
    %315 = vector.load %arg3[%c0_90, %314, %c0_91, %c0_92] : memref<1x8x8x64xbf16, #tpu.memory_space<vmem>>, vector<1x1x8x64xbf16>
    %316 = vector.shape_cast %315 : vector<1x1x8x64xbf16> to vector<8x64xbf16>
    %317 = arith.extf %316 : vector<8x64xbf16> to vector<8x64xf32>
    %cst_93 = arith.constant dense<0.000000e+00> : vector<8x64xf32>
    %318 = tpu.matmul %269, %5, %cst_93 {dimension_numbers = #tpu.dot_dimension_numbers<[1], [0], [0], [1], [0, 0, 1, 1], [], []>} : vector<8x16xf32>, vector<16x64xf32>, vector<8x64xf32> -> vector<8x64xf32>
    %319 = arith.addf %317, %318 : vector<8x64xf32>
    %320 = vector.broadcast %313 : i32 to vector<8x1xi32>
    %321 = arith.cmpi slt, %320, %3 : vector<8x1xi32>
    %322 = arith.extui %321 : vector<8x1xi1> to vector<8x1xi32>
    %323 = arith.sitofp %322 : vector<8x1xi32> to vector<8x1xf32>
    %324 = vector.extract_strided_slice %319 {offsets = [0, 0], sizes = [8, 48], strides = [1, 1]} : vector<8x64xf32> to vector<8x48xf32>
    %325 = arith.negf %324 : vector<8x48xf32>
    %326 = math.exp %325 : vector<8x48xf32>
    %cst_94 = arith.constant 1.000000e+00 : f32
    %327 = vector.broadcast %cst_94 : f32 to vector<8x48xf32>
    %328 = arith.addf %327, %326 : vector<8x48xf32>
    %329 = arith.divf %327, %328 : vector<8x48xf32>
    %330 = vector.extract_strided_slice %319 {offsets = [0, 48], sizes = [8, 16], strides = [1, 1]} : vector<8x64xf32> to vector<8x16xf32>
    %331 = math.tanh %330 : vector<8x16xf32>
    %332 = vector.extract_strided_slice %329 {offsets = [0, 0], sizes = [8, 16], strides = [1, 1]} : vector<8x48xf32> to vector<8x16xf32>
    %333 = vector.extract_strided_slice %329 {offsets = [0, 16], sizes = [8, 16], strides = [1, 1]} : vector<8x48xf32> to vector<8x16xf32>
    %334 = vector.extract_strided_slice %329 {offsets = [0, 32], sizes = [8, 16], strides = [1, 1]} : vector<8x48xf32> to vector<8x16xf32>
    %335 = arith.mulf %333, %265 : vector<8x16xf32>
    %336 = arith.mulf %332, %331 : vector<8x16xf32>
    %337 = arith.addf %335, %336 : vector<8x16xf32>
    %338 = vector.broadcast %323 : vector<8x1xf32> to vector<8x16xf32>
    %339 = arith.mulf %337, %338 : vector<8x16xf32>
    %340 = math.tanh %339 : vector<8x16xf32>
    %341 = arith.mulf %334, %340 : vector<8x16xf32>
    %342 = vector.broadcast %323 : vector<8x1xf32> to vector<8x16xf32>
    %343 = arith.mulf %341, %342 : vector<8x16xf32>
    %344 = arith.index_cast %c4_i32 : i32 to index
    %c0_95 = arith.constant 0 : index
    %c0_96 = arith.constant 0 : index
    %345 = vector.load %arg6[%344, %c0_95, %c0_96] : memref<8x8x16xf32, #tpu.memory_space<vmem>>, vector<1x8x16xf32>
    %346 = vector.shape_cast %345 : vector<1x8x16xf32> to vector<8x16xf32>
    %347 = vector.shape_cast %343 : vector<8x16xf32> to vector<1x8x16xf32>
    tpu.vector_store %arg6[%344, %c0_95, %c0_96], %347 {strides = array<i32>} : memref<8x8x16xf32, #tpu.memory_space<vmem>>, vector<1x8x16xf32>,
    %c7_i32_97 = arith.constant 7 : i32
    %348 = arith.subi %c7_i32_97, %c4_i32 : i32
    %c0_i32_98 = arith.constant 0 : i32
    %349 = arith.subi %c0_i32_98, %arg1 : i32
    %c8_i32_99 = arith.constant 8 : i32
    %350 = arith.muli %349, %c8_i32_99 : i32
    %351 = arith.addi %350, %348 : i32
    %c0_100 = arith.constant 0 : index
    %352 = arith.index_cast %348 : i32 to index
    %c0_101 = arith.constant 0 : index
    %c0_102 = arith.constant 0 : index
    %353 = vector.load %arg4[%c0_100, %352, %c0_101, %c0_102] : memref<1x8x8x64xbf16, #tpu.memory_space<vmem>>, vector<1x1x8x64xbf16>
    %354 = vector.shape_cast %353 : vector<1x1x8x64xbf16> to vector<8x64xbf16>
    %355 = arith.extf %354 : vector<8x64xbf16> to vector<8x64xf32>
    %cst_103 = arith.constant dense<0.000000e+00> : vector<8x64xf32>
    %356 = tpu.matmul %307, %7, %cst_103 {dimension_numbers = #tpu.dot_dimension_numbers<[1], [0], [0], [1], [0, 0, 1, 1], [], []>} : vector<8x16xf32>, vector<16x64xf32>, vector<8x64xf32> -> vector<8x64xf32>
    %357 = arith.addf %355, %356 : vector<8x64xf32>
    %358 = vector.broadcast %351 : i32 to vector<8x1xi32>
    %359 = arith.cmpi slt, %358, %3 : vector<8x1xi32>
    %360 = arith.extui %359 : vector<8x1xi1> to vector<8x1xi32>
    %361 = arith.sitofp %360 : vector<8x1xi32> to vector<8x1xf32>
    %362 = vector.extract_strided_slice %357 {offsets = [0, 0], sizes = [8, 48], strides = [1, 1]} : vector<8x64xf32> to vector<8x48xf32>
    %363 = arith.negf %362 : vector<8x48xf32>
    %364 = math.exp %363 : vector<8x48xf32>
    %cst_104 = arith.constant 1.000000e+00 : f32
    %365 = vector.broadcast %cst_104 : f32 to vector<8x48xf32>
    %366 = arith.addf %365, %364 : vector<8x48xf32>
    %367 = arith.divf %365, %366 : vector<8x48xf32>
    %368 = vector.extract_strided_slice %357 {offsets = [0, 48], sizes = [8, 16], strides = [1, 1]} : vector<8x64xf32> to vector<8x16xf32>
    %369 = math.tanh %368 : vector<8x16xf32>
    %370 = vector.extract_strided_slice %367 {offsets = [0, 0], sizes = [8, 16], strides = [1, 1]} : vector<8x48xf32> to vector<8x16xf32>
    %371 = vector.extract_strided_slice %367 {offsets = [0, 16], sizes = [8, 16], strides = [1, 1]} : vector<8x48xf32> to vector<8x16xf32>
    %372 = vector.extract_strided_slice %367 {offsets = [0, 32], sizes = [8, 16], strides = [1, 1]} : vector<8x48xf32> to vector<8x16xf32>
    %373 = arith.mulf %371, %303 : vector<8x16xf32>
    %374 = arith.mulf %370, %369 : vector<8x16xf32>
    %375 = arith.addf %373, %374 : vector<8x16xf32>
    %376 = vector.broadcast %361 : vector<8x1xf32> to vector<8x16xf32>
    %377 = arith.mulf %375, %376 : vector<8x16xf32>
    %378 = math.tanh %377 : vector<8x16xf32>
    %379 = arith.mulf %372, %378 : vector<8x16xf32>
    %380 = vector.broadcast %361 : vector<8x1xf32> to vector<8x16xf32>
    %381 = arith.mulf %379, %380 : vector<8x16xf32>
    %382 = arith.index_cast %348 : i32 to index
    %c0_105 = arith.constant 0 : index
    %c0_106 = arith.constant 0 : index
    %383 = vector.load %arg7[%382, %c0_105, %c0_106] : memref<8x8x16xf32, #tpu.memory_space<vmem>>, vector<1x8x16xf32>
    %384 = vector.shape_cast %383 : vector<1x8x16xf32> to vector<8x16xf32>
    %385 = vector.shape_cast %381 : vector<8x16xf32> to vector<1x8x16xf32>
    tpu.vector_store %arg7[%382, %c0_105, %c0_106], %385 {strides = array<i32>} : memref<8x8x16xf32, #tpu.memory_space<vmem>>, vector<1x8x16xf32>,
    %c5_i32 = arith.constant 5 : i32
    %c8_i32_107 = arith.constant 8 : i32
    %386 = arith.muli %arg1, %c8_i32_107 : i32
    %387 = arith.addi %386, %c5_i32 : i32
    %c0_108 = arith.constant 0 : index
    %388 = arith.index_cast %c5_i32 : i32 to index
    %c0_109 = arith.constant 0 : index
    %c0_110 = arith.constant 0 : index
    %389 = vector.load %arg3[%c0_108, %388, %c0_109, %c0_110] : memref<1x8x8x64xbf16, #tpu.memory_space<vmem>>, vector<1x1x8x64xbf16>
    %390 = vector.shape_cast %389 : vector<1x1x8x64xbf16> to vector<8x64xbf16>
    %391 = arith.extf %390 : vector<8x64xbf16> to vector<8x64xf32>
    %cst_111 = arith.constant dense<0.000000e+00> : vector<8x64xf32>
    %392 = tpu.matmul %343, %5, %cst_111 {dimension_numbers = #tpu.dot_dimension_numbers<[1], [0], [0], [1], [0, 0, 1, 1], [], []>} : vector<8x16xf32>, vector<16x64xf32>, vector<8x64xf32> -> vector<8x64xf32>
    %393 = arith.addf %391, %392 : vector<8x64xf32>
    %394 = vector.broadcast %387 : i32 to vector<8x1xi32>
    %395 = arith.cmpi slt, %394, %3 : vector<8x1xi32>
    %396 = arith.extui %395 : vector<8x1xi1> to vector<8x1xi32>
    %397 = arith.sitofp %396 : vector<8x1xi32> to vector<8x1xf32>
    %398 = vector.extract_strided_slice %393 {offsets = [0, 0], sizes = [8, 48], strides = [1, 1]} : vector<8x64xf32> to vector<8x48xf32>
    %399 = arith.negf %398 : vector<8x48xf32>
    %400 = math.exp %399 : vector<8x48xf32>
    %cst_112 = arith.constant 1.000000e+00 : f32
    %401 = vector.broadcast %cst_112 : f32 to vector<8x48xf32>
    %402 = arith.addf %401, %400 : vector<8x48xf32>
    %403 = arith.divf %401, %402 : vector<8x48xf32>
    %404 = vector.extract_strided_slice %393 {offsets = [0, 48], sizes = [8, 16], strides = [1, 1]} : vector<8x64xf32> to vector<8x16xf32>
    %405 = math.tanh %404 : vector<8x16xf32>
    %406 = vector.extract_strided_slice %403 {offsets = [0, 0], sizes = [8, 16], strides = [1, 1]} : vector<8x48xf32> to vector<8x16xf32>
    %407 = vector.extract_strided_slice %403 {offsets = [0, 16], sizes = [8, 16], strides = [1, 1]} : vector<8x48xf32> to vector<8x16xf32>
    %408 = vector.extract_strided_slice %403 {offsets = [0, 32], sizes = [8, 16], strides = [1, 1]} : vector<8x48xf32> to vector<8x16xf32>
    %409 = arith.mulf %407, %339 : vector<8x16xf32>
    %410 = arith.mulf %406, %405 : vector<8x16xf32>
    %411 = arith.addf %409, %410 : vector<8x16xf32>
    %412 = vector.broadcast %397 : vector<8x1xf32> to vector<8x16xf32>
    %413 = arith.mulf %411, %412 : vector<8x16xf32>
    %414 = math.tanh %413 : vector<8x16xf32>
    %415 = arith.mulf %408, %414 : vector<8x16xf32>
    %416 = vector.broadcast %397 : vector<8x1xf32> to vector<8x16xf32>
    %417 = arith.mulf %415, %416 : vector<8x16xf32>
    %418 = arith.index_cast %c5_i32 : i32 to index
    %c0_113 = arith.constant 0 : index
    %c0_114 = arith.constant 0 : index
    %419 = vector.load %arg6[%418, %c0_113, %c0_114] : memref<8x8x16xf32, #tpu.memory_space<vmem>>, vector<1x8x16xf32>
    %420 = vector.shape_cast %419 : vector<1x8x16xf32> to vector<8x16xf32>
    %421 = vector.shape_cast %417 : vector<8x16xf32> to vector<1x8x16xf32>
    tpu.vector_store %arg6[%418, %c0_113, %c0_114], %421 {strides = array<i32>} : memref<8x8x16xf32, #tpu.memory_space<vmem>>, vector<1x8x16xf32>,
    %c7_i32_115 = arith.constant 7 : i32
    %422 = arith.subi %c7_i32_115, %c5_i32 : i32
    %c0_i32_116 = arith.constant 0 : i32
    %423 = arith.subi %c0_i32_116, %arg1 : i32
    %c8_i32_117 = arith.constant 8 : i32
    %424 = arith.muli %423, %c8_i32_117 : i32
    %425 = arith.addi %424, %422 : i32
    %c0_118 = arith.constant 0 : index
    %426 = arith.index_cast %422 : i32 to index
    %c0_119 = arith.constant 0 : index
    %c0_120 = arith.constant 0 : index
    %427 = vector.load %arg4[%c0_118, %426, %c0_119, %c0_120] : memref<1x8x8x64xbf16, #tpu.memory_space<vmem>>, vector<1x1x8x64xbf16>
    %428 = vector.shape_cast %427 : vector<1x1x8x64xbf16> to vector<8x64xbf16>
    %429 = arith.extf %428 : vector<8x64xbf16> to vector<8x64xf32>
    %cst_121 = arith.constant dense<0.000000e+00> : vector<8x64xf32>
    %430 = tpu.matmul %381, %7, %cst_121 {dimension_numbers = #tpu.dot_dimension_numbers<[1], [0], [0], [1], [0, 0, 1, 1], [], []>} : vector<8x16xf32>, vector<16x64xf32>, vector<8x64xf32> -> vector<8x64xf32>
    %431 = arith.addf %429, %430 : vector<8x64xf32>
    %432 = vector.broadcast %425 : i32 to vector<8x1xi32>
    %433 = arith.cmpi slt, %432, %3 : vector<8x1xi32>
    %434 = arith.extui %433 : vector<8x1xi1> to vector<8x1xi32>
    %435 = arith.sitofp %434 : vector<8x1xi32> to vector<8x1xf32>
    %436 = vector.extract_strided_slice %431 {offsets = [0, 0], sizes = [8, 48], strides = [1, 1]} : vector<8x64xf32> to vector<8x48xf32>
    %437 = arith.negf %436 : vector<8x48xf32>
    %438 = math.exp %437 : vector<8x48xf32>
    %cst_122 = arith.constant 1.000000e+00 : f32
    %439 = vector.broadcast %cst_122 : f32 to vector<8x48xf32>
    %440 = arith.addf %439, %438 : vector<8x48xf32>
    %441 = arith.divf %439, %440 : vector<8x48xf32>
    %442 = vector.extract_strided_slice %431 {offsets = [0, 48], sizes = [8, 16], strides = [1, 1]} : vector<8x64xf32> to vector<8x16xf32>
    %443 = math.tanh %442 : vector<8x16xf32>
    %444 = vector.extract_strided_slice %441 {offsets = [0, 0], sizes = [8, 16], strides = [1, 1]} : vector<8x48xf32> to vector<8x16xf32>
    %445 = vector.extract_strided_slice %441 {offsets = [0, 16], sizes = [8, 16], strides = [1, 1]} : vector<8x48xf32> to vector<8x16xf32>
    %446 = vector.extract_strided_slice %441 {offsets = [0, 32], sizes = [8, 16], strides = [1, 1]} : vector<8x48xf32> to vector<8x16xf32>
    %447 = arith.mulf %445, %377 : vector<8x16xf32>
    %448 = arith.mulf %444, %443 : vector<8x16xf32>
    %449 = arith.addf %447, %448 : vector<8x16xf32>
    %450 = vector.broadcast %435 : vector<8x1xf32> to vector<8x16xf32>
    %451 = arith.mulf %449, %450 : vector<8x16xf32>
    %452 = math.tanh %451 : vector<8x16xf32>
    %453 = arith.mulf %446, %452 : vector<8x16xf32>
    %454 = vector.broadcast %435 : vector<8x1xf32> to vector<8x16xf32>
    %455 = arith.mulf %453, %454 : vector<8x16xf32>
    %456 = arith.index_cast %422 : i32 to index
    %c0_123 = arith.constant 0 : index
    %c0_124 = arith.constant 0 : index
    %457 = vector.load %arg7[%456, %c0_123, %c0_124] : memref<8x8x16xf32, #tpu.memory_space<vmem>>, vector<1x8x16xf32>
    %458 = vector.shape_cast %457 : vector<1x8x16xf32> to vector<8x16xf32>
    %459 = vector.shape_cast %455 : vector<8x16xf32> to vector<1x8x16xf32>
    tpu.vector_store %arg7[%456, %c0_123, %c0_124], %459 {strides = array<i32>} : memref<8x8x16xf32, #tpu.memory_space<vmem>>, vector<1x8x16xf32>,
    %c6_i32 = arith.constant 6 : i32
    %c8_i32_125 = arith.constant 8 : i32
    %460 = arith.muli %arg1, %c8_i32_125 : i32
    %461 = arith.addi %460, %c6_i32 : i32
    %c0_126 = arith.constant 0 : index
    %462 = arith.index_cast %c6_i32 : i32 to index
    %c0_127 = arith.constant 0 : index
    %c0_128 = arith.constant 0 : index
    %463 = vector.load %arg3[%c0_126, %462, %c0_127, %c0_128] : memref<1x8x8x64xbf16, #tpu.memory_space<vmem>>, vector<1x1x8x64xbf16>
    %464 = vector.shape_cast %463 : vector<1x1x8x64xbf16> to vector<8x64xbf16>
    %465 = arith.extf %464 : vector<8x64xbf16> to vector<8x64xf32>
    %cst_129 = arith.constant dense<0.000000e+00> : vector<8x64xf32>
    %466 = tpu.matmul %417, %5, %cst_129 {dimension_numbers = #tpu.dot_dimension_numbers<[1], [0], [0], [1], [0, 0, 1, 1], [], []>} : vector<8x16xf32>, vector<16x64xf32>, vector<8x64xf32> -> vector<8x64xf32>
    %467 = arith.addf %465, %466 : vector<8x64xf32>
    %468 = vector.broadcast %461 : i32 to vector<8x1xi32>
    %469 = arith.cmpi slt, %468, %3 : vector<8x1xi32>
    %470 = arith.extui %469 : vector<8x1xi1> to vector<8x1xi32>
    %471 = arith.sitofp %470 : vector<8x1xi32> to vector<8x1xf32>
    %472 = vector.extract_strided_slice %467 {offsets = [0, 0], sizes = [8, 48], strides = [1, 1]} : vector<8x64xf32> to vector<8x48xf32>
    %473 = arith.negf %472 : vector<8x48xf32>
    %474 = math.exp %473 : vector<8x48xf32>
    %cst_130 = arith.constant 1.000000e+00 : f32
    %475 = vector.broadcast %cst_130 : f32 to vector<8x48xf32>
    %476 = arith.addf %475, %474 : vector<8x48xf32>
    %477 = arith.divf %475, %476 : vector<8x48xf32>
    %478 = vector.extract_strided_slice %467 {offsets = [0, 48], sizes = [8, 16], strides = [1, 1]} : vector<8x64xf32> to vector<8x16xf32>
    %479 = math.tanh %478 : vector<8x16xf32>
    %480 = vector.extract_strided_slice %477 {offsets = [0, 0], sizes = [8, 16], strides = [1, 1]} : vector<8x48xf32> to vector<8x16xf32>
    %481 = vector.extract_strided_slice %477 {offsets = [0, 16], sizes = [8, 16], strides = [1, 1]} : vector<8x48xf32> to vector<8x16xf32>
    %482 = vector.extract_strided_slice %477 {offsets = [0, 32], sizes = [8, 16], strides = [1, 1]} : vector<8x48xf32> to vector<8x16xf32>
    %483 = arith.mulf %481, %413 : vector<8x16xf32>
    %484 = arith.mulf %480, %479 : vector<8x16xf32>
    %485 = arith.addf %483, %484 : vector<8x16xf32>
    %486 = vector.broadcast %471 : vector<8x1xf32> to vector<8x16xf32>
    %487 = arith.mulf %485, %486 : vector<8x16xf32>
    %488 = math.tanh %487 : vector<8x16xf32>
    %489 = arith.mulf %482, %488 : vector<8x16xf32>
    %490 = vector.broadcast %471 : vector<8x1xf32> to vector<8x16xf32>
    %491 = arith.mulf %489, %490 : vector<8x16xf32>
    %492 = arith.index_cast %c6_i32 : i32 to index
    %c0_131 = arith.constant 0 : index
    %c0_132 = arith.constant 0 : index
    %493 = vector.load %arg6[%492, %c0_131, %c0_132] : memref<8x8x16xf32, #tpu.memory_space<vmem>>, vector<1x8x16xf32>
    %494 = vector.shape_cast %493 : vector<1x8x16xf32> to vector<8x16xf32>
    %495 = vector.shape_cast %491 : vector<8x16xf32> to vector<1x8x16xf32>
    tpu.vector_store %arg6[%492, %c0_131, %c0_132], %495 {strides = array<i32>} : memref<8x8x16xf32, #tpu.memory_space<vmem>>, vector<1x8x16xf32>,
    %c7_i32_133 = arith.constant 7 : i32
    %496 = arith.subi %c7_i32_133, %c6_i32 : i32
    %c0_i32_134 = arith.constant 0 : i32
    %497 = arith.subi %c0_i32_134, %arg1 : i32
    %c8_i32_135 = arith.constant 8 : i32
    %498 = arith.muli %497, %c8_i32_135 : i32
    %499 = arith.addi %498, %496 : i32
    %c0_136 = arith.constant 0 : index
    %500 = arith.index_cast %496 : i32 to index
    %c0_137 = arith.constant 0 : index
    %c0_138 = arith.constant 0 : index
    %501 = vector.load %arg4[%c0_136, %500, %c0_137, %c0_138] : memref<1x8x8x64xbf16, #tpu.memory_space<vmem>>, vector<1x1x8x64xbf16>
    %502 = vector.shape_cast %501 : vector<1x1x8x64xbf16> to vector<8x64xbf16>
    %503 = arith.extf %502 : vector<8x64xbf16> to vector<8x64xf32>
    %cst_139 = arith.constant dense<0.000000e+00> : vector<8x64xf32>
    %504 = tpu.matmul %455, %7, %cst_139 {dimension_numbers = #tpu.dot_dimension_numbers<[1], [0], [0], [1], [0, 0, 1, 1], [], []>} : vector<8x16xf32>, vector<16x64xf32>, vector<8x64xf32> -> vector<8x64xf32>
    %505 = arith.addf %503, %504 : vector<8x64xf32>
    %506 = vector.broadcast %499 : i32 to vector<8x1xi32>
    %507 = arith.cmpi slt, %506, %3 : vector<8x1xi32>
    %508 = arith.extui %507 : vector<8x1xi1> to vector<8x1xi32>
    %509 = arith.sitofp %508 : vector<8x1xi32> to vector<8x1xf32>
    %510 = vector.extract_strided_slice %505 {offsets = [0, 0], sizes = [8, 48], strides = [1, 1]} : vector<8x64xf32> to vector<8x48xf32>
    %511 = arith.negf %510 : vector<8x48xf32>
    %512 = math.exp %511 : vector<8x48xf32>
    %cst_140 = arith.constant 1.000000e+00 : f32
    %513 = vector.broadcast %cst_140 : f32 to vector<8x48xf32>
    %514 = arith.addf %513, %512 : vector<8x48xf32>
    %515 = arith.divf %513, %514 : vector<8x48xf32>
    %516 = vector.extract_strided_slice %505 {offsets = [0, 48], sizes = [8, 16], strides = [1, 1]} : vector<8x64xf32> to vector<8x16xf32>
    %517 = math.tanh %516 : vector<8x16xf32>
    %518 = vector.extract_strided_slice %515 {offsets = [0, 0], sizes = [8, 16], strides = [1, 1]} : vector<8x48xf32> to vector<8x16xf32>
    %519 = vector.extract_strided_slice %515 {offsets = [0, 16], sizes = [8, 16], strides = [1, 1]} : vector<8x48xf32> to vector<8x16xf32>
    %520 = vector.extract_strided_slice %515 {offsets = [0, 32], sizes = [8, 16], strides = [1, 1]} : vector<8x48xf32> to vector<8x16xf32>
    %521 = arith.mulf %519, %451 : vector<8x16xf32>
    %522 = arith.mulf %518, %517 : vector<8x16xf32>
    %523 = arith.addf %521, %522 : vector<8x16xf32>
    %524 = vector.broadcast %509 : vector<8x1xf32> to vector<8x16xf32>
    %525 = arith.mulf %523, %524 : vector<8x16xf32>
    %526 = math.tanh %525 : vector<8x16xf32>
    %527 = arith.mulf %520, %526 : vector<8x16xf32>
    %528 = vector.broadcast %509 : vector<8x1xf32> to vector<8x16xf32>
    %529 = arith.mulf %527, %528 : vector<8x16xf32>
    %530 = arith.index_cast %496 : i32 to index
    %c0_141 = arith.constant 0 : index
    %c0_142 = arith.constant 0 : index
    %531 = vector.load %arg7[%530, %c0_141, %c0_142] : memref<8x8x16xf32, #tpu.memory_space<vmem>>, vector<1x8x16xf32>
    %532 = vector.shape_cast %531 : vector<1x8x16xf32> to vector<8x16xf32>
    %533 = vector.shape_cast %529 : vector<8x16xf32> to vector<1x8x16xf32>
    tpu.vector_store %arg7[%530, %c0_141, %c0_142], %533 {strides = array<i32>} : memref<8x8x16xf32, #tpu.memory_space<vmem>>, vector<1x8x16xf32>,
    %c7_i32_143 = arith.constant 7 : i32
    %c8_i32_144 = arith.constant 8 : i32
    %534 = arith.muli %arg1, %c8_i32_144 : i32
    %535 = arith.addi %534, %c7_i32_143 : i32
    %c0_145 = arith.constant 0 : index
    %536 = arith.index_cast %c7_i32_143 : i32 to index
    %c0_146 = arith.constant 0 : index
    %c0_147 = arith.constant 0 : index
    %537 = vector.load %arg3[%c0_145, %536, %c0_146, %c0_147] : memref<1x8x8x64xbf16, #tpu.memory_space<vmem>>, vector<1x1x8x64xbf16>
    %538 = vector.shape_cast %537 : vector<1x1x8x64xbf16> to vector<8x64xbf16>
    %539 = arith.extf %538 : vector<8x64xbf16> to vector<8x64xf32>
    %cst_148 = arith.constant dense<0.000000e+00> : vector<8x64xf32>
    %540 = tpu.matmul %491, %5, %cst_148 {dimension_numbers = #tpu.dot_dimension_numbers<[1], [0], [0], [1], [0, 0, 1, 1], [], []>} : vector<8x16xf32>, vector<16x64xf32>, vector<8x64xf32> -> vector<8x64xf32>
    %541 = arith.addf %539, %540 : vector<8x64xf32>
    %542 = vector.broadcast %535 : i32 to vector<8x1xi32>
    %543 = arith.cmpi slt, %542, %3 : vector<8x1xi32>
    %544 = arith.extui %543 : vector<8x1xi1> to vector<8x1xi32>
    %545 = arith.sitofp %544 : vector<8x1xi32> to vector<8x1xf32>
    %546 = vector.extract_strided_slice %541 {offsets = [0, 0], sizes = [8, 48], strides = [1, 1]} : vector<8x64xf32> to vector<8x48xf32>
    %547 = arith.negf %546 : vector<8x48xf32>
    %548 = math.exp %547 : vector<8x48xf32>
    %cst_149 = arith.constant 1.000000e+00 : f32
    %549 = vector.broadcast %cst_149 : f32 to vector<8x48xf32>
    %550 = arith.addf %549, %548 : vector<8x48xf32>
    %551 = arith.divf %549, %550 : vector<8x48xf32>
    %552 = vector.extract_strided_slice %541 {offsets = [0, 48], sizes = [8, 16], strides = [1, 1]} : vector<8x64xf32> to vector<8x16xf32>
    %553 = math.tanh %552 : vector<8x16xf32>
    %554 = vector.extract_strided_slice %551 {offsets = [0, 0], sizes = [8, 16], strides = [1, 1]} : vector<8x48xf32> to vector<8x16xf32>
    %555 = vector.extract_strided_slice %551 {offsets = [0, 16], sizes = [8, 16], strides = [1, 1]} : vector<8x48xf32> to vector<8x16xf32>
    %556 = vector.extract_strided_slice %551 {offsets = [0, 32], sizes = [8, 16], strides = [1, 1]} : vector<8x48xf32> to vector<8x16xf32>
    %557 = arith.mulf %555, %487 : vector<8x16xf32>
    %558 = arith.mulf %554, %553 : vector<8x16xf32>
    %559 = arith.addf %557, %558 : vector<8x16xf32>
    %560 = vector.broadcast %545 : vector<8x1xf32> to vector<8x16xf32>
    %561 = arith.mulf %559, %560 : vector<8x16xf32>
    %562 = math.tanh %561 : vector<8x16xf32>
    %563 = arith.mulf %556, %562 : vector<8x16xf32>
    %564 = vector.broadcast %545 : vector<8x1xf32> to vector<8x16xf32>
    %565 = arith.mulf %563, %564 : vector<8x16xf32>
    %566 = arith.index_cast %c7_i32_143 : i32 to index
    %c0_150 = arith.constant 0 : index
    %c0_151 = arith.constant 0 : index
    %567 = vector.load %arg6[%566, %c0_150, %c0_151] : memref<8x8x16xf32, #tpu.memory_space<vmem>>, vector<1x8x16xf32>
    %568 = vector.shape_cast %567 : vector<1x8x16xf32> to vector<8x16xf32>
    %569 = vector.shape_cast %565 : vector<8x16xf32> to vector<1x8x16xf32>
    tpu.vector_store %arg6[%566, %c0_150, %c0_151], %569 {strides = array<i32>} : memref<8x8x16xf32, #tpu.memory_space<vmem>>, vector<1x8x16xf32>,
    %c7_i32_152 = arith.constant 7 : i32
    %570 = arith.subi %c7_i32_152, %c7_i32_143 : i32
    %c0_i32_153 = arith.constant 0 : i32
    %571 = arith.subi %c0_i32_153, %arg1 : i32
    %c8_i32_154 = arith.constant 8 : i32
    %572 = arith.muli %571, %c8_i32_154 : i32
    %573 = arith.addi %572, %570 : i32
    %c0_155 = arith.constant 0 : index
    %574 = arith.index_cast %570 : i32 to index
    %c0_156 = arith.constant 0 : index
    %c0_157 = arith.constant 0 : index
    %575 = vector.load %arg4[%c0_155, %574, %c0_156, %c0_157] : memref<1x8x8x64xbf16, #tpu.memory_space<vmem>>, vector<1x1x8x64xbf16>
    %576 = vector.shape_cast %575 : vector<1x1x8x64xbf16> to vector<8x64xbf16>
    %577 = arith.extf %576 : vector<8x64xbf16> to vector<8x64xf32>
    %cst_158 = arith.constant dense<0.000000e+00> : vector<8x64xf32>
    %578 = tpu.matmul %529, %7, %cst_158 {dimension_numbers = #tpu.dot_dimension_numbers<[1], [0], [0], [1], [0, 0, 1, 1], [], []>} : vector<8x16xf32>, vector<16x64xf32>, vector<8x64xf32> -> vector<8x64xf32>
    %579 = arith.addf %577, %578 : vector<8x64xf32>
    %580 = vector.broadcast %573 : i32 to vector<8x1xi32>
    %581 = arith.cmpi slt, %580, %3 : vector<8x1xi32>
    %582 = arith.extui %581 : vector<8x1xi1> to vector<8x1xi32>
    %583 = arith.sitofp %582 : vector<8x1xi32> to vector<8x1xf32>
    %584 = vector.extract_strided_slice %579 {offsets = [0, 0], sizes = [8, 48], strides = [1, 1]} : vector<8x64xf32> to vector<8x48xf32>
    %585 = arith.negf %584 : vector<8x48xf32>
    %586 = math.exp %585 : vector<8x48xf32>
    %cst_159 = arith.constant 1.000000e+00 : f32
    %587 = vector.broadcast %cst_159 : f32 to vector<8x48xf32>
    %588 = arith.addf %587, %586 : vector<8x48xf32>
    %589 = arith.divf %587, %588 : vector<8x48xf32>
    %590 = vector.extract_strided_slice %579 {offsets = [0, 48], sizes = [8, 16], strides = [1, 1]} : vector<8x64xf32> to vector<8x16xf32>
    %591 = math.tanh %590 : vector<8x16xf32>
    %592 = vector.extract_strided_slice %589 {offsets = [0, 0], sizes = [8, 16], strides = [1, 1]} : vector<8x48xf32> to vector<8x16xf32>
    %593 = vector.extract_strided_slice %589 {offsets = [0, 16], sizes = [8, 16], strides = [1, 1]} : vector<8x48xf32> to vector<8x16xf32>
    %594 = vector.extract_strided_slice %589 {offsets = [0, 32], sizes = [8, 16], strides = [1, 1]} : vector<8x48xf32> to vector<8x16xf32>
    %595 = arith.mulf %593, %525 : vector<8x16xf32>
    %596 = arith.mulf %592, %591 : vector<8x16xf32>
    %597 = arith.addf %595, %596 : vector<8x16xf32>
    %598 = vector.broadcast %583 : vector<8x1xf32> to vector<8x16xf32>
    %599 = arith.mulf %597, %598 : vector<8x16xf32>
    %600 = math.tanh %599 : vector<8x16xf32>
    %601 = arith.mulf %594, %600 : vector<8x16xf32>
    %602 = vector.broadcast %583 : vector<8x1xf32> to vector<8x16xf32>
    %603 = arith.mulf %601, %602 : vector<8x16xf32>
    %604 = arith.index_cast %570 : i32 to index
    %c0_160 = arith.constant 0 : index
    %c0_161 = arith.constant 0 : index
    %605 = vector.load %arg7[%604, %c0_160, %c0_161] : memref<8x8x16xf32, #tpu.memory_space<vmem>>, vector<1x8x16xf32>
    %606 = vector.shape_cast %605 : vector<1x8x16xf32> to vector<8x16xf32>
    %607 = vector.shape_cast %603 : vector<8x16xf32> to vector<1x8x16xf32>
    tpu.vector_store %arg7[%604, %c0_160, %c0_161], %607 {strides = array<i32>} : memref<8x8x16xf32, #tpu.memory_space<vmem>>, vector<1x8x16xf32>,
    %c8_i32_162 = arith.constant 8 : i32
    %c0_163 = arith.constant 0 : index
    %c0_164 = arith.constant 0 : index
    %c0_165 = arith.constant 0 : index
    %608 = vector.load %arg8[%c0_163, %c0_164, %c0_165] : memref<2x8x16xf32, #tpu.memory_space<vmem>>, vector<1x8x16xf32>
    %609 = vector.shape_cast %608 : vector<1x8x16xf32> to vector<8x16xf32>
    %610 = vector.shape_cast %565 : vector<8x16xf32> to vector<1x8x16xf32>
    tpu.vector_store %arg8[%c0_163, %c0_164, %c0_165], %610 {strides = array<i32>} : memref<2x8x16xf32, #tpu.memory_space<vmem>>, vector<1x8x16xf32>,
    %c0_166 = arith.constant 0 : index
    %c0_167 = arith.constant 0 : index
    %c0_168 = arith.constant 0 : index
    %611 = vector.load %arg9[%c0_166, %c0_167, %c0_168] : memref<2x8x16xf32, #tpu.memory_space<vmem>>, vector<1x8x16xf32>
    %612 = vector.shape_cast %611 : vector<1x8x16xf32> to vector<8x16xf32>
    %613 = vector.shape_cast %561 : vector<8x16xf32> to vector<1x8x16xf32>
    tpu.vector_store %arg9[%c0_166, %c0_167, %c0_168], %613 {strides = array<i32>} : memref<2x8x16xf32, #tpu.memory_space<vmem>>, vector<1x8x16xf32>,
    %c1_169 = arith.constant 1 : index
    %c0_170 = arith.constant 0 : index
    %c0_171 = arith.constant 0 : index
    %614 = vector.load %arg8[%c1_169, %c0_170, %c0_171] : memref<2x8x16xf32, #tpu.memory_space<vmem>>, vector<1x8x16xf32>
    %615 = vector.shape_cast %614 : vector<1x8x16xf32> to vector<8x16xf32>
    %616 = vector.shape_cast %603 : vector<8x16xf32> to vector<1x8x16xf32>
    tpu.vector_store %arg8[%c1_169, %c0_170, %c0_171], %616 {strides = array<i32>} : memref<2x8x16xf32, #tpu.memory_space<vmem>>, vector<1x8x16xf32>,
    %c1_172 = arith.constant 1 : index
    %c0_173 = arith.constant 0 : index
    %c0_174 = arith.constant 0 : index
    %617 = vector.load %arg9[%c1_172, %c0_173, %c0_174] : memref<2x8x16xf32, #tpu.memory_space<vmem>>, vector<1x8x16xf32>
    %618 = vector.shape_cast %617 : vector<1x8x16xf32> to vector<8x16xf32>
    %619 = vector.shape_cast %599 : vector<8x16xf32> to vector<1x8x16xf32>
    tpu.vector_store %arg9[%c1_172, %c0_173, %c0_174], %619 {strides = array<i32>} : memref<2x8x16xf32, #tpu.memory_space<vmem>>, vector<1x8x16xf32>,
    return
  }
  func.func @transform_0(%arg0: i32, %arg1: i32) -> (i32, i32) {
    %c0_i32 = arith.constant 0 : i32
    %c0_i32_0 = arith.constant 0 : i32
    return %arg0, %c0_i32 : i32, i32
  }
  func.func @transform_1(%arg0: i32, %arg1: i32) -> (i32, i32, i32, i32) {
    %c0_i32 = arith.constant 0 : i32
    %c0_i32_0 = arith.constant 0 : i32
    %c0_i32_1 = arith.constant 0 : i32
    return %c0_i32, %arg1, %arg0, %c0_i32_0 : i32, i32, i32, i32
  }
  func.func @transform_2(%arg0: i32, %arg1: i32) -> (i32, i32, i32, i32) {
    %c0_i32 = arith.constant 0 : i32
    %0 = arith.subi %c0_i32, %arg1 : i32
    %c1_i32 = arith.constant 1 : i32
    %c0_i32_0 = arith.constant 0 : i32
    %c0_i32_1 = arith.constant 0 : i32
    return %c1_i32, %0, %arg0, %c0_i32_0 : i32, i32, i32, i32
  }
  func.func @transform_3(%arg0: i32, %arg1: i32) -> (i32, i32, i32) {
    %c0_i32 = arith.constant 0 : i32
    %c0_i32_0 = arith.constant 0 : i32
    %c0_i32_1 = arith.constant 0 : i32
    %c0_i32_2 = arith.constant 0 : i32
    return %c0_i32, %c0_i32_0, %c0_i32_1 : i32, i32, i32
  }
  func.func @transform_4(%arg0: i32, %arg1: i32) -> (i32, i32, i32) {
    %c0_i32 = arith.constant 0 : i32
    %c0_i32_0 = arith.constant 0 : i32
    return %arg1, %arg0, %c0_i32 : i32, i32, i32
  }
  func.func @transform_5(%arg0: i32, %arg1: i32) -> (i32, i32, i32) {
    %c0_i32 = arith.constant 0 : i32
    %0 = arith.subi %c0_i32, %arg1 : i32
    %c0_i32_0 = arith.constant 0 : i32
    %c0_i32_1 = arith.constant 0 : i32
    return %0, %arg0, %c0_i32_0 : i32, i32, i32
  }
}

module attributes {stable_mosaic.version = 11 : i64} {
  func.func @_tail_kernel(%arg0: i32, %arg1: memref<8x8x16xf32, #tpu.memory_space<vmem>>, %arg2: memref<8x8x16xf32, #tpu.memory_space<vmem>>, %arg3: memref<1x32xf32, #tpu.memory_space<vmem>>, %arg4: memref<1x32xf32, #tpu.memory_space<vmem>>, %arg5: memref<1x32xf32, #tpu.memory_space<vmem>>, %arg6: memref<1x32xf32, #tpu.memory_space<vmem>>, %arg7: memref<32x16xf32, #tpu.memory_space<vmem>>, %arg8: memref<1x16xf32, #tpu.memory_space<vmem>>, %arg9: memref<1x16xf32, #tpu.memory_space<vmem>>, %arg10: memref<1x1xf32, #tpu.memory_space<vmem>>, %arg11: memref<8x8xf32, #tpu.memory_space<vmem>>, %arg12: memref<1x8xf32, #tpu.memory_space<vmem>>, %arg13: memref<8x2xf32, #tpu.memory_space<vmem>>, %arg14: memref<1x2xf32, #tpu.memory_space<vmem>>, %arg15: memref<8x8xf32, #tpu.memory_space<vmem>>, %arg16: memref<8x2xf32, #tpu.memory_space<vmem>>) attributes {dimension_semantics = [#tpu.dimension_semantics<parallel>], iteration_bounds = array<i64: 1>, scalar_prefetch = 0 : i64, scratch_operands = 0 : i64, tpu.core_type = #tpu.core_type<tc>, window_params = [{transform_indices = @transform_0, window_bounds = array<i64: 8, 8, 16>}, {transform_indices = @transform_1, window_bounds = array<i64: 8, 8, 16>}, {pipeline_mode = #tpu.pipeline_mode<synchronous>, transform_indices = @transform_2, window_bounds = array<i64: 1, 32>}, {pipeline_mode = #tpu.pipeline_mode<synchronous>, transform_indices = @transform_3, window_bounds = array<i64: 1, 32>}, {pipeline_mode = #tpu.pipeline_mode<synchronous>, transform_indices = @transform_4, window_bounds = array<i64: 1, 32>}, {pipeline_mode = #tpu.pipeline_mode<synchronous>, transform_indices = @transform_5, window_bounds = array<i64: 1, 32>}, {pipeline_mode = #tpu.pipeline_mode<synchronous>, transform_indices = @transform_6, window_bounds = array<i64: 32, 16>}, {pipeline_mode = #tpu.pipeline_mode<synchronous>, transform_indices = @transform_7, window_bounds = array<i64: 1, 16>}, {pipeline_mode = #tpu.pipeline_mode<synchronous>, transform_indices = @transform_8, window_bounds = array<i64: 1, 16>}, {pipeline_mode = #tpu.pipeline_mode<synchronous>, transform_indices = @transform_9, window_bounds = array<i64: 1, 1>}, {pipeline_mode = #tpu.pipeline_mode<synchronous>, transform_indices = @transform_10, window_bounds = array<i64: 8, 8>}, {pipeline_mode = #tpu.pipeline_mode<synchronous>, transform_indices = @transform_11, window_bounds = array<i64: 1, 8>}, {pipeline_mode = #tpu.pipeline_mode<synchronous>, transform_indices = @transform_12, window_bounds = array<i64: 8, 2>}, {pipeline_mode = #tpu.pipeline_mode<synchronous>, transform_indices = @transform_13, window_bounds = array<i64: 1, 2>}, {transform_indices = @transform_14, window_bounds = array<i64: 8, 8>}, {transform_indices = @transform_15, window_bounds = array<i64: 8, 2>}]} {
    %c0 = arith.constant 0 : index
    %c0_0 = arith.constant 0 : index
    %c0_1 = arith.constant 0 : index
    %0 = vector.load %arg1[%c0, %c0_0, %c0_1] : memref<8x8x16xf32, #tpu.memory_space<vmem>>, vector<8x8x16xf32>
    %1 = vector.shape_cast %0 : vector<8x8x16xf32> to vector<64x16xf32>
    %c0_2 = arith.constant 0 : index
    %c0_3 = arith.constant 0 : index
    %2 = vector.load %arg5[%c0_2, %c0_3] : memref<1x32xf32, #tpu.memory_space<vmem>>, vector<1x16xf32>
    %3 = vector.broadcast %2 : vector<1x16xf32> to vector<64x16xf32>
    %4 = arith.subf %1, %3 : vector<64x16xf32>
    %c0_4 = arith.constant 0 : index
    %c0_5 = arith.constant 0 : index
    %5 = vector.load %arg6[%c0_4, %c0_5] : memref<1x32xf32, #tpu.memory_space<vmem>>, vector<1x16xf32>
    %cst = arith.constant 9.99999974E-6 : f32
    %6 = vector.broadcast %cst : f32 to vector<1x16xf32>
    %7 = arith.addf %5, %6 : vector<1x16xf32>
    %8 = math.rsqrt %7 : vector<1x16xf32>
    %9 = vector.broadcast %8 : vector<1x16xf32> to vector<64x16xf32>
    %10 = arith.mulf %4, %9 : vector<64x16xf32>
    %c0_6 = arith.constant 0 : index
    %c0_7 = arith.constant 0 : index
    %11 = vector.load %arg3[%c0_6, %c0_7] : memref<1x32xf32, #tpu.memory_space<vmem>>, vector<1x16xf32>
    %12 = vector.broadcast %11 : vector<1x16xf32> to vector<64x16xf32>
    %13 = arith.mulf %10, %12 : vector<64x16xf32>
    %c0_8 = arith.constant 0 : index
    %c0_9 = arith.constant 0 : index
    %14 = vector.load %arg4[%c0_8, %c0_9] : memref<1x32xf32, #tpu.memory_space<vmem>>, vector<1x16xf32>
    %15 = vector.broadcast %14 : vector<1x16xf32> to vector<64x16xf32>
    %16 = arith.addf %13, %15 : vector<64x16xf32>
    %cst_10 = arith.constant 0.000000e+00 : f32
    %17 = vector.broadcast %cst_10 : f32 to vector<64x16xf32>
    %18 = arith.maximumf %16, %17 : vector<64x16xf32>
    %c0_11 = arith.constant 0 : index
    %c0_12 = arith.constant 0 : index
    %c0_13 = arith.constant 0 : index
    %19 = vector.load %arg2[%c0_11, %c0_12, %c0_13] : memref<8x8x16xf32, #tpu.memory_space<vmem>>, vector<8x8x16xf32>
    %20 = vector.shape_cast %19 : vector<8x8x16xf32> to vector<64x16xf32>
    %c0_14 = arith.constant 0 : index
    %c16 = arith.constant 16 : index
    %21 = vector.load %arg5[%c0_14, %c16] : memref<1x32xf32, #tpu.memory_space<vmem>>, vector<1x16xf32>
    %22 = vector.broadcast %21 : vector<1x16xf32> to vector<64x16xf32>
    %23 = arith.subf %20, %22 : vector<64x16xf32>
    %c0_15 = arith.constant 0 : index
    %c16_16 = arith.constant 16 : index
    %24 = vector.load %arg6[%c0_15, %c16_16] : memref<1x32xf32, #tpu.memory_space<vmem>>, vector<1x16xf32>
    %cst_17 = arith.constant 9.99999974E-6 : f32
    %25 = vector.broadcast %cst_17 : f32 to vector<1x16xf32>
    %26 = arith.addf %24, %25 : vector<1x16xf32>
    %27 = math.rsqrt %26 : vector<1x16xf32>
    %28 = vector.broadcast %27 : vector<1x16xf32> to vector<64x16xf32>
    %29 = arith.mulf %23, %28 : vector<64x16xf32>
    %c0_18 = arith.constant 0 : index
    %c16_19 = arith.constant 16 : index
    %30 = vector.load %arg3[%c0_18, %c16_19] : memref<1x32xf32, #tpu.memory_space<vmem>>, vector<1x16xf32>
    %31 = vector.broadcast %30 : vector<1x16xf32> to vector<64x16xf32>
    %32 = arith.mulf %29, %31 : vector<64x16xf32>
    %c0_20 = arith.constant 0 : index
    %c16_21 = arith.constant 16 : index
    %33 = vector.load %arg4[%c0_20, %c16_21] : memref<1x32xf32, #tpu.memory_space<vmem>>, vector<1x16xf32>
    %34 = vector.broadcast %33 : vector<1x16xf32> to vector<64x16xf32>
    %35 = arith.addf %32, %34 : vector<64x16xf32>
    %cst_22 = arith.constant 0.000000e+00 : f32
    %36 = vector.broadcast %cst_22 : f32 to vector<64x16xf32>
    %37 = arith.maximumf %35, %36 : vector<64x16xf32>
    %c0_23 = arith.constant 0 : index
    %c0_24 = arith.constant 0 : index
    %38 = vector.load %arg7[%c0_23, %c0_24] : memref<32x16xf32, #tpu.memory_space<vmem>>, vector<16x16xf32>
    %cst_25 = arith.constant dense<0.000000e+00> : vector<64x16xf32>
    %39 = tpu.matmul %18, %38, %cst_25 {dimension_numbers = #tpu.dot_dimension_numbers<[1], [0], [0], [1], [0, 0, 1, 1], [], []>} : vector<64x16xf32>, vector<16x16xf32>, vector<64x16xf32> -> vector<64x16xf32>
    %c16_26 = arith.constant 16 : index
    %c0_27 = arith.constant 0 : index
    %40 = vector.load %arg7[%c16_26, %c0_27] : memref<32x16xf32, #tpu.memory_space<vmem>>, vector<16x16xf32>
    %cst_28 = arith.constant dense<0.000000e+00> : vector<64x16xf32>
    %41 = tpu.matmul %37, %40, %cst_28 {dimension_numbers = #tpu.dot_dimension_numbers<[1], [0], [0], [1], [0, 0, 1, 1], [], []>} : vector<64x16xf32>, vector<16x16xf32>, vector<64x16xf32> -> vector<64x16xf32>
    %42 = arith.addf %39, %41 : vector<64x16xf32>
    %c0_29 = arith.constant 0 : index
    %c0_30 = arith.constant 0 : index
    %43 = vector.load %arg8[%c0_29, %c0_30] : memref<1x16xf32, #tpu.memory_space<vmem>>, vector<1x16xf32>
    %44 = vector.broadcast %43 : vector<1x16xf32> to vector<64x16xf32>
    %45 = arith.addf %42, %44 : vector<64x16xf32>
    %cst_31 = arith.constant 0.000000e+00 : f32
    %46 = vector.broadcast %cst_31 : f32 to vector<64x16xf32>
    %47 = arith.maximumf %45, %46 : vector<64x16xf32>
    %48 = vector.shape_cast %47 : vector<64x16xf32> to vector<8x8x16xf32>
    %c0_32 = arith.constant 0 : index
    %c0_33 = arith.constant 0 : index
    %49 = vector.load %arg9[%c0_32, %c0_33] : memref<1x16xf32, #tpu.memory_space<vmem>>, vector<1x16xf32>
    %50 = vector.shape_cast %49 : vector<1x16xf32> to vector<1x1x16xf32>
    %51 = vector.broadcast %50 : vector<1x1x16xf32> to vector<8x8x16xf32>
    %52 = arith.mulf %48, %51 : vector<8x8x16xf32>
    %cst_34 = arith.constant dense<0.000000e+00> : vector<8x8xf32>
    %53 = vector.multi_reduction <add>, %52, %cst_34 [2] : vector<8x8x16xf32> to vector<8x8xf32>
    %c0_35 = arith.constant 0 : index
    %c0_36 = arith.constant 0 : index
    %54 = vector.load %arg10[%c0_35, %c0_36] : memref<1x1xf32, #tpu.memory_space<vmem>>, vector<1x1xf32>
    %55 = vector.broadcast %54 : vector<1x1xf32> to vector<8x8xf32>
    %56 = arith.addf %53, %55 : vector<8x8xf32>
    %57 = arith.negf %56 : vector<8x8xf32>
    %58 = math.exp %57 : vector<8x8xf32>
    %cst_37 = arith.constant 1.000000e+00 : f32
    %59 = vector.broadcast %cst_37 : f32 to vector<8x8xf32>
    %60 = arith.addf %59, %58 : vector<8x8xf32>
    %61 = arith.divf %59, %60 : vector<8x8xf32>
    %62 = tpu.transpose %61, [1, 0] : vector<8x8xf32> -> vector<8x8xf32>
    %c0_38 = arith.constant 0 : index
    %c0_39 = arith.constant 0 : index
    %63 = vector.load %arg15[%c0_38, %c0_39] : memref<8x8xf32, #tpu.memory_space<vmem>>, vector<8x8xf32>
    tpu.vector_store %arg15[%c0_38, %c0_39], %62 {strides = array<i32>} : memref<8x8xf32, #tpu.memory_space<vmem>>, vector<8x8xf32>,
    %c0_40 = arith.constant 0 : index
    %c0_41 = arith.constant 0 : index
    %64 = vector.load %arg11[%c0_40, %c0_41] : memref<8x8xf32, #tpu.memory_space<vmem>>, vector<8x8xf32>
    %cst_42 = arith.constant dense<0.000000e+00> : vector<8x8xf32>
    %65 = tpu.matmul %62, %64, %cst_42 {dimension_numbers = #tpu.dot_dimension_numbers<[1], [0], [0], [1], [0, 0, 1, 1], [], []>} : vector<8x8xf32>, vector<8x8xf32>, vector<8x8xf32> -> vector<8x8xf32>
    %c0_43 = arith.constant 0 : index
    %c0_44 = arith.constant 0 : index
    %66 = vector.load %arg12[%c0_43, %c0_44] : memref<1x8xf32, #tpu.memory_space<vmem>>, vector<1x8xf32>
    %67 = vector.broadcast %66 : vector<1x8xf32> to vector<8x8xf32>
    %68 = arith.addf %65, %67 : vector<8x8xf32>
    %69 = math.tanh %68 : vector<8x8xf32>
    %c0_45 = arith.constant 0 : index
    %c0_46 = arith.constant 0 : index
    %70 = vector.load %arg13[%c0_45, %c0_46] : memref<8x2xf32, #tpu.memory_space<vmem>>, vector<8x2xf32>
    %cst_47 = arith.constant dense<0.000000e+00> : vector<8x2xf32>
    %71 = tpu.matmul %69, %70, %cst_47 {dimension_numbers = #tpu.dot_dimension_numbers<[1], [0], [0], [1], [0, 0, 1, 1], [], []>} : vector<8x8xf32>, vector<8x2xf32>, vector<8x2xf32> -> vector<8x2xf32>
    %c0_48 = arith.constant 0 : index
    %c0_49 = arith.constant 0 : index
    %72 = vector.load %arg14[%c0_48, %c0_49] : memref<1x2xf32, #tpu.memory_space<vmem>>, vector<1x2xf32>
    %73 = vector.broadcast %72 : vector<1x2xf32> to vector<8x2xf32>
    %74 = arith.addf %71, %73 : vector<8x2xf32>
    %c0_50 = arith.constant 0 : index
    %c0_51 = arith.constant 0 : index
    %75 = vector.load %arg16[%c0_50, %c0_51] : memref<8x2xf32, #tpu.memory_space<vmem>>, vector<8x2xf32>
    tpu.vector_store %arg16[%c0_50, %c0_51], %74 {strides = array<i32>} : memref<8x2xf32, #tpu.memory_space<vmem>>, vector<8x2xf32>,
    return
  }
  func.func @transform_0(%arg0: i32) -> (i32, i32, i32) {
    %c0_i32 = arith.constant 0 : i32
    %c0_i32_0 = arith.constant 0 : i32
    %c0_i32_1 = arith.constant 0 : i32
    return %c0_i32, %arg0, %c0_i32_0 : i32, i32, i32
  }
  func.func @transform_1(%arg0: i32) -> (i32, i32, i32) {
    %c0_i32 = arith.constant 0 : i32
    %c0_i32_0 = arith.constant 0 : i32
    %c0_i32_1 = arith.constant 0 : i32
    return %c0_i32, %arg0, %c0_i32_0 : i32, i32, i32
  }
  func.func @transform_2(%arg0: i32) -> (i32, i32) {
    %c0_i32 = arith.constant 0 : i32
    %c0_i32_0 = arith.constant 0 : i32
    %c0_i32_1 = arith.constant 0 : i32
    return %c0_i32, %c0_i32_0 : i32, i32
  }
  func.func @transform_3(%arg0: i32) -> (i32, i32) {
    %c0_i32 = arith.constant 0 : i32
    %c0_i32_0 = arith.constant 0 : i32
    %c0_i32_1 = arith.constant 0 : i32
    return %c0_i32, %c0_i32_0 : i32, i32
  }
  func.func @transform_4(%arg0: i32) -> (i32, i32) {
    %c0_i32 = arith.constant 0 : i32
    %c0_i32_0 = arith.constant 0 : i32
    %c0_i32_1 = arith.constant 0 : i32
    return %c0_i32, %c0_i32_0 : i32, i32
  }
  func.func @transform_5(%arg0: i32) -> (i32, i32) {
    %c0_i32 = arith.constant 0 : i32
    %c0_i32_0 = arith.constant 0 : i32
    %c0_i32_1 = arith.constant 0 : i32
    return %c0_i32, %c0_i32_0 : i32, i32
  }
  func.func @transform_6(%arg0: i32) -> (i32, i32) {
    %c0_i32 = arith.constant 0 : i32
    %c0_i32_0 = arith.constant 0 : i32
    %c0_i32_1 = arith.constant 0 : i32
    return %c0_i32, %c0_i32_0 : i32, i32
  }
  func.func @transform_7(%arg0: i32) -> (i32, i32) {
    %c0_i32 = arith.constant 0 : i32
    %c0_i32_0 = arith.constant 0 : i32
    %c0_i32_1 = arith.constant 0 : i32
    return %c0_i32, %c0_i32_0 : i32, i32
  }
  func.func @transform_8(%arg0: i32) -> (i32, i32) {
    %c0_i32 = arith.constant 0 : i32
    %c0_i32_0 = arith.constant 0 : i32
    %c0_i32_1 = arith.constant 0 : i32
    return %c0_i32, %c0_i32_0 : i32, i32
  }
  func.func @transform_9(%arg0: i32) -> (i32, i32) {
    %c0_i32 = arith.constant 0 : i32
    %c0_i32_0 = arith.constant 0 : i32
    %c0_i32_1 = arith.constant 0 : i32
    return %c0_i32, %c0_i32_0 : i32, i32
  }
  func.func @transform_10(%arg0: i32) -> (i32, i32) {
    %c0_i32 = arith.constant 0 : i32
    %c0_i32_0 = arith.constant 0 : i32
    %c0_i32_1 = arith.constant 0 : i32
    return %c0_i32, %c0_i32_0 : i32, i32
  }
  func.func @transform_11(%arg0: i32) -> (i32, i32) {
    %c0_i32 = arith.constant 0 : i32
    %c0_i32_0 = arith.constant 0 : i32
    %c0_i32_1 = arith.constant 0 : i32
    return %c0_i32, %c0_i32_0 : i32, i32
  }
  func.func @transform_12(%arg0: i32) -> (i32, i32) {
    %c0_i32 = arith.constant 0 : i32
    %c0_i32_0 = arith.constant 0 : i32
    %c0_i32_1 = arith.constant 0 : i32
    return %c0_i32, %c0_i32_0 : i32, i32
  }
  func.func @transform_13(%arg0: i32) -> (i32, i32) {
    %c0_i32 = arith.constant 0 : i32
    %c0_i32_0 = arith.constant 0 : i32
    %c0_i32_1 = arith.constant 0 : i32
    return %c0_i32, %c0_i32_0 : i32, i32
  }
  func.func @transform_14(%arg0: i32) -> (i32, i32) {
    %c0_i32 = arith.constant 0 : i32
    %c0_i32_0 = arith.constant 0 : i32
    return %arg0, %c0_i32 : i32, i32
  }
  func.func @transform_15(%arg0: i32) -> (i32, i32) {
    %c0_i32 = arith.constant 0 : i32
    %c0_i32_0 = arith.constant 0 : i32
    return %arg0, %c0_i32 : i32, i32
  }
}

</mosaic_0001>

<bundles_post_ra>
// kernel: video_conv_forward.5
= control target key start
LH: loop header
LB: loop body
LE: loop exit
PB: predicated region body
PF: predicated region fallthrough
CT: control target
= control target key end

     0   :  { %vm59_vm0 = vcmask 130048   ;;  %v537_v25 = vmov 0   ;;  %vm94_vm3 = vcmask 7168   ;;  %vm215_vm12 = vcmask 261120   ;;  %s795_s1 = inlined_call_operand.vmem [shape: f32[6,8,16], index: 1, kind: input, shape index: {}]   ;;  %s796_s3 = inlined_call_operand.vmem [shape: f32[1,16], index: 3, kind: input, shape index: {}]   ;;  %s797_s4 = inlined_call_operand.<no memory space> [shape: f32[1,1], index: 4, kind: input, shape index: {}]   ;;  %s798_s0 = inlined_call_operand.vmem [shape: s32[8,1], index: 0, kind: input, shape index: {}]   ;;  %s799_s7 = inlined_call_operand.vmem [shape: f32[32,16], index: 7, kind: input, shape index: {}]   ;;  %s800_s5 = inlined_call_operand.vmem [shape: f32[32,16], index: 5, kind: input, shape index: {}]   ;;  %s801_s2 = inlined_call_operand.vmem [shape: f32[8,8,32], index: 2, kind: input, shape index: {}]   ;;  %s802_s6 = inlined_call_operand.vmem [shape: f32[16,16], index: 6, kind: input, shape index: {}]   ;;  %s803_s8 = inlined_call_operand.vmem [shape: f32[1,16], index: 8, kind: input, shape index: {}]   ;;  %s804_s10 = inlined_call_operand.vmem [shape: f32[8,16], index: 10, kind: output, shape index: {1}]   ;;  %s805_s9 = inlined_call_operand.vmem [shape: f32[8,8,16], index: 9, kind: output, shape index: {0}]  }
   0x1   :  { %v596_v0 = vld [vmem:[%s795_s1 + $0x20] sm:$0xff]  ;;  %v16_v2 = vstv %s797_s4  ;;  %v607_v3 = vld [vmem:[%s795_s1 + $0x10] sm:$0xff]  ;;  %v620_v8 = vld [vmem:[%s795_s1 + $0x28] sm:$0xff]  ;;  %487 = vset.pattern.permute.xlu2 %v537_v25  ;;  %486 = vset.pattern.permute.xlu1 %v537_v25 }
   0x2   :  { %v488_v1 = vld [vmem:[%s796_s3] ss:$0 sm:$0xff]  ;;  %17 = vst [vmem:[#allocation2] sm:$0x1] %v16_v2  ;;  %v625_v9 = vld [vmem:[%s795_s1 + $0x18] sm:$0xff]  ;;  %v633_v13 = vld [vmem:[%s795_s1 + $0x8] sm:$0xff]  ;;  %485 = vset.pattern.permute.xlu0 %v537_v25 }
   0x3   :  { %v612_v4 = vld [vmem:[%s795_s1] sm:$0xff]  ;;  %v57_v5 = vmul.f32 %v488_v1, %v596_v0  ;;  %v55_v6 = vmul.f32 %v488_v1, %v607_v3  ;;  %v58_v14 = vmul.f32 %v488_v1, %v620_v8  ;;  %v56_v15 = vmul.f32 %v488_v1, %v625_v9 }
   0x4   :  { %v53_v7 = vmul.f32 %v488_v1, %v612_v4  ;;  %v54_v16 = vmul.f32 %v488_v1, %v633_v13  ;;  %v42_v24 = vld [vmem:[%s798_s0] sm:$0xff] }
   0x5   :  { %v72_v10 = vsel %vm59_vm0, %v57_v5, 0.0  ;;  %v66_v11 = vsel %vm59_vm0, %v55_v6, 0.0  ;;  %v75_v17 = vsel %vm59_vm0, %v58_v14, 0.0  ;;  %v69_v18 = vsel %vm59_vm0, %v56_v15, 0.0 }
   0x6   :  { %v60_v12 = vsel %vm59_vm0, %v53_v7, 0.0  ;;  %73 = vadd.xlane.f32.xlu1 %v72_v10  ;;  %67 = vadd.xlane.f32.xlu2 %v66_v11  ;;  %v63_v19 = vsel %vm59_vm0, %v54_v16, 0.0  ;;  %vm47_vm1 = vcmp.gt.s32.totalorder %v42_v24, 4  ;;  %vm43_vm2 = vcmp.gt.s32.totalorder %v42_v24, 0 }
   0x7   :  { %61 = vadd.xlane.f32.xlu0 %v60_v12  ;;  %vm48_vm4 = vcmp.gt.s32.totalorder %v42_v24, 5  ;;  %vm46_vm5 = vcmp.gt.s32.totalorder %v42_v24, 3  ;;  %vm45_vm6 = vcmp.gt.s32.totalorder %v42_v24, 2  ;;  %vm44_vm7 = vcmp.gt.s32.totalorder %v42_v24, 1 }
   0x9   :  { %v489_v20 = vld [vmem:[#allocation2] ss:$0 sm:$0xff] }
   0xe   :  { %76 = vadd.xlane.f32.xlu1 %v75_v17  ;;  %70 = vadd.xlane.f32.xlu2 %v69_v18 }
   0xf   :  { %64 = vadd.xlane.f32.xlu0 %v63_v19 }
  0x79   :  { %v74_v21 = vpop.xlane.xlu1 %73  ;;  %v68_v22 = vpop.xlane.xlu2 %67 }
  0x7a   :  { %v62_v23 = vpop.xlane.xlu0 %61  ;;  %v86_v26 = vadd.f32 %v489_v20, %v74_v21  ;;  %v84_v29 = vadd.f32 %v489_v20, %v68_v22 }
  0x7b   :  { %v82_v27 = vadd.f32 %v489_v20, %v62_v23 }
  0x7c   :  { %v92_v28 = vsel %vm47_vm1, %v86_v26, -1e+10  ;;  %v90_v41 = vsel %vm45_vm6, %v84_v29, -1e+10 }
  0x7d   :  { %v88_v30 = vsel %vm43_vm2, %v82_v27, -1e+10  ;;  %v99_v37 = vsel %vm94_vm3, %v92_v28, -inf  ;;  %v97_v48 = vsel %vm94_vm3, %v90_v41, -inf }
  0x7e   :  { %v95_v38 = vsel %vm94_vm3, %v88_v30, -inf }
  0x7f   :  { %v100_v46 = vmax.f32 %v95_v38, %v99_v37 }
  0x81   :  { %v77_v31 = vpop.xlane.xlu1 %76  ;;  %v71_v32 = vpop.xlane.xlu2 %70 }
  0x82   :  { %v87_v33 = vadd.f32 %v489_v20, %v77_v31  ;;  %v85_v34 = vadd.f32 %v489_v20, %v71_v32  ;;  %v65_v35 = vpop.xlane.xlu0 %64 }
  0x83   :  { %v83_v36 = vadd.f32 %v489_v20, %v65_v35 }
  0x84   :  { %v93_v39 = vsel %vm48_vm4, %v87_v33, -1e+10  ;;  %v91_v40 = vsel %vm46_vm5, %v85_v34, -1e+10 }
  0x85   :  { %v101_v42 = vsel %vm94_vm3, %v93_v39, -inf  ;;  %v89_v43 = vsel %vm44_vm7, %v83_v36, -1e+10  ;;  %v98_v44 = vsel %vm94_vm3, %v91_v40, -inf }
  0x86   :  { %v96_v45 = vsel %vm94_vm3, %v89_v43, -inf  ;;  %v104_v49 = vmax.f32 %v97_v48, %v98_v44  ;;  %v212_v44 = vld [vmem:[%s800_s5 + $0x8] sm:$0xff]  ;;  %v211_v48 = vld [vmem:[%s800_s5] sm:$0xff] }
  0x87   :  { %v102_v47 = vmax.f32 %v96_v45, %v101_v42  ;;  %v213_v42 = vld [vmem:[%s800_s5 + $0x10] sm:$0xff]  ;;  %v281_v45 = vld [vmem:[%s799_s7] sm:$0xff] }
  0x89   :  { %v103_v50 = vmax.f32 %v100_v46, %v102_v47  ;;  %v208_v46 = vld [vmem:[%s801_s2 + $0x28] sm:$0xff] }
  0x8a   :  { %v331_v47 = vld [vmem:[%s802_s6 + $0x8] sm:$0xff] }
  0x8b   :  { %v105_v51 = vmax.f32 %v103_v50, %v104_v49  ;;  %v203_v49 = vld [vmem:[%s801_s2] sm:$0xff]  ;;  %v209_v50 = vld [vmem:[%s801_s2 + $0x30] sm:$0xff] }
  0x8d   :  { %v106_v52 = vsub.f32 %v88_v30, %v105_v51  ;;  %v107_v53 = vsub.f32 %v89_v43, %v105_v51  ;;  %v109_v54 = vsub.f32 %v91_v40, %v105_v51  ;;  %v108_v55 = vsub.f32 %v90_v41, %v105_v51  ;;  %v214_v40 = vld [vmem:[%s800_s5 + $0x18] sm:$0xff]  ;;  %v283_v41 = vld [vmem:[%s799_s7 + $0x10] sm:$0xff]  ;;  %v282_v43 = vld [vmem:[%s799_s7 + $0x8] sm:$0xff] }
  0x8e   :  { %v110_v58 = vsub.f32 %v92_v28, %v105_v51  ;;  %v111_v60 = vsub.f32 %v93_v39, %v105_v51  ;;  %v284_v39 = vld [vmem:[%s799_s7 + $0x18] sm:$0xff]  ;;  %252 = vmatpush.msra.mxu0 %v214_v40  ;;  %476 = vmatpush.msra.mxu3 %v214_v40  ;;  %v204_v51 = vld [vmem:[%s801_s2 + $0x8] sm:$0xff] }
  0x8f   :  { %v112_v56 = vmul.f32 1.442695, %v106_v52  ;;  %v114_v57 = vmul.f32 1.442695, %v107_v53  ;;  %v118_v59 = vmul.f32 1.442695, %v109_v54  ;;  %480 = vmatpush.msra.mxu2 %v284_v39  ;;  %301 = vmatpush.msra.mxu1 %v284_v39 }
  0x90   :  { %v116_v61 = vmul.f32 1.442695, %v108_v55  ;;  %v120_v62 = vmul.f32 1.442695, %v110_v58  ;;  %v122_v63 = vmul.f32 1.442695, %v111_v60  ;;  %253 = vmatpush.msra.mxu0 %v213_v42  ;;  %477 = vmatpush.msra.mxu3 %v213_v42 }
  0x91   :  { %491 = vpow2.f32 %v112_v56  ;;  %481 = vmatpush.msra.mxu2 %v283_v41  ;;  %302 = vmatpush.msra.mxu1 %v283_v41  ;;  %v330_v52 = vld [vmem:[%s802_s6] sm:$0xff]  ;;  %v210_v53 = vld [vmem:[%s801_s2 + $0x38] sm:$0xff]  ;;  %v205_v54 = vld [vmem:[%s801_s2 + $0x10] sm:$0xff] }
  0x92   :  { %493 = vpow2.f32 %v114_v57  ;;  %254 = vmatpush.msra.mxu0 %v212_v44  ;;  %478 = vmatpush.msra.mxu3 %v212_v44  ;;  %v206_v55 = vld [vmem:[%s801_s2 + $0x18] sm:$0xff]  ;;  %v207_v57 = vld [vmem:[%s801_s2 + $0x20] sm:$0xff] }
  0x93   :  { %495 = vpow2.f32 %v118_v59  ;;  %482 = vmatpush.msra.mxu2 %v282_v43  ;;  %303 = vmatpush.msra.mxu1 %v282_v43 }
  0x94   :  { %497 = vpow2.f32 %v116_v61  ;;  %255 = vmatpush.msra.mxu0 %v211_v48  ;;  %479 = vmatpush.msra.mxu3 %v211_v48 }
  0x95   :  { %499 = vpow2.f32 %v120_v62  ;;  %483 = vmatpush.msra.mxu2 %v281_v45  ;;  %304 = vmatpush.msra.mxu1 %v281_v45 }
  0x96   :  { %501 = vpow2.f32 %v122_v63  ;;  %472 = vmatmul.msk.f32.vlgmr.msra.gmra.mxu2 %vm215_vm12, %v208_v46  ;;  %459 = vmatmul.msk.f32.vlgmr.msra.gmra.mxu0 %vm215_vm12, %v203_v49 }
  0x97   :  { %v492_v1 = vpop.eup %491  ;;  %349 = vmatpush.msrb.mxu2 %v331_v47  ;;  %464 = vmatmul.msk.f32.vlgmr.msra.gmra.mxu3 %vm215_vm12, %v208_v46 }
  0x98   :  { %v494_v2 = vpop.eup %493  ;;  %v124_v5 = vsel %vm94_vm3, %v492_v1, 0.0  ;;  %467 = vmatmul.msk.f32.vlgmr.msra.gmra.mxu1 %vm215_vm12, %v203_v49 }
  0x99   :  { %v125_v6 = vsel %vm94_vm3, %v494_v2, 0.0  ;;  %v496_v10 = vpop.eup %495  ;;  %350 = vmatpush.msrb.mxu2 %v330_v52 }
  0x9a   :  { %v126_v7 = vadd.f32 %v125_v6, %v124_v5  ;;  %v498_v11 = vpop.eup %497  ;;  %v129_v16 = vsel %vm94_vm3, %v496_v10, 0.0 }
  0x9b   :  { %v127_v12 = vsel %vm94_vm3, %v498_v11, 0.0  ;;  %v500_v14 = vpop.eup %499 }
  0x9c   :  { %v128_v15 = vadd.f32 %v127_v12, %v126_v7  ;;  %v502_v17 = vpop.eup %501  ;;  %v131_v19 = vsel %vm94_vm3, %v500_v14, 0.0 }
  0x9d   :  { %v133_v21 = vsel %vm94_vm3, %v502_v17, 0.0 }
  0x9e   :  { %v130_v18 = vadd.f32 %v129_v16, %v128_v15  ;;  %473 = vmatmul.msk.f32.gmra.mxu2 %vm215_vm12, %v209_v50  ;;  %460 = vmatmul.msk.f32.gmra.mxu0 %vm215_vm12, %v204_v51 }
  0x9f   :  { %465 = vmatmul.msk.f32.gmra.mxu3 %vm215_vm12, %v209_v50 }
  0xa0   :  { %v132_v20 = vadd.f32 %v131_v19, %v130_v18  ;;  %468 = vmatmul.msk.f32.gmra.mxu1 %vm215_vm12, %v204_v51 }
  0xa2   :  { %v134_v22 = vadd.f32 %v133_v21, %v132_v20 }
  0xa4   :  { %503 = vrcp.f32 %v134_v22  ;;  %v146_v26 = vand.u32 2147483648, %v134_v22  ;;  %v144_v28 = vand.u32 2147483647, %v134_v22  ;;  %vm140_vm9 = vweird.f32 %v134_v22 }
  0xa6   :  { %v147_v30 = vor.u32 1.1754944e-38, %v146_v26  ;;  %vm145_vm11 = vcmp.eq.f32.partialorder %v144_v28, 8.507059e+37  ;;  %474 = vmatmul.msk.f32.gmra.mxu2 %vm215_vm12, %v210_v53  ;;  %461 = vmatmul.msk.f32.gmra.mxu0 %vm215_vm12, %v205_v54 }
  0xa7   :  { %466 = vmatmul.msk.f32.gmra.mxu3 %vm215_vm12, %v210_v53 }
  0xa8   :  { %469 = vmatmul.msk.f32.gmra.mxu1 %vm215_vm12, %v205_v54 }
  0xaa   :  { %v504_v23 = vpop.eup %503 }
  0xab   :  { %v136_v24 = vmul.f32 %v504_v23, %v134_v22  ;;  %vm141_vm8 = vweird.f32 %v504_v23 }
  0xac   :  { %vm142_vm10 = vmor %vm140_vm9, %vm141_vm8 }
  0xad   :  { %v137_v25 = vsub.f32 1.0, %v136_v24 }
  0xae   :  { %462 = vmatmul.msk.f32.gmra.mxu0 %vm215_vm12, %v206_v55 }
  0xaf   :  { %v138_v27 = vmul.f32 %v504_v23, %v137_v25 }
  0xb0   :  { %470 = vmatmul.msk.f32.gmra.mxu1 %vm215_vm12, %v206_v55 }
  0xb1   :  { %v139_v29 = vadd.f32 %v504_v23, %v138_v27 }
  0xb3   :  { %v143_v31 = vsel %vm142_vm10, %v504_v23, %v139_v29 }
  0xb4   :  { %v148_v32 = vsel %vm145_vm11, %v147_v30, %v143_v31 }
  0xb5   :  { %v151_v33 = vmul.f32 %v498_v11, %v148_v32  ;;  %v150_v34 = vmul.f32 %v494_v2, %v148_v32  ;;  %v149_v35 = vmul.f32 %v492_v1, %v148_v32  ;;  %v152_v36 = vmul.f32 %v496_v10, %v148_v32 }
  0xb6   :  { %v153_v37 = vmul.f32 %v500_v14, %v148_v32  ;;  %v154_v38 = vmul.f32 %v502_v17, %v148_v32  ;;  %463 = vmatmul.msk.f32.gmra.mxu0 %vm215_vm12, %v207_v57 }
  0xb7   :  { %167 = vperm.xlu2 %487, %v151_v33   ;;  %162 = vperm.xlu1 %486, %v150_v34  }
  0xb8   :  { %157 = vperm.xlu0 %485, %v149_v35   ;;  %471 = vmatmul.msk.f32.gmra.mxu1 %vm215_vm12, %v207_v57 }
  0xbf   :  { %172 = vperm.xlu2 %487, %v152_v36   ;;  %177 = vperm.xlu1 %486, %v153_v37  }
  0xc7   :  { %182 = vperm.xlu2 %487, %v154_v38  }
 0x111   :  { %v168_v56 = vpop.permute.xlu2 %167 }
 0x112   :  { %v187_v62 = vmul.f32 %v168_v56, %v607_v3 }
 0x114   :  { %v194_v7 = vsel %vm59_vm0, %v187_v62, 0.0 }
 0x119   :  { %v173_v58 = vpop.permute.xlu2 %172  ;;  %v743_v19 = vpop.f32.mrf.mxu2 }
 0x11a   :  { %v188_v5 = vmul.f32 %v173_v58, %v625_v9  ;;  %v257_v9 = vpop.f32.mrf.mxu0  ;;  %v272_v22 = vpop.f32.mrf.mxu3 }
 0x11c   :  { %v196_v14 = vsel %vm59_vm0, %v188_v5, 0.0 }
 0x121   :  { %v183_v10 = vpop.permute.xlu2 %182  ;;  %v745_v20 = vpop.f32.mrf.mxu2 }
 0x122   :  { %v275_v37 = vpop.f32.mrf.mxu3 }
 0x129   :  { %v163_v59 = vpop.permute.xlu1 %162  ;;  %v747_v21 = vpop.f32.mrf.mxu2 }
 0x12a   :  { %v186_v60 = vmul.f32 %v163_v59, %v633_v13  ;;  %v158_v61 = vpop.permute.xlu0 %157  ;;  %v190_v13 = vmul.f32 %v183_v10, %v620_v8  ;;  %v260_v8 = vpop.f32.mrf.mxu0 }
 0x12b   :  { %v185_v63 = vmul.f32 %v158_v61, %v612_v4  ;;  %v278_v53 = vpop.f32.mrf.mxu3  ;;  %v306_v59 = vpop.f32.mrf.mxu1 }
 0x12c   :  { %v192_v1 = vsel %vm59_vm0, %v186_v60, 0.0  ;;  %v200_v17 = vsel %vm59_vm0, %v190_v13, 0.0 }
 0x12d   :  { %v191_v2 = vsel %vm59_vm0, %v185_v63, 0.0 }
 0x12e   :  { %v193_v6 = vadd.f32 %v192_v1, %v191_v2 }
 0x130   :  { %v195_v11 = vadd.f32 %v194_v7, %v193_v6 }
 0x131   :  { %v178_v12 = vpop.permute.xlu1 %177 }
 0x132   :  { %v189_v3 = vmul.f32 %v178_v12, %v596_v0  ;;  %v197_v15 = vadd.f32 %v196_v14, %v195_v11  ;;  %v263_v0 = vpop.f32.mrf.mxu0 }
 0x133   :  { %v309_v60 = vpop.f32.mrf.mxu1 }
 0x134   :  { %v198_v4 = vsel %vm59_vm0, %v189_v3, 0.0 }
 0x135   :  { %v199_v16 = vadd.f32 %v198_v4, %v197_v15  ;;  %v490_v15 = vld [vmem:[%s803_s8] ss:$0 sm:$0xff] }
 0x137   :  { %v201_v18 = vadd.f32 %v200_v17, %v199_v16  ;;  %v307_v16 = vadd.f32 %v490_v15, %v306_v59 }
 0x139   :  { %202 = vst.msk [vmem:[%s804_s10] sm:$0xff] %vm59_vm0, %v201_v18  ;;  %475 = vmatmul.msk.f32.vlgmr.msrb.gmra.mxu2 %vm59_vm0, %v201_v18 }
 0x13a   :  { %v266_v23 = vpop.f32.mrf.mxu0 }
 0x13b   :  { %v312_v62 = vpop.f32.mrf.mxu1 }
 0x13c   :  { %v313_v17 = vadd.f32 %v490_v15, %v312_v62 }
 0x142   :  { %v269_v41 = vpop.f32.mrf.mxu0 }
 0x143   :  { %v315_v14 = vpop.f32.mrf.mxu1 }
 0x1bc   :  { %v352_v24 = vpop.f32.mrf.mxu2 }
 0x1bd   :  { %v363_v25 = vperm.slane %v352_v24, 0  ;;  %v357_v26 = vrot.slane %v352_v24, 2  ;;  %v356_v27 = vrot.slane %v352_v24, 1  ;;  %v358_v28 = vrot.slane %v352_v24, 3 }
 0x1be   :  { %v359_v29 = vrot.slane %v352_v24, 4  ;;  %v360_v33 = vrot.slane %v352_v24, 5  ;;  %v361_v45 = vrot.slane %v352_v24, 6  ;;  %v362_v47 = vrot.slane %v352_v24, 7 }
 0x1bf   :  { %v379_v30 = vmul.f32 %v363_v25, %v257_v9  ;;  %v365_v31 = vperm.slane %v357_v26, 0  ;;  %v364_v32 = vperm.slane %v356_v27, 0  ;;  %v366_v36 = vperm.slane %v358_v28, 0 }
 0x1c0   :  { %v367_v39 = vperm.slane %v359_v29, 0  ;;  %v368_v43 = vperm.slane %v360_v33, 0  ;;  %v369_v50 = vperm.slane %v361_v45, 0  ;;  %v370_v51 = vperm.slane %v362_v47, 0 }
 0x1c1   :  { %v387_v34 = vsel %vm59_vm0, %v379_v30, 0.0  ;;  %v381_v35 = vmul.f32 %v365_v31, %v263_v0  ;;  %v380_v38 = vmul.f32 %v364_v32, %v260_v8  ;;  %v382_v44 = vmul.f32 %v366_v36, %v266_v23  ;;  %v318_v31 = vpop.f32.mrf.mxu1 }
 0x1c2   :  { %388 = vadd.xlane.f32.xlu1 %v387_v34  ;;  %v383_v46 = vmul.f32 %v367_v39, %v269_v41  ;;  %v384_v48 = vmul.f32 %v368_v43, %v272_v22  ;;  %v385_v55 = vmul.f32 %v369_v50, %v275_v37  ;;  %v386_v56 = vmul.f32 %v370_v51, %v278_v53 }
 0x1c3   :  { %v393_v40 = vsel %vm59_vm0, %v381_v35, 0.0  ;;  %v390_v42 = vsel %vm59_vm0, %v380_v38, 0.0  ;;  %v396_v49 = vsel %vm59_vm0, %v382_v44, 0.0  ;;  %v310_v24 = vadd.f32 %v490_v15, %v309_v60 }
 0x1c4   :  { %394 = vadd.xlane.f32.xlu2 %v393_v40  ;;  %391 = vadd.xlane.f32.xlu0 %v390_v42  ;;  %v399_v52 = vsel %vm59_vm0, %v383_v46, 0.0  ;;  %v402_v54 = vsel %vm59_vm0, %v384_v48, 0.0  ;;  %v405_v57 = vsel %vm59_vm0, %v385_v55, 0.0  ;;  %v408_v58 = vsel %vm59_vm0, %v386_v56, 0.0 }
 0x1c5   :  { %v316_v33 = vadd.f32 %v490_v15, %v315_v14  ;;  %v319_v35 = vadd.f32 %v490_v15, %v318_v31  ;;  %v322_v43 = vadd.f32 %v490_v15, %v743_v19  ;;  %v325_v46 = vadd.f32 %v490_v15, %v745_v20 }
 0x1c6   :  { %v328_v48 = vadd.f32 %v490_v15, %v747_v21 }
 0x1ca   :  { %397 = vadd.xlane.f32.xlu1 %v396_v49 }
 0x1cc   :  { %400 = vadd.xlane.f32.xlu2 %v399_v52  ;;  %403 = vadd.xlane.f32.xlu0 %v402_v54 }
 0x1d2   :  { %406 = vadd.xlane.f32.xlu1 %v405_v57 }
 0x1d4   :  { %409 = vadd.xlane.f32.xlu2 %v408_v58 }
 0x235   :  { %v389_v61 = vpop.xlane.xlu1 %388 }
 0x236   :  { %505 = vtanh.f32 %v389_v61 }
 0x237   :  { %v395_v63 = vpop.xlane.xlu2 %394  ;;  %v392_v1 = vpop.xlane.xlu0 %391 }
 0x238   :  { %507 = vtanh.f32 %v395_v63 }
 0x239   :  { %509 = vtanh.f32 %v392_v1 }
 0x23c   :  { %v506_v2 = vpop.eup %505 }
 0x23d   :  { %v419_v5 = vmul.f32 1.442695, %v506_v2  ;;  %v398_v6 = vpop.xlane.xlu1 %397 }
 0x23e   :  { %v508_v7 = vpop.eup %507  ;;  %511 = vtanh.f32 %v398_v6 }
 0x23f   :  { %v510_v10 = vpop.eup %509  ;;  %513 = vpow2.f32 %v419_v5  ;;  %v423_v11 = vmul.f32 1.442695, %v508_v7  ;;  %v401_v12 = vpop.xlane.xlu2 %400 }
 0x240   :  { %v421_v13 = vmul.f32 1.442695, %v510_v10  ;;  %515 = vtanh.f32 %v401_v12  ;;  %v404_v3 = vpop.xlane.xlu0 %403 }
 0x241   :  { %517 = vpow2.f32 %v423_v11 }
 0x242   :  { %519 = vpow2.f32 %v421_v13 }
 0x243   :  { %521 = vtanh.f32 %v404_v3 }
 0x244   :  { %v512_v4 = vpop.eup %511 }
 0x245   :  { %v514_v18 = vpop.eup %513  ;;  %v425_v9 = vmul.f32 1.442695, %v512_v4  ;;  %v407_v8 = vpop.xlane.xlu1 %406 }
 0x246   :  { %v516_v0 = vpop.eup %515  ;;  %v435_v22 = vmul.f32 %v514_v18, %v307_v16  ;;  %523 = vtanh.f32 %v407_v8 }
 0x247   :  { %v518_v23 = vpop.eup %517  ;;  %525 = vpow2.f32 %v425_v9  ;;  %v427_v25 = vmul.f32 1.442695, %v516_v0  ;;  %v410_v26 = vpop.xlane.xlu2 %409 }
 0x248   :  { %v520_v27 = vpop.eup %519  ;;  %443 = vst.msk [vmem:[%s805_s9] sm:$0xff] %vm59_vm0, %v435_v22  ;;  %v437_v28 = vmul.f32 %v518_v23, %v313_v17  ;;  %527 = vtanh.f32 %v410_v26 }
 0x249   :  { %v522_v29 = vpop.eup %521  ;;  %v436_v30 = vmul.f32 %v520_v27, %v310_v24  ;;  %529 = vpow2.f32 %v427_v25 }
 0x24a   :  { %445 = vst.msk [vmem:[%s805_s9 + $0x10] sm:$0xff] %vm59_vm0, %v437_v28  ;;  %v429_v32 = vmul.f32 1.442695, %v522_v29 }
 0x24b   :  { %444 = vst.msk [vmem:[%s805_s9 + $0x8] sm:$0xff] %vm59_vm0, %v436_v30 }
 0x24c   :  { %v524_v34 = vpop.eup %523  ;;  %531 = vpow2.f32 %v429_v32 }
 0x24d   :  { %v526_v36 = vpop.eup %525  ;;  %v431_v37 = vmul.f32 1.442695, %v524_v34 }
 0x24e   :  { %v528_v38 = vpop.eup %527  ;;  %v438_v39 = vmul.f32 %v526_v36, %v316_v33 }
 0x24f   :  { %v530_v40 = vpop.eup %529  ;;  %533 = vpow2.f32 %v431_v37  ;;  %v433_v41 = vmul.f32 1.442695, %v528_v38 }
 0x250   :  { %446 = vst.msk [vmem:[%s805_s9 + $0x18] sm:$0xff] %vm59_vm0, %v438_v39  ;;  %v439_v42 = vmul.f32 %v530_v40, %v319_v35 }
 0x251   :  { %535 = vpow2.f32 %v433_v41 }
 0x252   :  { %v532_v44 = vpop.eup %531  ;;  %447 = vst.msk [vmem:[%s805_s9 + $0x20] sm:$0xff] %vm59_vm0, %v439_v42 }
 0x253   :  { %v440_v45 = vmul.f32 %v532_v44, %v322_v43 }
 0x255   :  { %v534_v47 = vpop.eup %533  ;;  %448 = vst.msk [vmem:[%s805_s9 + $0x28] sm:$0xff] %vm59_vm0, %v440_v45 }
 0x256   :  { %v441_v49 = vmul.f32 %v534_v47, %v325_v46 }
 0x257   :  { %v536_v19 = vpop.eup %535 }
 0x258   :  { %449 = vst.msk [vmem:[%s805_s9 + $0x30] sm:$0xff] %vm59_vm0, %v441_v49  ;;  %v442_v50 = vmul.f32 %v536_v19, %v328_v48 }
 0x25a   :  { %450 = vst.msk [vmem:[%s805_s9 + $0x38] sm:$0xff] %vm59_vm0, %v442_v50 }

// kernel: video_conv_forward.4
= control target key start
LH: loop header
LB: loop body
LE: loop exit
PB: predicated region body
PF: predicated region fallthrough
CT: control target
= control target key end

     0   :  { %vm18_vm0 = vcmask 130048   ;;  %v617_v2 = vmov 0.0   ;;  %s618_s17 = smov 80   ;;  %s619_s18 = smov 16   ;;  %v620_v14 = vmov 0   ;;  %s739_s2 = inlined_call_operand.vmem [shape: f32[1,16,64], index: 2, kind: input, shape index: {}]   ;;  %s740_s1 = inlined_call_operand.vmem [shape: bf16[1,6,8,64], index: 1, kind: input, shape index: {}]   ;;  %s741_s0 = inlined_call_operand.vmem [shape: s32[8,1], index: 0, kind: input, shape index: {}]   ;;  %s742_s3 = inlined_call_operand.vmem [shape: f32[6,8,16], index: 3, kind: output, shape index: {}]  }
   0x1   :  { %v23_v0 = vld [vmem:[%s739_s2 + $0x8] sm:$0xff]  ;;  %v22_v1 = vld [vmem:[%s739_s2] sm:$0xff]  ;;  %19 = vst.msk [vmem:[#allocation2] sm:$0xff] %vm18_vm0, %v617_v2  ;;  %566 = vset.pattern.permute.xlu1 %v620_v14  ;;  %567 = vset.pattern.permute.xlu2 %v620_v14 }
   0x2   :  { %47 = vmatpush.msra.mxu0 %v23_v0  ;;  %20 = vst.msk [vmem:[#allocation3] sm:$0xff] %vm18_vm0, %v617_v2  ;;  %131 = vmatpush.msra.mxu1 %v23_v0  ;;  %v27_v4 = vld [vmem:[%s740_s1] sm:$0xf]  ;;  %v530_v39 = vld [vmem:[%s740_s1 + $0x4] sm:$0xff]  }
   0x3   :  { %212 = vmatpush.msra.mxu2 %v23_v0  ;;  %293 = vmatpush.msra.mxu3 %v23_v0  ;;  %v28_v5 = vunpack.c.l.bf16 %v27_v4  ;;  %v662_v26 = vld [vmem:[%s741_s0] sm:$0xff]  ;;  %s621_s0 = smov 96   ;;  %v114_v40 = vunpack.c.l.bf16 %v530_v39 }
   0x4   :  { %48 = vmatpush.msra.mxu0 %v22_v1  ;;  %132 = vmatpush.msra.mxu1 %v22_v1  ;;  %vm527_vm5 = vcmp.gt.s32.totalorder %v662_v26, 0  ;;  %vm532_vm6 = vcmp.gt.s32.totalorder %v662_v26, 1  ;;  %vm538_vm11 = vcmp.gt.s32.totalorder %v662_v26, 2 }
   0x5   :  { %213 = vmatpush.msra.mxu2 %v22_v1  ;;  %294 = vmatpush.msra.mxu3 %v22_v1  ;;  %v528_v27 = vsel %vm527_vm5, 1.0, %v617_v2  ;;  %v533_v47 = vsel %vm532_vm6, 1.0, %v617_v2 }
   0x6   :  { %374 = vmatpush.msrb.mxu0 %v23_v0  ;;  %455 = vmatpush.msrb.mxu1 %v23_v0 }
   0x7   :  { %568 = vset.pattern.permute.xlu0 %v620_v14 }
   0x8   :  { %v24_v3 = vld [vmem:[#allocation2] sm:$0xff]  ;;  %375 = vmatpush.msrb.mxu0 %v22_v1  ;;  %456 = vmatpush.msrb.mxu1 %v22_v1 }
   0x9   :  { %526 = vmatmul.msk.f32.vlgmr.msra.gmra.mxu0 %vm18_vm0, %v24_v3  ;;  %v25_v9 = vld [vmem:[#allocation3] sm:$0xff] }
  0x86   :  { %v50_v6 = vpop.f32.mrf.mxu0 }
  0x87   :  { %v53_v7 = vadd.f32 %v50_v6, %v28_v5  ;;  %v539_v6 = vsel %vm538_vm11, 1.0, %v617_v2  ;;  %vm556_vm11 = vcmp.gt.s32.totalorder %v662_v26, 5 }
  0x89   :  { %569 = vtanh.f32 %v53_v7  ;;  %v529_v10 = vmul.f32 -1.442695, %v53_v7 }
  0x8b   :  { %571 = vpow2.f32 %v529_v10 }
  0x8f   :  { %v570_v8 = vpop.eup %569 }
  0x90   :  { %84 = vrot.lane.b32.xlu0 %v570_v8, %s618_s17  ;;  %v195_v8 = vunpack.c.h.bf16 %v530_v39 }
  0x91   :  { %v572_v11 = vpop.eup %571 }
  0x92   :  { %v61_v12 = vadd.f32 1.0, %v572_v11 }
  0x94   :  { %573 = vrcp.f32 %v61_v12  ;;  %v73_v19 = vand.u32 2147483648, %v61_v12  ;;  %vm67_vm2 = vweird.f32 %v61_v12  ;;  %v71_v20 = vand.u32 2147483647, %v61_v12 }
  0x96   :  { %v74_v22 = vor.u32 1.1754944e-38, %v73_v19  ;;  %vm72_vm4 = vcmp.eq.f32.partialorder %v71_v20, 8.507059e+37 }
  0x98   :  { %79 = vrot.lane.b32.xlu0 %v25_v9, %s619_s18 }
  0x9a   :  { %v574_v13 = vpop.eup %573 }
  0x9b   :  { %v63_v15 = vmul.f32 %v574_v13, %v61_v12  ;;  %vm68_vm1 = vweird.f32 %v574_v13 }
  0x9c   :  { %vm69_vm3 = vmor %vm67_vm2, %vm68_vm1  ;;  %vm544_vm1 = vcmp.gt.s32.totalorder %v662_v26, 3  ;;  %vm550_vm2 = vcmp.gt.s32.totalorder %v662_v26, 4 }
  0x9d   :  { %v64_v16 = vsub.f32 1.0, %v63_v15  ;;  %v551_v39 = vsel %vm550_vm2, 1.0, %v617_v2 }
  0x9f   :  { %v65_v17 = vmul.f32 %v574_v13, %v64_v16 }
  0xa1   :  { %v66_v18 = vadd.f32 %v574_v13, %v65_v17 }
  0xa3   :  { %v70_v21 = vsel %vm69_vm3, %v574_v13, %v66_v18 }
  0xa4   :  { %v75_v24 = vsel %vm72_vm4, %v74_v22, %v70_v21 }
 0x102   :  { %v85_v23 = vpop.permute.xlu0 %84 }
 0x103   :  { %v87_v25 = vmul.f32 %v85_v23, %v75_v24 }
 0x105   :  { %89 = vrot.lane.b32.xlu1 %v87_v25, %s619_s18 }
 0x10a   :  { %v80_v29 = vpop.permute.xlu0 %79 }
 0x10b   :  { %v82_v30 = vmul.f32 %v80_v29, %v75_v24 }
 0x10d   :  { %95 = vperm.xlu1 %566, %v528_v27  }
 0x177   :  { %v90_v28 = vpop.permute.xlu1 %89 }
 0x178   :  { %v92_v31 = vadd.f32 %v90_v28, %v82_v30 }
 0x17f   :  { %v96_v32 = vpop.permute.xlu1 %95 }
 0x180   :  { %v98_v33 = vmul.f32 %v96_v32, %v92_v31 }
 0x182   :  { %575 = vtanh.f32 %v98_v33 }
 0x188   :  { %v576_v34 = vpop.eup %575 }
 0x189   :  { %101 = vrot.lane.b32.xlu2 %v576_v34, %s619_s18 }
 0x1e3   :  { %v102_v35 = vpop.permute.xlu2 %101 }
 0x1e4   :  { %v104_v36 = vmul.f32 %v102_v35, %v75_v24 }
 0x1e6   :  { %v105_v37 = vmul.f32 %v104_v36, %v96_v32 }
 0x1e8   :  { %107 = vrot.lane.b32.xlu2 %v105_v37, %s621_s0 }
 0x1f0   :  { %175 = vperm.xlu2 %567, %v533_v47  }
 0x242   :  { %v108_v38 = vpop.permute.xlu2 %107 }
 0x243   :  { %110 = vst.msk [vmem:[%s742_s3] sm:$0xff] %vm18_vm0, %v108_v38  ;;  %531 = vmatmul.msk.f32.vlgmr.msra.gmra.mxu1 %vm18_vm0, %v108_v38  ;;  %v545_v38 = vsel %vm544_vm1, 1.0, %v617_v2 }
 0x24a   :  { %v176_v62 = vpop.permute.xlu2 %175 }
 0x2c0   :  { %v134_v41 = vpop.f32.mrf.mxu1 }
 0x2c1   :  { %v137_v42 = vadd.f32 %v134_v41, %v114_v40  ;;  %v542_v40 = vld [vmem:[%s740_s1 + $0xc] sm:$0xff]  }
 0x2c2   :  { %v276_v41 = vunpack.c.l.bf16 %v542_v40 }
 0x2c3   :  { %577 = vtanh.f32 %v137_v42  ;;  %v534_v44 = vmul.f32 -1.442695, %v137_v42 }
 0x2c5   :  { %579 = vpow2.f32 %v534_v44 }
 0x2c9   :  { %v578_v43 = vpop.eup %577 }
 0x2ca   :  { %164 = vrot.lane.b32.xlu0 %v578_v43, %s618_s17 }
 0x2cb   :  { %v580_v45 = vpop.eup %579 }
 0x2cc   :  { %v145_v46 = vadd.f32 1.0, %v580_v45 }
 0x2ce   :  { %581 = vrcp.f32 %v145_v46  ;;  %v157_v53 = vand.u32 2147483648, %v145_v46  ;;  %vm151_vm8 = vweird.f32 %v145_v46  ;;  %v155_v54 = vand.u32 2147483647, %v145_v46 }
 0x2d0   :  { %v158_v56 = vor.u32 1.1754944e-38, %v157_v53  ;;  %vm156_vm10 = vcmp.eq.f32.partialorder %v155_v54, 8.507059e+37 }
 0x2d4   :  { %v582_v48 = vpop.eup %581 }
 0x2d5   :  { %v147_v49 = vmul.f32 %v582_v48, %v145_v46  ;;  %vm152_vm7 = vweird.f32 %v582_v48 }
 0x2d6   :  { %vm153_vm9 = vmor %vm151_vm8, %vm152_vm7 }
 0x2d7   :  { %v148_v50 = vsub.f32 1.0, %v147_v49 }
 0x2d9   :  { %v149_v51 = vmul.f32 %v582_v48, %v148_v50 }
 0x2db   :  { %v150_v52 = vadd.f32 %v582_v48, %v149_v51 }
 0x2dd   :  { %v154_v55 = vsel %vm153_vm9, %v582_v48, %v150_v52 }
 0x2de   :  { %v159_v58 = vsel %vm156_vm10, %v158_v56, %v154_v55 }
 0x2df   :  { %v162_v60 = vmul.f32 %v159_v58, %v98_v33 }
 0x33c   :  { %v165_v57 = vpop.permute.xlu0 %164 }
 0x33d   :  { %v167_v59 = vmul.f32 %v165_v57, %v159_v58 }
 0x33f   :  { %169 = vrot.lane.b32.xlu1 %v167_v59, %s619_s18 }
 0x3b1   :  { %v170_v61 = vpop.permute.xlu1 %169 }
 0x3b2   :  { %v172_v63 = vadd.f32 %v170_v61, %v162_v60 }
 0x3b4   :  { %v178_v0 = vmul.f32 %v176_v62, %v172_v63 }
 0x3b6   :  { %583 = vtanh.f32 %v178_v0 }
 0x3bc   :  { %v584_v1 = vpop.eup %583 }
 0x3bd   :  { %181 = vrot.lane.b32.xlu0 %v584_v1, %s619_s18 }
 0x42f   :  { %v182_v3 = vpop.permute.xlu0 %181 }
 0x430   :  { %v184_v4 = vmul.f32 %v182_v3, %v159_v58 }
 0x432   :  { %v185_v5 = vmul.f32 %v184_v4, %v176_v62 }
 0x434   :  { %187 = vrot.lane.b32.xlu1 %v185_v5, %s621_s0 }
 0x43c   :  { %256 = vperm.xlu1 %566, %v539_v6  }
 0x4a6   :  { %v188_v7 = vpop.permute.xlu1 %187 }
 0x4a7   :  { %535 = vst.msk [vmem:[%s742_s3 + $0x8] sm:$0xff] %vm18_vm0, %v188_v7  ;;  %537 = vmatmul.msk.f32.vlgmr.msra.gmra.mxu2 %vm18_vm0, %v188_v7  ;;  %v357_v7 = vunpack.c.h.bf16 %v542_v40 }
 0x4ae   :  { %v257_v31 = vpop.permute.xlu1 %256 }
 0x52a   :  { %v215_v9 = vpop.f32.mrf.mxu2 }
 0x52b   :  { %v218_v10 = vadd.f32 %v215_v9, %v195_v8 }
 0x52d   :  { %585 = vtanh.f32 %v218_v10  ;;  %v540_v12 = vmul.f32 -1.442695, %v218_v10 }
 0x52f   :  { %587 = vpow2.f32 %v540_v12 }
 0x533   :  { %v586_v11 = vpop.eup %585 }
 0x534   :  { %245 = vrot.lane.b32.xlu2 %v586_v11, %s618_s17 }
 0x535   :  { %v588_v13 = vpop.eup %587 }
 0x536   :  { %v226_v14 = vadd.f32 1.0, %v588_v13 }
 0x538   :  { %589 = vrcp.f32 %v226_v14  ;;  %v238_v20 = vand.u32 2147483648, %v226_v14  ;;  %vm232_vm13 = vweird.f32 %v226_v14  ;;  %v236_v21 = vand.u32 2147483647, %v226_v14 }
 0x53a   :  { %v239_v23 = vor.u32 1.1754944e-38, %v238_v20  ;;  %vm237_vm15 = vcmp.eq.f32.partialorder %v236_v21, 8.507059e+37 }
 0x53e   :  { %v590_v15 = vpop.eup %589 }
 0x53f   :  { %v228_v16 = vmul.f32 %v590_v15, %v226_v14  ;;  %vm233_vm12 = vweird.f32 %v590_v15 }
 0x540   :  { %vm234_vm14 = vmor %vm232_vm13, %vm233_vm12 }
 0x541   :  { %v229_v17 = vsub.f32 1.0, %v228_v16 }
 0x543   :  { %v230_v18 = vmul.f32 %v590_v15, %v229_v17 }
 0x545   :  { %v231_v19 = vadd.f32 %v590_v15, %v230_v18 }
 0x547   :  { %v235_v22 = vsel %vm234_vm14, %v590_v15, %v231_v19 }
 0x548   :  { %v240_v25 = vsel %vm237_vm15, %v239_v23, %v235_v22 }
 0x549   :  { %v243_v28 = vmul.f32 %v240_v25, %v178_v0 }
 0x58e   :  { %v246_v24 = vpop.permute.xlu2 %245 }
 0x58f   :  { %v248_v27 = vmul.f32 %v246_v24, %v240_v25 }
 0x591   :  { %250 = vrot.lane.b32.xlu0 %v248_v27, %s619_s18 }
 0x603   :  { %v251_v29 = vpop.permute.xlu0 %250 }
 0x604   :  { %v253_v30 = vadd.f32 %v251_v29, %v243_v28 }
 0x606   :  { %v259_v32 = vmul.f32 %v257_v31, %v253_v30 }
 0x608   :  { %591 = vtanh.f32 %v259_v32 }
 0x60e   :  { %v592_v33 = vpop.eup %591 }
 0x60f   :  { %262 = vrot.lane.b32.xlu2 %v592_v33, %s619_s18 }
 0x669   :  { %v263_v34 = vpop.permute.xlu2 %262 }
 0x66a   :  { %v265_v35 = vmul.f32 %v263_v34, %v240_v25 }
 0x66c   :  { %v266_v36 = vmul.f32 %v265_v35, %v257_v31 }
 0x66e   :  { %268 = vrot.lane.b32.xlu0 %v266_v36, %s621_s0  ;;  %v557_v36 = vsel %vm556_vm11, 1.0, %v617_v2 }
 0x676   :  { %337 = vperm.xlu0 %568, %v545_v38   ;;  %v554_v38 = vld [vmem:[%s740_s1 + $0x14] sm:$0xf]  ;;  %s622_s1 = smov 112  }
 0x67e   :  { %418 = vperm.xlu0 %568, %v551_v39   ;;  %v438_v39 = vunpack.c.l.bf16 %v554_v38 }
 0x6e0   :  { %v269_v37 = vpop.permute.xlu0 %268 }
 0x6e1   :  { %541 = vst.msk [vmem:[%s742_s3 + $0x10] sm:$0xff] %vm18_vm0, %v269_v37  ;;  %543 = vmatmul.msk.f32.vlgmr.msra.gmra.mxu3 %vm18_vm0, %v269_v37 }
 0x6e8   :  { %v338_v63 = vpop.permute.xlu0 %337 }
 0x6f0   :  { %v419_v30 = vpop.permute.xlu0 %418 }
 0x764   :  { %v296_v42 = vpop.f32.mrf.mxu3 }
 0x765   :  { %v299_v43 = vadd.f32 %v296_v42, %v276_v41 }
 0x767   :  { %593 = vtanh.f32 %v299_v43  ;;  %v546_v45 = vmul.f32 -1.442695, %v299_v43 }
 0x769   :  { %595 = vpow2.f32 %v546_v45 }
 0x76d   :  { %v594_v44 = vpop.eup %593 }
 0x76e   :  { %326 = vrot.lane.b32.xlu1 %v594_v44, %s618_s17 }
 0x76f   :  { %v596_v46 = vpop.eup %595 }
 0x770   :  { %v307_v47 = vadd.f32 1.0, %v596_v46 }
 0x772   :  { %597 = vrcp.f32 %v307_v47  ;;  %v319_v53 = vand.u32 2147483648, %v307_v47  ;;  %vm313_vm4 = vweird.f32 %v307_v47  ;;  %v317_v54 = vand.u32 2147483647, %v307_v47 }
 0x774   :  { %v320_v56 = vor.u32 1.1754944e-38, %v319_v53  ;;  %vm318_vm6 = vcmp.eq.f32.partialorder %v317_v54, 8.507059e+37 }
 0x778   :  { %v598_v48 = vpop.eup %597 }
 0x779   :  { %v309_v49 = vmul.f32 %v598_v48, %v307_v47  ;;  %vm314_vm3 = vweird.f32 %v598_v48 }
 0x77a   :  { %vm315_vm5 = vmor %vm313_vm4, %vm314_vm3 }
 0x77b   :  { %v310_v50 = vsub.f32 1.0, %v309_v49 }
 0x77d   :  { %v311_v51 = vmul.f32 %v598_v48, %v310_v50 }
 0x77f   :  { %v312_v52 = vadd.f32 %v598_v48, %v311_v51 }
 0x781   :  { %v316_v55 = vsel %vm315_vm5, %v598_v48, %v312_v52 }
 0x782   :  { %v321_v58 = vsel %vm318_vm6, %v320_v56, %v316_v55 }
 0x783   :  { %v324_v60 = vmul.f32 %v321_v58, %v259_v32 }
 0x7e0   :  { %v327_v57 = vpop.permute.xlu1 %326 }
 0x7e1   :  { %v329_v59 = vmul.f32 %v327_v57, %v321_v58 }
 0x7e3   :  { %331 = vrot.lane.b32.xlu2 %v329_v59, %s619_s18 }
 0x83d   :  { %v332_v61 = vpop.permute.xlu2 %331 }
 0x83e   :  { %v334_v62 = vadd.f32 %v332_v61, %v324_v60 }
 0x840   :  { %v340_v0 = vmul.f32 %v338_v63, %v334_v62 }
 0x842   :  { %599 = vtanh.f32 %v340_v0 }
 0x848   :  { %v600_v1 = vpop.eup %599 }
 0x849   :  { %343 = vrot.lane.b32.xlu1 %v600_v1, %s619_s18 }
 0x8bb   :  { %v344_v3 = vpop.permute.xlu1 %343 }
 0x8bc   :  { %v346_v4 = vmul.f32 %v344_v3, %v321_v58 }
 0x8be   :  { %v347_v5 = vmul.f32 %v346_v4, %v338_v63 }
 0x8c0   :  { %349 = vrot.lane.b32.xlu2 %v347_v5, %s621_s0 }
 0x91a   :  { %v350_v6 = vpop.permute.xlu2 %349 }
 0x91b   :  { %547 = vst.msk [vmem:[%s742_s3 + $0x18] sm:$0xff] %vm18_vm0, %v350_v6  ;;  %549 = vmatmul.msk.f32.vlgmr.msrb.gmra.mxu0 %vm18_vm0, %v350_v6 }
 0x998   :  { %v377_v8 = vpop.f32.mrf.mxu0 }
 0x999   :  { %v380_v9 = vadd.f32 %v377_v8, %v357_v7 }
 0x99b   :  { %601 = vtanh.f32 %v380_v9  ;;  %v552_v11 = vmul.f32 -1.442695, %v380_v9 }
 0x99d   :  { %603 = vpow2.f32 %v552_v11 }
 0x9a1   :  { %v602_v10 = vpop.eup %601 }
 0x9a2   :  { %407 = vrot.lane.b32.xlu1 %v602_v10, %s618_s17 }
 0x9a3   :  { %v604_v12 = vpop.eup %603 }
 0x9a4   :  { %v388_v13 = vadd.f32 1.0, %v604_v12 }
 0x9a6   :  { %605 = vrcp.f32 %v388_v13  ;;  %v400_v19 = vand.u32 2147483648, %v388_v13  ;;  %vm394_vm8 = vweird.f32 %v388_v13  ;;  %v398_v20 = vand.u32 2147483647, %v388_v13 }
 0x9a8   :  { %v401_v22 = vor.u32 1.1754944e-38, %v400_v19  ;;  %vm399_vm10 = vcmp.eq.f32.partialorder %v398_v20, 8.507059e+37 }
 0x9ac   :  { %v606_v14 = vpop.eup %605 }
 0x9ad   :  { %v390_v15 = vmul.f32 %v606_v14, %v388_v13  ;;  %vm395_vm7 = vweird.f32 %v606_v14 }
 0x9ae   :  { %vm396_vm9 = vmor %vm394_vm8, %vm395_vm7 }
 0x9af   :  { %v391_v16 = vsub.f32 1.0, %v390_v15 }
 0x9b1   :  { %v392_v17 = vmul.f32 %v606_v14, %v391_v16 }
 0x9b3   :  { %v393_v18 = vadd.f32 %v606_v14, %v392_v17 }
 0x9b5   :  { %v397_v21 = vsel %vm396_vm9, %v606_v14, %v393_v18 }
 0x9b6   :  { %v402_v24 = vsel %vm399_vm10, %v401_v22, %v397_v21 }
 0x9b7   :  { %v405_v27 = vmul.f32 %v402_v24, %v340_v0 }
 0xa14   :  { %v408_v23 = vpop.permute.xlu1 %407 }
 0xa15   :  { %v410_v25 = vmul.f32 %v408_v23, %v402_v24 }
 0xa17   :  { %412 = vrot.lane.b32.xlu2 %v410_v25, %s619_s18 }
 0xa71   :  { %v413_v28 = vpop.permute.xlu2 %412 }
 0xa72   :  { %v415_v29 = vadd.f32 %v413_v28, %v405_v27 }
 0xa74   :  { %v421_v31 = vmul.f32 %v419_v30, %v415_v29 }
 0xa76   :  { %607 = vtanh.f32 %v421_v31 }
 0xa7c   :  { %v608_v32 = vpop.eup %607 }
 0xa7d   :  { %424 = vrot.lane.b32.xlu1 %v608_v32, %s619_s18 }
 0xaef   :  { %v425_v33 = vpop.permute.xlu1 %424 }
 0xaf0   :  { %v427_v34 = vmul.f32 %v425_v33, %v402_v24 }
 0xaf2   :  { %v428_v35 = vmul.f32 %v427_v34, %v419_v30 }
 0xaf4   :  { %430 = vrot.lane.b32.xlu2 %v428_v35, %s621_s0 }
 0xafc   :  { %499 = vperm.xlu2 %567, %v557_v36  }
 0xb4e   :  { %v431_v37 = vpop.permute.xlu2 %430 }
 0xb4f   :  { %553 = vst.msk [vmem:[%s742_s3 + $0x20] sm:$0xff] %vm18_vm0, %v431_v37  ;;  %555 = vmatmul.msk.f32.vlgmr.msrb.gmra.mxu1 %vm18_vm0, %v431_v37 }
 0xb56   :  { %v500_v59 = vpop.permute.xlu2 %499 }
 0xbcc   :  { %v458_v40 = vpop.f32.mrf.mxu1 }
 0xbcd   :  { %v461_v41 = vadd.f32 %v458_v40, %v438_v39 }
 0xbcf   :  { %609 = vtanh.f32 %v461_v41  ;;  %v558_v2 = vmul.f32 -1.442695, %v461_v41 }
 0xbd1   :  { %611 = vpow2.f32 %v558_v2 }
 0xbd5   :  { %v610_v26 = vpop.eup %609 }
 0xbd6   :  { %488 = vrot.lane.b32.xlu0 %v610_v26, %s618_s17 }
 0xbd7   :  { %v612_v42 = vpop.eup %611 }
 0xbd8   :  { %v469_v43 = vadd.f32 1.0, %v612_v42 }
 0xbda   :  { %613 = vrcp.f32 %v469_v43  ;;  %v481_v49 = vand.u32 2147483648, %v469_v43  ;;  %vm475_vm13 = vweird.f32 %v469_v43  ;;  %v479_v50 = vand.u32 2147483647, %v469_v43 }
 0xbdc   :  { %v482_v52 = vor.u32 1.1754944e-38, %v481_v49  ;;  %vm480_vm15 = vcmp.eq.f32.partialorder %v479_v50, 8.507059e+37 }
 0xbe0   :  { %v614_v44 = vpop.eup %613 }
 0xbe1   :  { %v471_v45 = vmul.f32 %v614_v44, %v469_v43  ;;  %vm476_vm12 = vweird.f32 %v614_v44 }
 0xbe2   :  { %vm477_vm14 = vmor %vm475_vm13, %vm476_vm12 }
 0xbe3   :  { %v472_v46 = vsub.f32 1.0, %v471_v45 }
 0xbe5   :  { %v473_v47 = vmul.f32 %v614_v44, %v472_v46 }
 0xbe7   :  { %v474_v48 = vadd.f32 %v614_v44, %v473_v47 }
 0xbe9   :  { %v478_v51 = vsel %vm477_vm14, %v614_v44, %v474_v48 }
 0xbea   :  { %v483_v54 = vsel %vm480_vm15, %v482_v52, %v478_v51 }
 0xbeb   :  { %v486_v56 = vmul.f32 %v483_v54, %v421_v31 }
 0xc48   :  { %v489_v53 = vpop.permute.xlu0 %488 }
 0xc49   :  { %v491_v55 = vmul.f32 %v489_v53, %v483_v54 }
 0xc4b   :  { %493 = vrot.lane.b32.xlu1 %v491_v55, %s619_s18 }
 0xcbd   :  { %v494_v57 = vpop.permute.xlu1 %493 }
 0xcbe   :  { %v496_v58 = vadd.f32 %v494_v57, %v486_v56 }
 0xcc0   :  { %v502_v60 = vmul.f32 %v500_v59, %v496_v58 }
 0xcc2   :  { %615 = vtanh.f32 %v502_v60  ;;  %518 = vrot.lane.b32.xlu2 %v502_v60, %s622_s1 }
 0xcc8   :  { %v616_v61 = vpop.eup %615 }
 0xcc9   :  { %505 = vrot.lane.b32.xlu0 %v616_v61, %s619_s18 }
 0xd1c   :  { %v519_v62 = vpop.permute.xlu2 %518 }
 0xd1d   :  { %521 = vst.msk [vmem:[#allocation3] sm:$0xff] %vm18_vm0, %v519_v62 }
 0xd3b   :  { %v506_v63 = vpop.permute.xlu0 %505 }
 0xd3c   :  { %v508_v0 = vmul.f32 %v506_v63, %v483_v54 }
 0xd3e   :  { %v509_v1 = vmul.f32 %v508_v0, %v500_v59 }
 0xd40   :  { %511 = vrot.lane.b32.xlu1 %v509_v1, %s621_s0 }
 0xdb2   :  { %v512_v3 = vpop.permute.xlu1 %511 }
 0xdb3   :  { %559 = vst.msk [vmem:[%s742_s3 + $0x28] sm:$0xff] %vm18_vm0, %v512_v3 }
 0xdb4   :  { %516 = vst.msk [vmem:[#allocation2] sm:$0xff] %vm18_vm0, %v512_v3 }

// kernel: video_conv_forward.7
= control target key start
LH: loop header
LB: loop body
LE: loop exit
PB: predicated region body
PF: predicated region fallthrough
CT: control target
= control target key end

     0   :  { %s757_s24 = smov 112   ;;  %vm190_vm3 = vcmask 130048   ;;  %s1212_s4 = inlined_call_operand.vmem [shape: f32[1,32], index: 4, kind: input, shape index: {}]   ;;  %s1213_s2 = inlined_call_operand.vmem [shape: f32[1,32], index: 2, kind: input, shape index: {}]   ;;  %s1214_s5 = inlined_call_operand.vmem [shape: f32[1,32], index: 5, kind: input, shape index: {}]   ;;  %s1215_s3 = inlined_call_operand.vmem [shape: f32[1,32], index: 3, kind: input, shape index: {}]   ;;  %s1216_s0 = inlined_call_operand.vmem [shape: f32[8,8,16], index: 0, kind: input, shape index: {}]   ;;  %s1217_s6 = inlined_call_operand.vmem [shape: f32[32,16], index: 6, kind: input, shape index: {}]   ;;  %s1218_s1 = inlined_call_operand.vmem [shape: f32[8,8,16], index: 1, kind: input, shape index: {}]   ;;  %s1219_s9 = inlined_call_operand.<no memory space> [shape: f32[1,1], index: 9, kind: input, shape index: {}]   ;;  %s1220_s7 = inlined_call_operand.vmem [shape: f32[1,16], index: 7, kind: input, shape index: {}]   ;;  %s1221_s8 = inlined_call_operand.vmem [shape: f32[1,16], index: 8, kind: input, shape index: {}]   ;;  %s1222_s10 = inlined_call_operand.vmem [shape: f32[8,8], index: 10, kind: input, shape index: {}]   ;;  %s1223_s11 = inlined_call_operand.vmem [shape: f32[1,8], index: 11, kind: input, shape index: {}]   ;;  %s1224_s12 = inlined_call_operand.vmem [shape: f32[8,2], index: 12, kind: input, shape index: {}]   ;;  %s1225_s14 = inlined_call_operand.vmem [shape: f32[8,8], index: 14, kind: output, shape index: {0}]   ;;  %s1226_s13 = inlined_call_operand.vmem [shape: f32[1,2], index: 13, kind: input, shape index: {}]   ;;  %s1227_s15 = inlined_call_operand.vmem [shape: f32[8,2], index: 15, kind: output, shape index: {1}]  }
   0x1   :  { %v842_v0 = vld [vmem:[%s1212_s4] ss:$0 sm:$0xff]  ;;  %v56_v14 = vld [vmem:[%s1216_s0 + $0x28] sm:$0xff]  ;;  %v189_v17 = vld [vmem:[%s1217_s6 + $0x18] sm:$0xff] }
   0x2   :  { %v847_v1 = vld [vmem:[%s1213_s2] ss:$0 sm:$0xff]  ;;  %134 = vrot.lane.b32.xlu0 %v842_v0, %s757_s24  ;;  %v68_v16 = vsub.f32 %v56_v14, %v842_v0  ;;  %v187_v18 = vld [vmem:[%s1217_s6 + $0x8] sm:$0xff]  ;;  %v188_v19 = vld [vmem:[%s1217_s6 + $0x10] sm:$0xff]  ;;  %229 = vmatpush.msra.mxu0 %v189_v17 }
   0x3   :  { %v71_v2 = vld [vmem:[%s1214_s5] sm:$0x1]  ;;  %156 = vrot.lane.b32.xlu1 %v847_v1, %s757_s24  ;;  %704 = vmatpush.msra.mxu2 %v189_v17  ;;  %v52_v27 = vld [vmem:[%s1216_s0 + $0x8] sm:$0xff]  ;;  %v57_v28 = vld [vmem:[%s1216_s0 + $0x30] sm:$0xff] }
   0x4   :  { %v72_v3 = vadd.f32 1e-05, %v71_v2  ;;  %v857_v4 = vld [vmem:[%s1215_s3] ss:$0 sm:$0xff]  ;;  %294 = vmatpush.msra.mxu1 %v187_v18  ;;  %706 = vmatpush.msra.mxu3 %v187_v18  ;;  %v64_v31 = vsub.f32 %v52_v27, %v842_v0  ;;  %v69_v32 = vsub.f32 %v57_v28, %v842_v0  ;;  %v53_v39 = vld [vmem:[%s1216_s0 + $0x10] sm:$0xff]  ;;  %v58_v40 = vld [vmem:[%s1216_s0 + $0x38] sm:$0xff] }
   0x5   :  { %v51_v13 = vld [vmem:[%s1216_s0] sm:$0xff]  ;;  %230 = vmatpush.msra.mxu0 %v188_v19  ;;  %705 = vmatpush.msra.mxu2 %v188_v19  ;;  %v65_v43 = vsub.f32 %v53_v39, %v842_v0  ;;  %v70_v44 = vsub.f32 %v58_v40, %v842_v0  ;;  %v54_v52 = vld [vmem:[%s1216_s0 + $0x18] sm:$0xff]  ;;  %v131_v59 = vld [vmem:[%s1218_s1 + $0x28] sm:$0xff] }
   0x6   :  { %721 = vrsqrt.f32 %v72_v3  ;;  %vm79_vm0 = vweird.f32 %v72_v3  ;;  %v63_v15 = vsub.f32 %v51_v13, %v842_v0  ;;  %v186_v20 = vld [vmem:[%s1217_s6] sm:$0xff]  ;;  %v66_v56 = vsub.f32 %v54_v52, %v842_v0  ;;  %v127_v61 = vld [vmem:[%s1218_s1 + $0x8] sm:$0xff]  ;;  %v132_v62 = vld [vmem:[%s1218_s1 + $0x30] sm:$0xff] }
   0x7   :  { %295 = vmatpush.msra.mxu1 %v186_v20  ;;  %707 = vmatpush.msra.mxu3 %v186_v20  ;;  %v126_v58 = vld [vmem:[%s1218_s1] sm:$0xff]  ;;  %v128_v20 = vld [vmem:[%s1218_s1 + $0x10] sm:$0xff] }
   0x8   :  { %v55_v13 = vld [vmem:[%s1216_s0 + $0x20] sm:$0xff] }
   0xb   :  { %167 = vrot.lane.b32.xlu1 %v857_v4, %s757_s24 }
   0xc   :  { %v722_v5 = vpop.eup %721 }
   0xd   :  { %v74_v6 = vmul.f32 %v722_v5, %v72_v3  ;;  %vm80_vm1 = vweird.f32 %v722_v5 }
   0xe   :  { %vm81_vm2 = vmor %vm79_vm0, %vm80_vm1  ;;  %vm562_vm0 = vcmask 1041409  }
   0xf   :  { %v75_v7 = vmul.f32 %v722_v5, %v74_v6 }
  0x11   :  { %v76_v8 = vmul.f32 0.5, %v75_v7 }
  0x13   :  { %v77_v9 = vsub.f32 1.5, %v76_v8 }
  0x15   :  { %v78_v10 = vmul.f32 %v722_v5, %v77_v9 }
  0x17   :  { %v82_v11 = vsel %vm81_vm2, %v722_v5, %v78_v10 }
  0x18   :  { %v860_v12 = vperm.slane %v82_v11, 0 }
  0x1a   :  { %145 = vrot.lane.b32.xlu0 %v860_v12, %s757_s24  ;;  %v86_v21 = vmul.f32 %v860_v12, %v63_v15  ;;  %v91_v22 = vmul.f32 %v860_v12, %v68_v16  ;;  %v87_v33 = vmul.f32 %v860_v12, %v64_v31  ;;  %v92_v34 = vmul.f32 %v860_v12, %v69_v32 }
  0x1b   :  { %v88_v45 = vmul.f32 %v860_v12, %v65_v43  ;;  %v93_v46 = vmul.f32 %v860_v12, %v70_v44  ;;  %v89_v57 = vmul.f32 %v860_v12, %v66_v56  ;;  %v758_v31 = vmov 0  }
  0x1c   :  { %v98_v23 = vmul.f32 %v847_v1, %v86_v21  ;;  %v103_v24 = vmul.f32 %v847_v1, %v91_v22  ;;  %v99_v35 = vmul.f32 %v847_v1, %v87_v33  ;;  %v104_v36 = vmul.f32 %v847_v1, %v92_v34  ;;  %v133_v22 = vld [vmem:[%s1218_s1 + $0x38] sm:$0xff]  ;;  %711 = vset.pattern.permute.xlu1 %v758_v31 }
  0x1d   :  { %v100_v47 = vmul.f32 %v847_v1, %v88_v45  ;;  %v105_v48 = vmul.f32 %v847_v1, %v93_v46  ;;  %v101_v60 = vmul.f32 %v847_v1, %v89_v57  ;;  %v67_v21 = vsub.f32 %v55_v13, %v842_v0  ;;  %712 = vset.pattern.permute.xlu0 %v758_v31  ;;  %v130_v45 = vld [vmem:[%s1218_s1 + $0x20] sm:$0xff] }
  0x1e   :  { %v110_v25 = vadd.f32 %v857_v4, %v98_v23  ;;  %v115_v26 = vadd.f32 %v857_v4, %v103_v24  ;;  %v111_v37 = vadd.f32 %v857_v4, %v99_v35  ;;  %v116_v38 = vadd.f32 %v857_v4, %v104_v36 }
  0x1f   :  { %v112_v50 = vadd.f32 %v857_v4, %v100_v47  ;;  %v117_v51 = vadd.f32 %v857_v4, %v105_v48  ;;  %v113_v63 = vadd.f32 %v857_v4, %v101_v60  ;;  %v90_v0 = vmul.f32 %v860_v12, %v67_v21 }
  0x20   :  { %v118_v29 = vmax.f32 %v110_v25, 0.0  ;;  %v123_v30 = vmax.f32 %v115_v26, 0.0  ;;  %v119_v41 = vmax.f32 %v111_v37, 0.0  ;;  %v124_v42 = vmax.f32 %v116_v38, 0.0  ;;  %v129_v37 = vld [vmem:[%s1218_s1 + $0x18] sm:$0xff] }
  0x21   :  { %v120_v54 = vmax.f32 %v112_v50, 0.0  ;;  %v125_v55 = vmax.f32 %v117_v51, 0.0  ;;  %v121_v6 = vmax.f32 %v113_v63, 0.0  ;;  %v102_v35 = vmul.f32 %v847_v1, %v90_v0  ;;  %v718_v63 = vld [vmem:[%s1221_s8] ss:$0 sm:$0xff] }
  0x22   :  { %686 = vmatmul.msk.f32.vlgmr.msra.gmra.mxu1 %vm190_vm3, %v118_v29  ;;  %691 = vmatmul.msk.f32.vlgmr.msra.gmra.mxu3 %vm190_vm3, %v123_v30  ;;  %v21_v29 = vstv %s1219_s9 }
  0x23   :  { %22 = vst [vmem:[#allocation2] sm:$0x1] %v21_v29  ;;  %v114_v36 = vadd.f32 %v857_v4, %v102_v35 }
  0x2a   :  { %687 = vmatmul.msk.f32.gmra.mxu1 %vm190_vm3, %v119_v41  ;;  %692 = vmatmul.msk.f32.gmra.mxu3 %vm190_vm3, %v124_v42  ;;  %v122_v41 = vmax.f32 %v114_v36, 0.0  ;;  %v716_v1 = vld [vmem:[#allocation2] ss:$0 sm:$0xff] }
  0x2b   :  { %381 = vperm.xlu1 %711, %v716_v1  }
  0x32   :  { %688 = vmatmul.msk.f32.gmra.mxu1 %vm190_vm3, %v120_v54  ;;  %693 = vmatmul.msk.f32.gmra.mxu3 %vm190_vm3, %v125_v55 }
  0x3a   :  { %689 = vmatmul.msk.f32.gmra.mxu1 %vm190_vm3, %v121_v6 }
  0x42   :  { %690 = vmatmul.msk.f32.gmra.mxu1 %vm190_vm3, %v122_v41 }
  0x74   :  { %v919_v49 = vpop.permute.xlu0 %134 }
  0x75   :  { %v926_v53 = vpop.permute.xlu1 %156  ;;  %v137_v2 = vsub.f32 %v126_v58, %v919_v49  ;;  %v142_v3 = vsub.f32 %v131_v59, %v919_v49  ;;  %v138_v9 = vsub.f32 %v127_v61, %v919_v49  ;;  %v143_v10 = vsub.f32 %v132_v62, %v919_v49  ;;  %v717_v59 = vld [vmem:[%s1220_s7] ss:$0 sm:$0xff] }
  0x76   :  { %v139_v27 = vsub.f32 %v128_v20, %v919_v49  ;;  %v144_v28 = vsub.f32 %v133_v22, %v919_v49  ;;  %v140_v42 = vsub.f32 %v129_v37, %v919_v49  ;;  %v141_v50 = vsub.f32 %v130_v45, %v919_v49 }
  0x7d   :  { %v168_v11 = vpop.permute.xlu1 %167 }
  0x8c   :  { %v948_v5 = vpop.permute.xlu0 %145 }
  0x8d   :  { %v148_v7 = vmul.f32 %v948_v5, %v137_v2  ;;  %v153_v8 = vmul.f32 %v948_v5, %v142_v3  ;;  %v149_v16 = vmul.f32 %v948_v5, %v138_v9  ;;  %v154_v17 = vmul.f32 %v948_v5, %v143_v10 }
  0x8e   :  { %v150_v30 = vmul.f32 %v948_v5, %v139_v27  ;;  %v155_v34 = vmul.f32 %v948_v5, %v144_v28  ;;  %v151_v44 = vmul.f32 %v948_v5, %v140_v42  ;;  %v152_v52 = vmul.f32 %v948_v5, %v141_v50 }
  0x8f   :  { %v159_v14 = vmul.f32 %v926_v53, %v148_v7  ;;  %v164_v15 = vmul.f32 %v926_v53, %v153_v8  ;;  %v160_v25 = vmul.f32 %v926_v53, %v149_v16  ;;  %v165_v26 = vmul.f32 %v926_v53, %v154_v17 }
  0x90   :  { %v161_v12 = vmul.f32 %v926_v53, %v150_v30  ;;  %v166_v40 = vmul.f32 %v926_v53, %v155_v34  ;;  %v162_v48 = vmul.f32 %v926_v53, %v151_v44  ;;  %v163_v55 = vmul.f32 %v926_v53, %v152_v52 }
  0x91   :  { %v170_v18 = vadd.f32 %v168_v11, %v159_v14  ;;  %v175_v19 = vadd.f32 %v168_v11, %v164_v15  ;;  %v171_v32 = vadd.f32 %v168_v11, %v160_v25  ;;  %v176_v33 = vadd.f32 %v168_v11, %v165_v26 }
  0x92   :  { %v172_v4 = vadd.f32 %v168_v11, %v161_v12  ;;  %v177_v43 = vadd.f32 %v168_v11, %v166_v40  ;;  %v173_v51 = vadd.f32 %v168_v11, %v162_v48  ;;  %v174_v56 = vadd.f32 %v168_v11, %v163_v55 }
  0x93   :  { %v178_v23 = vmax.f32 %v170_v18, 0.0  ;;  %v183_v24 = vmax.f32 %v175_v19, 0.0  ;;  %v179_v38 = vmax.f32 %v171_v32, 0.0  ;;  %v184_v39 = vmax.f32 %v176_v33, 0.0 }
  0x94   :  { %v180_v46 = vmax.f32 %v172_v4, 0.0  ;;  %v185_v47 = vmax.f32 %v177_v43, 0.0  ;;  %v181_v54 = vmax.f32 %v173_v51, 0.0  ;;  %v182_v57 = vmax.f32 %v174_v56, 0.0 }
  0x95   :  { %678 = vmatmul.msk.f32.vlgmr.msra.gmra.mxu0 %vm190_vm3, %v178_v23  ;;  %683 = vmatmul.msk.f32.vlgmr.msra.gmra.mxu2 %vm190_vm3, %v183_v24 }
  0x9d   :  { %679 = vmatmul.msk.f32.gmra.mxu0 %vm190_vm3, %v179_v38  ;;  %684 = vmatmul.msk.f32.gmra.mxu2 %vm190_vm3, %v184_v39  ;;  %v1018_v52 = vpop.permute.xlu1 %381 }
  0x9f   :  { %v297_v58 = vpop.f32.mrf.mxu1 }
  0xa5   :  { %680 = vmatmul.msk.f32.gmra.mxu0 %vm190_vm3, %v180_v46  ;;  %685 = vmatmul.msk.f32.gmra.mxu2 %vm190_vm3, %v185_v47  ;;  %v312_v16 = vpop.f32.mrf.mxu3 }
  0xa7   :  { %v300_v61 = vpop.f32.mrf.mxu1 }
  0xad   :  { %681 = vmatmul.msk.f32.gmra.mxu0 %vm190_vm3, %v181_v54  ;;  %v315_v27 = vpop.f32.mrf.mxu3 }
  0xaf   :  { %v303_v7 = vpop.f32.mrf.mxu1 }
  0xb5   :  { %682 = vmatmul.msk.f32.gmra.mxu0 %vm190_vm3, %v182_v57  ;;  %v318_v40 = vpop.f32.mrf.mxu3 }
  0xb7   :  { %v306_v18 = vpop.f32.mrf.mxu1 }
  0xbf   :  { %v309_v29 = vpop.f32.mrf.mxu1 }
 0x112   :  { %v232_v60 = vpop.f32.mrf.mxu0 }
 0x113   :  { %v298_v49 = vadd.f32 %v297_v58, %v232_v60 }
 0x115   :  { %v325_v62 = vadd.f32 %v717_v59, %v298_v49 }
 0x117   :  { %v333_v53 = vmax.f32 %v325_v62, 0.0 }
 0x118   :  { %v247_v15 = vpop.f32.mrf.mxu2 }
 0x119   :  { %v345_v2 = vmul.f32 %v718_v63, %v333_v53  ;;  %v313_v22 = vadd.f32 %v312_v16, %v247_v15 }
 0x11a   :  { %v235_v3 = vpop.f32.mrf.mxu0 }
 0x11b   :  { %v301_v5 = vadd.f32 %v300_v61, %v235_v3  ;;  %v353_v6 = vsel %vm190_vm3, %v345_v2, 0.0  ;;  %v330_v28 = vadd.f32 %v717_v59, %v313_v22 }
 0x11c   :  { %354 = vadd.xlane.f32.xlu2 %v353_v6 }
 0x11d   :  { %v326_v8 = vadd.f32 %v717_v59, %v301_v5  ;;  %v338_v32 = vmax.f32 %v330_v28, 0.0 }
 0x11f   :  { %v334_v9 = vmax.f32 %v326_v8, 0.0  ;;  %v350_v38 = vmul.f32 %v718_v63, %v338_v32 }
 0x120   :  { %v250_v26 = vpop.f32.mrf.mxu2 }
 0x121   :  { %v346_v10 = vmul.f32 %v718_v63, %v334_v9  ;;  %v316_v33 = vadd.f32 %v315_v27, %v250_v26  ;;  %v368_v43 = vsel %vm190_vm3, %v350_v38, 0.0 }
 0x122   :  { %v238_v11 = vpop.f32.mrf.mxu0 }
 0x123   :  { %v304_v13 = vadd.f32 %v303_v7, %v238_v11  ;;  %v356_v14 = vsel %vm190_vm3, %v346_v10, 0.0  ;;  %v331_v12 = vadd.f32 %v717_v59, %v316_v33 }
 0x124   :  { %357 = vadd.xlane.f32.xlu2 %v356_v14 }
 0x125   :  { %v327_v17 = vadd.f32 %v717_v59, %v304_v13  ;;  %v339_v42 = vmax.f32 %v331_v12, 0.0 }
 0x127   :  { %v335_v19 = vmax.f32 %v327_v17, 0.0  ;;  %v351_v45 = vmul.f32 %v718_v63, %v339_v42 }
 0x128   :  { %v253_v39 = vpop.f32.mrf.mxu2 }
 0x129   :  { %v347_v20 = vmul.f32 %v718_v63, %v335_v19  ;;  %v319_v1 = vadd.f32 %v318_v40, %v253_v39  ;;  %v371_v47 = vsel %vm190_vm3, %v351_v45, 0.0 }
 0x12a   :  { %v241_v21 = vpop.f32.mrf.mxu0 }
 0x12b   :  { %v307_v23 = vadd.f32 %v306_v18, %v241_v21  ;;  %v359_v24 = vsel %vm190_vm3, %v347_v20, 0.0  ;;  %v332_v44 = vadd.f32 %v717_v59, %v319_v1 }
 0x12c   :  { %360 = vadd.xlane.f32.xlu0 %v359_v24 }
 0x12d   :  { %v328_v25 = vadd.f32 %v717_v59, %v307_v23  ;;  %v340_v46 = vmax.f32 %v332_v44, 0.0 }
 0x12f   :  { %v336_v0 = vmax.f32 %v328_v25, 0.0  ;;  %v352_v48 = vmul.f32 %v718_v63, %v340_v46 }
 0x131   :  { %v348_v30 = vmul.f32 %v718_v63, %v336_v0  ;;  %v374_v50 = vsel %vm190_vm3, %v352_v48, 0.0 }
 0x132   :  { %v244_v31 = vpop.f32.mrf.mxu0 }
 0x133   :  { %v310_v34 = vadd.f32 %v309_v29, %v244_v31  ;;  %v362_v35 = vsel %vm190_vm3, %v348_v30, 0.0 }
 0x134   :  { %363 = vadd.xlane.f32.xlu2 %v362_v35  ;;  %v552_v35 = vlaneseq }
 0x135   :  { %v329_v36 = vadd.f32 %v717_v59, %v310_v34 }
 0x136   :  { %v1073_v45 = vand.u32 127, %v552_v35 }
 0x137   :  { %v337_v37 = vmax.f32 %v329_v36, 0.0 }
 0x139   :  { %v349_v41 = vmul.f32 %v718_v63, %v337_v37 }
 0x13b   :  { %v365_v4 = vsel %vm190_vm3, %v349_v41, 0.0  ;;  %v611_v41 = vld [vmem:[%s1222_s10] sm:$0xff] }
 0x13c   :  { %366 = vadd.xlane.f32.xlu1 %v365_v4  ;;  %369 = vadd.xlane.f32.xlu2 %v368_v43 }
 0x13d   :  { %634 = vmatpush.msrb.mxu2 %v611_v41 }
 0x144   :  { %372 = vadd.xlane.f32.xlu2 %v371_v47 }
 0x14c   :  { %375 = vadd.xlane.f32.xlu2 %v374_v50 }
 0x18f   :  { %v355_v51 = vpop.xlane.xlu2 %354 }
 0x190   :  { %v384_v54 = vadd.f32 %v1018_v52, %v355_v51 }
 0x192   :  { %v694_v56 = vmul.f32 -1.442695, %v384_v54 }
 0x194   :  { %723 = vpow2.f32 %v694_v56 }
 0x197   :  { %v358_v55 = vpop.xlane.xlu2 %357 }
 0x198   :  { %v385_v57 = vadd.f32 %v1018_v52, %v358_v55 }
 0x19a   :  { %v695_v58 = vmul.f32 -1.442695, %v385_v57  ;;  %v724_v49 = vpop.eup %723 }
 0x19b   :  { %v416_v62 = vadd.f32 1.0, %v724_v49 }
 0x19c   :  { %725 = vpow2.f32 %v695_v58 }
 0x19d   :  { %v433_v33 = vand.u32 2147483647, %v416_v62  ;;  %v435_v34 = vand.u32 2147483648, %v416_v62  ;;  %vm429_vm5 = vweird.f32 %v416_v62 }
 0x19f   :  { %v361_v59 = vpop.xlane.xlu0 %360  ;;  %vm1069_vm7 = vcmp.eq.f32.partialorder %v433_v33, 8.507059e+37  ;;  %v436_v43 = vor.u32 1.1754944e-38, %v435_v34 }
 0x1a0   :  { %v386_v60 = vadd.f32 %v1018_v52, %v361_v59 }
 0x1a2   :  { %v696_v61 = vmul.f32 -1.442695, %v386_v60  ;;  %v726_v53 = vpop.eup %725 }
 0x1a3   :  { %v1024_v6 = vadd.f32 1.0, %v726_v53 }
 0x1a4   :  { %727 = vpow2.f32 %v696_v61 }
 0x1a5   :  { %729 = vrcp.f32 %v416_v62  ;;  %vm444_vm9 = vweird.f32 %v1024_v6  ;;  %v448_v56 = vand.u32 2147483647, %v1024_v6  ;;  %v450_v57 = vand.u32 2147483648, %v1024_v6 }
 0x1a7   :  { %v364_v63 = vpop.xlane.xlu2 %363  ;;  %vm449_vm12 = vcmp.eq.f32.partialorder %v448_v56, 8.507059e+37 }
 0x1a8   :  { %v387_v2 = vadd.f32 %v1018_v52, %v364_v63 }
 0x1aa   :  { %v697_v3 = vmul.f32 -1.442695, %v387_v2  ;;  %v728_v5 = vpop.eup %727 }
 0x1ab   :  { %v1026_v7 = vadd.f32 1.0, %v728_v5  ;;  %v1029_v10 = vpop.eup %729  ;;  %v451_v5 = vor.u32 1.1754944e-38, %v450_v57 }
 0x1ac   :  { %731 = vpow2.f32 %v697_v3  ;;  %v425_v17 = vmul.f32 %v1029_v10, %v416_v62  ;;  %vm430_vm4 = vweird.f32 %v1029_v10 }
 0x1ad   :  { %733 = vrcp.f32 %v1024_v6  ;;  %vm1065_vm6 = vmor %vm429_vm5, %vm430_vm4  ;;  %v463_v58 = vand.u32 2147483647, %v1026_v7  ;;  %v465_v59 = vand.u32 2147483648, %v1026_v7  ;;  %vm459_vm13 = vweird.f32 %v1026_v7 }
 0x1ae   :  { %735 = vrcp.f32 %v1026_v7  ;;  %v426_v20 = vsub.f32 1.0, %v425_v17  ;;  %vm564_vm5 = vcmask 1042434  }
 0x1af   :  { %v367_v8 = vpop.xlane.xlu1 %366  ;;  %v370_v9 = vpop.xlane.xlu2 %369  ;;  %vm1119_vm15 = vcmp.eq.f32.partialorder %v463_v58, 8.507059e+37 }
 0x1b0   :  { %v388_v11 = vadd.f32 %v1018_v52, %v367_v8  ;;  %v389_v13 = vadd.f32 %v1018_v52, %v370_v9  ;;  %v427_v27 = vmul.f32 %v1029_v10, %v426_v20 }
 0x1b2   :  { %v732_v14 = vpop.eup %731  ;;  %v698_v15 = vmul.f32 -1.442695, %v388_v11  ;;  %v699_v16 = vmul.f32 -1.442695, %v389_v13  ;;  %v428_v36 = vadd.f32 %v1029_v10, %v427_v27  ;;  %v466_v11 = vor.u32 1.1754944e-38, %v465_v59 }
 0x1b3   :  { %v1035_v18 = vadd.f32 1.0, %v732_v14  ;;  %v1037_v19 = vpop.eup %733 }
 0x1b4   :  { %737 = vpow2.f32 %v698_v15  ;;  %v1040_v22 = vpop.eup %735  ;;  %v440_v23 = vmul.f32 %v1037_v19, %v1024_v6  ;;  %v432_v47 = vsel %vm1065_vm6, %v1029_v10, %v428_v36  ;;  %vm445_vm8 = vweird.f32 %v1037_v19 }
 0x1b5   :  { %739 = vpow2.f32 %v699_v16  ;;  %v455_v28 = vmul.f32 %v1040_v22, %v1026_v7  ;;  %v1099_v49 = vsel %vm1069_vm7, %v436_v43, %v432_v47  ;;  %vm1103_vm10 = vmor %vm444_vm9, %vm445_vm8  ;;  %vm460_vm11 = vweird.f32 %v1040_v22 }
 0x1b6   :  { %741 = vrcp.f32 %v1035_v18  ;;  %v441_v30 = vsub.f32 1.0, %v440_v23  ;;  %vm1115_vm14 = vmor %vm459_vm13, %vm460_vm11  ;;  %v478_v13 = vand.u32 2147483647, %v1035_v18  ;;  %v554_v14 = vperm.slane %v1099_v49, %v1073_v45 }
 0x1b7   :  { %v373_v21 = vpop.xlane.xlu2 %372  ;;  %v456_v12 = vsub.f32 1.0, %v455_v28  ;;  %v480_v17 = vand.u32 2147483648, %v1035_v18  ;;  %vm474_vm3 = vweird.f32 %v1035_v18  ;;  %vm566_vm8 = vcmask 1043459  }
 0x1b8   :  { %v390_v24 = vadd.f32 %v1018_v52, %v373_v21  ;;  %v442_v38 = vmul.f32 %v1037_v19, %v441_v30  ;;  %vm1141_vm4 = vcmp.eq.f32.partialorder %v478_v13, 8.507059e+37 }
 0x1b9   :  { %v457_v48 = vmul.f32 %v1040_v22, %v456_v12 }
 0x1ba   :  { %v738_v25 = vpop.eup %737  ;;  %v700_v26 = vmul.f32 -1.442695, %v390_v24  ;;  %v443_v51 = vadd.f32 %v1037_v19, %v442_v38 }
 0x1bb   :  { %v1048_v0 = vadd.f32 1.0, %v738_v25  ;;  %v740_v29 = vpop.eup %739  ;;  %v458_v63 = vadd.f32 %v1040_v22, %v457_v48 }
 0x1bc   :  { %743 = vpow2.f32 %v700_v26  ;;  %v1050_v31 = vpop.eup %741  ;;  %v1053_v32 = vadd.f32 1.0, %v740_v29  ;;  %v447_v53 = vsel %vm1103_vm10, %v1037_v19, %v443_v51  ;;  %v481_v29 = vor.u32 1.1754944e-38, %v480_v17 }
 0x1bd   :  { %745 = vrcp.f32 %v1048_v0  ;;  %v470_v39 = vmul.f32 %v1050_v31, %v1035_v18  ;;  %v452_v7 = vsel %vm449_vm12, %v451_v5, %v447_v53  ;;  %v462_v16 = vsel %vm1115_vm14, %v1040_v22, %v458_v63 }
 0x1be   :  { %747 = vrcp.f32 %v1053_v32  ;;  %vm475_vm1 = vweird.f32 %v1050_v31  ;;  %v495_v24 = vand.u32 2147483648, %v1048_v0  ;;  %v555_v27 = vperm.slane %v452_v7, %v1073_v45 }
 0x1bf   :  { %v376_v37 = vpop.xlane.xlu2 %375  ;;  %vm1146_vm6 = vmor %vm474_vm3, %vm475_vm1  ;;  %vm489_vm7 = vweird.f32 %v1048_v0  ;;  %v467_v30 = vsel %vm1119_vm15, %v466_v11, %v462_v16  ;;  %v493_v18 = vand.u32 2147483647, %v1048_v0  ;;  %vm504_vm12 = vweird.f32 %v1053_v32  ;;  %v640_v11 = vld [vmem:[%s1224_s12] sm:$0xff] }
 0x1c0   :  { %v391_v40 = vadd.f32 %v1018_v52, %v376_v37  ;;  %v471_v52 = vsub.f32 1.0, %v470_v39  ;;  %v496_v12 = vor.u32 1.1754944e-38, %v495_v24  ;;  %v510_v37 = vand.u32 2147483648, %v1053_v32  ;;  %663 = vmatpush.msrb.mxu3 %v640_v11  ;;  %v720_v16 = vld [vmem:[%s1226_s13] ss:$0 sm:$0xff] }
 0x1c1   :  { %v508_v38 = vand.u32 2147483647, %v1053_v32  ;;  %vm494_vm13 = vcmp.eq.f32.partialorder %v493_v18, 8.507059e+37  ;;  %v556_v47 = vperm.slane %v467_v30, %v1073_v45  ;;  %v563_v48 = vsel %vm562_vm0, %v555_v27, %v554_v14 }
 0x1c2   :  { %v744_v42 = vpop.eup %743  ;;  %v701_v44 = vmul.f32 -1.442695, %v391_v40  ;;  %v472_v2 = vmul.f32 %v1050_v31, %v471_v52 }
 0x1c3   :  { %v1075_v46 = vpop.eup %745  ;;  %v1082_v50 = vadd.f32 1.0, %v744_v42  ;;  %vm509_vm3 = vcmp.eq.f32.partialorder %v508_v38, 8.507059e+37 }
 0x1c4   :  { %v485_v54 = vmul.f32 %v1075_v46, %v1048_v0  ;;  %749 = vpow2.f32 %v701_v44  ;;  %v1087_v55 = vpop.eup %747  ;;  %v473_v20 = vadd.f32 %v1050_v31, %v472_v2  ;;  %vm490_vm2 = vweird.f32 %v1075_v46 }
 0x1c5   :  { %751 = vrcp.f32 %v1082_v50  ;;  %v500_v61 = vmul.f32 %v1087_v55, %v1053_v32  ;;  %vm1156_vm9 = vmor %vm489_vm7, %vm490_vm2  ;;  %vm505_vm10 = vweird.f32 %v1087_v55  ;;  %vm519_vm15 = vweird.f32 %v1082_v50 }
 0x1c6   :  { %v486_v60 = vsub.f32 1.0, %v485_v54  ;;  %v477_v34 = vsel %vm1146_vm6, %v1050_v31, %v473_v20  ;;  %v525_v31 = vand.u32 2147483648, %v1082_v50  ;;  %vm1174_vm14 = vmor %vm504_vm12, %vm505_vm10  ;;  %v523_v1 = vand.u32 2147483647, %v1082_v50 }
 0x1c7   :  { %v501_v3 = vsub.f32 1.0, %v500_v61  ;;  %v482_v41 = vsel %vm1141_vm4, %v481_v29, %v477_v34  ;;  %vm568_vm2 = vcmask 1044484   ;;  %v511_v44 = vor.u32 1.1754944e-38, %v510_v37 }
 0x1c8   :  { %v487_v6 = vmul.f32 %v1075_v46, %v486_v60  ;;  %v526_v52 = vor.u32 1.1754944e-38, %v525_v31  ;;  %vm524_vm4 = vcmp.eq.f32.partialorder %v523_v1, 8.507059e+37  ;;  %v565_v60 = vsel %vm564_vm5, %v556_v47, %v563_v48 }
 0x1c9   :  { %v502_v21 = vmul.f32 %v1087_v55, %v501_v3  ;;  %vm574_vm12 = vcmask 1047559   ;;  %vm609_vm5 = vcmask 64512  }
 0x1ca   :  { %v750_v8 = vpop.eup %749  ;;  %v488_v22 = vadd.f32 %v1075_v46, %v487_v6 }
 0x1cb   :  { %v752_v15 = vpop.eup %751  ;;  %v1130_v19 = vadd.f32 1.0, %v750_v8  ;;  %v503_v35 = vadd.f32 %v1087_v55, %v502_v21 }
 0x1cc   :  { %v515_v23 = vmul.f32 %v752_v15, %v1082_v50  ;;  %v492_v0 = vsel %vm1156_vm9, %v1075_v46, %v488_v22  ;;  %vm520_vm11 = vweird.f32 %v752_v15  ;;  %v557_v50 = vperm.slane %v482_v41, %v1073_v45 }
 0x1cd   :  { %753 = vrcp.f32 %v1130_v19  ;;  %v497_v43 = vsel %vm494_vm13, %v496_v12, %v492_v0  ;;  %v507_v32 = vsel %vm1174_vm14, %v1087_v55, %v503_v35  ;;  %vm521_vm1 = vmor %vm519_vm15, %vm520_vm11  ;;  %v540_v56 = vand.u32 2147483648, %v1130_v19 }
 0x1ce   :  { %v516_v26 = vsub.f32 1.0, %v515_v23  ;;  %v512_v54 = vsel %vm509_vm3, %v511_v44, %v507_v32  ;;  %v558_v57 = vperm.slane %v497_v43, %v1073_v45  ;;  %v538_v59 = vand.u32 2147483647, %v1130_v19 }
 0x1cf   :  { %vm534_vm0 = vweird.f32 %v1130_v19  ;;  %v559_v49 = vperm.slane %v512_v54, %v1073_v45  ;;  %v567_v62 = vsel %vm566_vm8, %v557_v50, %v565_v60  ;;  %v541_v63 = vor.u32 1.1754944e-38, %v540_v56 }
 0x1d0   :  { %v517_v36 = vmul.f32 %v752_v15, %v516_v26  ;;  %v569_v2 = vsel %vm568_vm2, %v558_v57, %v567_v62  ;;  %vm570_vm9 = vcmask 1045509   ;;  %vm539_vm10 = vcmp.eq.f32.partialorder %v538_v59, 8.507059e+37 }
 0x1d1   :  { %vm572_vm11 = vcmask 1046534   ;;  %v571_v8 = vsel %vm570_vm9, %v559_v49, %v569_v2  ;;  %vm668_vm8 = vcmask 15360  }
 0x1d2   :  { %v518_v39 = vadd.f32 %v752_v15, %v517_v36 }
 0x1d3   :  { %v754_v40 = vpop.eup %753 }
 0x1d4   :  { %v530_v4 = vmul.f32 %v754_v40, %v1130_v19  ;;  %v522_v46 = vsel %vm521_vm1, %v752_v15, %v518_v39  ;;  %vm535_vm6 = vweird.f32 %v754_v40 }
 0x1d5   :  { %v527_v55 = vsel %vm524_vm4, %v526_v52, %v522_v46  ;;  %vm536_vm7 = vmor %vm534_vm0, %vm535_vm6 }
 0x1d6   :  { %v531_v51 = vsub.f32 1.0, %v530_v4  ;;  %v560_v53 = vperm.slane %v527_v55, %v1073_v45 }
 0x1d8   :  { %v532_v58 = vmul.f32 %v754_v40, %v531_v51  ;;  %v573_v9 = vsel %vm572_vm11, %v560_v53, %v571_v8 }
 0x1da   :  { %v533_v61 = vadd.f32 %v754_v40, %v532_v58 }
 0x1dc   :  { %v537_v3 = vsel %vm536_vm7, %v754_v40, %v533_v61 }
 0x1dd   :  { %v542_v5 = vsel %vm539_vm10, %v541_v63, %v537_v3 }
 0x1de   :  { %v561_v6 = vperm.slane %v542_v5, %v1073_v45  ;;  %v719_v45 = vld [vmem:[%s1223_s11] ss:$0 sm:$0xff] }
 0x1e0   :  { %v575_v10 = vsel %vm574_vm12, %v561_v6, %v573_v9 }
 0x1e1   :  { %577 = vxpose.xlu2.b32.start.end [1/1] (short) (narrow) %v575_v10, 8 }
 0x27a   :  { %v593_v13 = vpop.trf.xlu2 }
 0x27b   :  { %610 = vst.msk [vmem:[%s1225_s14] sm:$0xff] %vm609_vm5, %v593_v13  ;;  %702 = vmatmul.msk.f32.vlgmr.msrb.gmra.mxu2 %vm609_vm5, %v593_v13 }
 0x2fe   :  { %v636_v14 = vpop.f32.mrf.mxu2 }
 0x2ff   :  { %v637_v15 = vadd.f32 %v719_v45, %v636_v14 }
 0x301   :  { %755 = vtanh.f32 %v637_v15 }
 0x307   :  { %v756_v7 = vpop.eup %755 }
 0x308   :  { %703 = vmatmul.msk.f32.vlgmr.msrb.gmra.mxu3 %vm609_vm5, %v756_v7 }
 0x38b   :  { %v665_v17 = vpop.f32.mrf.mxu3 }
 0x38c   :  { %v666_v19 = vadd.f32 %v720_v16, %v665_v17 }
 0x38e   :  { %669 = vst.msk [vmem:[%s1227_s15] sm:$0xff] %vm668_vm8, %v666_v19 }

// kernel: video_conv_forward.6
= control target key start
LH: loop header
LB: loop body
LE: loop exit
PB: predicated region body
PF: predicated region fallthrough
CT: control target
= control target key end

     0   :  { %vm62_vm0 = vcmask 130048   ;;  %v1712_v3 = vmov 0.0   ;;  %v1714_v14 = vmov 0   ;;  %s1715_s30 = smov 80   ;;  %s2121_s3 = inlined_call_operand.vmem [shape: f32[2,16,64], index: 3, kind: input, shape index: {}]   ;;  %s2122_s1 = inlined_call_operand.vmem [shape: bf16[2,8,8,64], index: 1, kind: input, shape index: {}, may-alias: {1,2}]   ;;  %s2123_s2 = inlined_call_operand.vmem [shape: bf16[2,8,8,64], index: 2, kind: input, shape index: {}, may-alias: {1,2}]   ;;  %s2124_s0 = inlined_call_operand.vmem [shape: s32[8,1], index: 0, kind: input, shape index: {}]   ;;  %s2125_s5 = inlined_call_operand.vmem [shape: f32[8,8,16], index: 5, kind: output, shape index: {1}]   ;;  %s2126_s4 = inlined_call_operand.vmem [shape: f32[8,8,16], index: 4, kind: output, shape index: {0}]  }
   0x1   :  { %v1751_v0 = vld [vmem:[%s2121_s3 + $0x8] sm:$0xff]  ;;  %v1756_v1 = vld [vmem:[%s2121_s3 + $0x18] sm:$0xff]  ;;  %v1761_v2 = vld [vmem:[%s2121_s3] sm:$0xff]  ;;  %63 = vst.msk [vmem:[#allocation2] sm:$0xff] %vm62_vm0, %v1712_v3  ;;  %1542 = vset.pattern.permute.xlu0 %v1714_v14  ;;  %1548 = vset.pattern.permute.xlu1 %v1714_v14 }
   0x2   :  { %100 = vmatpush.msra.mxu0 %v1751_v0  ;;  %187 = vmatpush.msra.mxu1 %v1756_v1  ;;  %v1770_v4 = vld [vmem:[%s2121_s3 + $0x10] sm:$0xff]  ;;  %64 = vst.msk [vmem:[#allocation2 + $0x8] sm:$0xff] %vm62_vm0, %v1712_v3  ;;  %s1713_s3 = smov 16   ;;  %v80_v9 = vld [vmem:[%s2122_s1] sm:$0xf] }
   0x3   :  { %65 = vst.msk [vmem:[#allocation3] sm:$0xff] %vm62_vm0, %v1712_v3  ;;  %353 = vmatpush.msra.mxu3 %v1756_v1  ;;  %272 = vmatpush.msra.mxu2 %v1751_v0  ;;  %v81_v10 = vunpack.c.l.bf16 %v80_v9  ;;  %v1447_v12 = vld [vmem:[%s2123_s2 + $0x3c] sm:$0xf]  ;;  %v1810_v19 = vld [vmem:[%s2124_s0] sm:$0xff]  ;;  %s1716_s0 = smov 96  }
   0x4   :  { %101 = vmatpush.msra.mxu0 %v1761_v2  ;;  %188 = vmatpush.msra.mxu1 %v1770_v4  ;;  %66 = vst.msk [vmem:[#allocation3 + $0x8] sm:$0xff] %vm62_vm0, %v1712_v3  ;;  %v169_v15 = vunpack.c.l.bf16 %v1447_v12  ;;  %vm1444_vm1 = vcmp.gt.s32.totalorder %v1810_v19, 0  ;;  %vm1449_vm2 = vcmp.gt.s32.totalorder %v1810_v19, 7  ;;  %vm1455_vm11 = vcmp.gt.s32.totalorder %v1810_v19, 1 }
   0x5   :  { %354 = vmatpush.msra.mxu3 %v1770_v4  ;;  %273 = vmatpush.msra.mxu2 %v1761_v2  ;;  %v1816_v21 = vsel %vm1444_vm1, 1.0, %v1712_v3  ;;  %v1819_v22 = vsel %vm1449_vm2, 1.0, %v1712_v3  ;;  %vm1461_vm12 = vcmp.gt.s32.totalorder %v1810_v19, 6 }
   0x6   :  { %515 = vmatpush.msrb.mxu1 %v1756_v1  ;;  %434 = vmatpush.msrb.mxu0 %v1751_v0  ;;  %v1543_v23 = vpack.i.bf16 %v1819_v22, %v1816_v21 }
   0x7   :  { %596 = vmatpush.msrb.mxu2 %v1751_v0  ;;  %677 = vmatpush.msrb.mxu3 %v1756_v1 }
   0x8   :  { %v73_v5 = vld [vmem:[#allocation2] sm:$0xff]  ;;  %516 = vmatpush.msrb.mxu1 %v1770_v4  ;;  %435 = vmatpush.msrb.mxu0 %v1761_v2 }
   0x9   :  { %1443 = vmatmul.msk.f32.vlgmr.msra.gmra.mxu0 %vm62_vm0, %v73_v5  ;;  %v75_v6 = vld [vmem:[#allocation2 + $0x8] sm:$0xff]  ;;  %597 = vmatpush.msrb.mxu2 %v1761_v2 }
   0xa   :  { %1448 = vmatmul.msk.f32.vlgmr.msra.gmra.mxu1 %vm62_vm0, %v75_v6  ;;  %v76_v7 = vld [vmem:[#allocation3] sm:$0xff]  ;;  %678 = vmatpush.msrb.mxu3 %v1770_v4 }
   0xb   :  { %132 = vrot.lane.b32.xlu1 %v76_v7, %s1713_s3  ;;  %758 = vmatpush.msra.mxu0 %v1751_v0  ;;  %v78_v8 = vld [vmem:[#allocation3 + $0x8] sm:$0xff] }
   0xc   :  { %839 = vmatpush.msra.mxu1 %v1756_v1 }
   0xd   :  { %759 = vmatpush.msra.mxu0 %v1761_v2 }
   0xe   :  { %840 = vmatpush.msra.mxu1 %v1770_v4 }
  0x13   :  { %219 = vrot.lane.b32.xlu1 %v78_v8, %s1713_s3 }
  0x7d   :  { %v133_v54 = vpop.permute.xlu1 %132 }
  0x85   :  { %v220_v61 = vpop.permute.xlu1 %219 }
  0x86   :  { %v103_v11 = vpop.f32.mrf.mxu0 }
  0x87   :  { %v106_v13 = vadd.f32 %v103_v11, %v81_v10  ;;  %v190_v16 = vpop.f32.mrf.mxu1 }
  0x88   :  { %v193_v17 = vadd.f32 %v190_v16, %v169_v15 }
  0x89   :  { %1584 = vtanh.f32 %v106_v13  ;;  %v1446_v24 = vmul.f32 -1.442695, %v106_v13 }
  0x8a   :  { %1586 = vtanh.f32 %v193_v17  ;;  %v1451_v25 = vmul.f32 -1.442695, %v193_v17 }
  0x8b   :  { %1588 = vpow2.f32 %v1446_v24 }
  0x8c   :  { %1590 = vpow2.f32 %v1451_v25 }
  0x8f   :  { %v1585_v18 = vpop.eup %1584 }
  0x90   :  { %137 = vrot.lane.b32.xlu0 %v1585_v18, %s1715_s30  ;;  %v1587_v20 = vpop.eup %1586  ;;  %v1852_v18 = vld [vmem:[%s2123_s2 + $0x34] sm:$0xff]  }
  0x91   :  { %v1589_v26 = vpop.eup %1588 }
  0x92   :  { %v114_v27 = vadd.f32 1.0, %v1589_v26  ;;  %v1591_v28 = vpop.eup %1590  ;;  %v1859_v26 = vld [vmem:[%s2122_s1 + $0x4] sm:$0xff]  }
  0x93   :  { %v201_v29 = vadd.f32 1.0, %v1591_v28 }
  0x94   :  { %1592 = vrcp.f32 %v114_v27  ;;  %v126_v38 = vand.u32 2147483648, %v114_v27  ;;  %vm120_vm4 = vweird.f32 %v114_v27  ;;  %v124_v39 = vand.u32 2147483647, %v114_v27 }
  0x95   :  { %1594 = vrcp.f32 %v201_v29  ;;  %vm207_vm7 = vweird.f32 %v201_v29  ;;  %v213_v47 = vand.u32 2147483648, %v201_v29  ;;  %v211_v48 = vand.u32 2147483647, %v201_v29 }
  0x96   :  { %v127_v42 = vor.u32 1.1754944e-38, %v126_v38  ;;  %vm125_vm6 = vcmp.eq.f32.partialorder %v124_v39, 8.507059e+37 }
  0x97   :  { %v214_v50 = vor.u32 1.1754944e-38, %v213_v47  ;;  %vm212_vm10 = vcmp.eq.f32.partialorder %v211_v48, 8.507059e+37 }
  0x98   :  { %224 = vrot.lane.b32.xlu0 %v1587_v20, %s1715_s30  ;;  %v336_v20 = vunpack.c.h.bf16 %v1852_v18 }
  0x9a   :  { %v1593_v30 = vpop.eup %1592 }
  0x9b   :  { %v116_v31 = vmul.f32 %v1593_v30, %v114_v27  ;;  %v1595_v33 = vpop.eup %1594  ;;  %vm121_vm3 = vweird.f32 %v1593_v30  ;;  %v255_v27 = vunpack.c.l.bf16 %v1859_v26 }
  0x9c   :  { %v203_v35 = vmul.f32 %v1595_v33, %v201_v29  ;;  %vm122_vm5 = vmor %vm120_vm4, %vm121_vm3  ;;  %vm208_vm8 = vweird.f32 %v1595_v33 }
  0x9d   :  { %v117_v32 = vsub.f32 1.0, %v116_v31  ;;  %vm209_vm9 = vmor %vm207_vm7, %vm208_vm8  ;;  %vm1473_vm7 = vcmp.gt.s32.totalorder %v1810_v19, 5 }
  0x9e   :  { %v204_v37 = vsub.f32 1.0, %v203_v35  ;;  %v1869_v35 = vsel %vm1461_vm12, 1.0, %v1712_v3 }
  0x9f   :  { %v118_v34 = vmul.f32 %v1593_v30, %v117_v32 }
  0xa0   :  { %1544 = vperm.xlu0 %1542, %v1543_v23   ;;  %v205_v41 = vmul.f32 %v1595_v33, %v204_v37 }
  0xa1   :  { %v119_v36 = vadd.f32 %v1593_v30, %v118_v34  ;;  %v1866_v34 = vsel %vm1455_vm11, 1.0, %v1712_v3 }
  0xa2   :  { %v206_v45 = vadd.f32 %v1595_v33, %v205_v41 }
  0xa3   :  { %v123_v40 = vsel %vm122_vm5, %v1593_v30, %v119_v36  ;;  %v1549_v36 = vpack.i.bf16 %v1869_v35, %v1866_v34 }
  0xa4   :  { %v128_v43 = vsel %vm125_vm6, %v127_v42, %v123_v40  ;;  %v210_v49 = vsel %vm209_vm9, %v1595_v33, %v206_v45  ;;  %vm1467_vm6 = vcmp.gt.s32.totalorder %v1810_v19, 2 }
  0xa5   :  { %v215_v51 = vsel %vm212_vm10, %v214_v50, %v210_v49  ;;  %v135_v56 = vmul.f32 %v133_v54, %v128_v43 }
  0xa6   :  { %v222_v62 = vmul.f32 %v220_v61, %v215_v51 }
 0x102   :  { %v138_v44 = vpop.permute.xlu0 %137 }
 0x103   :  { %v140_v46 = vmul.f32 %v138_v44, %v128_v43 }
 0x105   :  { %142 = vrot.lane.b32.xlu2 %v140_v46, %s1713_s3 }
 0x10a   :  { %v225_v52 = vpop.permute.xlu0 %224 }
 0x10b   :  { %v227_v53 = vmul.f32 %v225_v52, %v215_v51 }
 0x10d   :  { %229 = vrot.lane.b32.xlu2 %v227_v53, %s1713_s3 }
 0x112   :  { %v1545_v55 = vpop.permute.xlu0 %1544 }
 0x113   :  { %v1546_v57 = vunpack.i.l.bf16 %v1545_v55  ;;  %v1547_v63 = vunpack.i.h.bf16 %v1545_v55 }
 0x15f   :  { %v143_v58 = vpop.permute.xlu2 %142 }
 0x160   :  { %v145_v59 = vadd.f32 %v143_v58, %v135_v56 }
 0x162   :  { %v1825_v60 = vmul.f32 %v1546_v57, %v145_v59 }
 0x164   :  { %1596 = vtanh.f32 %v1825_v60 }
 0x167   :  { %v230_v5 = vpop.permute.xlu2 %229 }
 0x168   :  { %v232_v6 = vadd.f32 %v230_v5, %v222_v62 }
 0x16a   :  { %v1597_v7 = vpop.eup %1596  ;;  %v1828_v8 = vmul.f32 %v1547_v63, %v232_v6 }
 0x16b   :  { %154 = vrot.lane.b32.xlu1 %v1597_v7, %s1713_s3 }
 0x16c   :  { %1598 = vtanh.f32 %v1828_v8 }
 0x172   :  { %v1599_v9 = vpop.eup %1598 }
 0x173   :  { %241 = vrot.lane.b32.xlu2 %v1599_v9, %s1713_s3 }
 0x1cd   :  { %v242_v10 = vpop.permute.xlu2 %241 }
 0x1ce   :  { %v244_v11 = vmul.f32 %v242_v10, %v215_v51 }
 0x1d0   :  { %v245_v12 = vmul.f32 %v1547_v63, %v244_v11 }
 0x1d2   :  { %247 = vrot.lane.b32.xlu2 %v245_v12, %s1716_s0 }
 0x1dd   :  { %v155_v13 = vpop.permute.xlu1 %154 }
 0x1de   :  { %v157_v14 = vmul.f32 %v155_v13, %v128_v43 }
 0x1e0   :  { %v158_v15 = vmul.f32 %v1546_v57, %v157_v14 }
 0x1e2   :  { %160 = vrot.lane.b32.xlu1 %v158_v15, %s1716_s0 }
 0x22c   :  { %v248_v16 = vpop.permute.xlu2 %247 }
 0x22d   :  { %1452 = vst.msk [vmem:[%s2125_s5 + $0x38] sm:$0xff] %vm62_vm0, %v248_v16  ;;  %1460 = vmatmul.msk.f32.vlgmr.msra.gmra.mxu3 %vm62_vm0, %v248_v16 }
 0x22e   :  { %1001 = vmatpush.msra.mxu3 %v1756_v1 }
 0x230   :  { %1002 = vmatpush.msra.mxu3 %v1770_v4 }
 0x254   :  { %v161_v17 = vpop.permute.xlu1 %160 }
 0x255   :  { %163 = vst.msk [vmem:[%s2126_s4] sm:$0xff] %vm62_vm0, %v161_v17  ;;  %1454 = vmatmul.msk.f32.vlgmr.msra.gmra.mxu2 %vm62_vm0, %v161_v17 }
 0x256   :  { %920 = vmatpush.msra.mxu2 %v1751_v0 }
 0x258   :  { %921 = vmatpush.msra.mxu2 %v1761_v2 }
 0x2b0   :  { %v356_v23 = vpop.f32.mrf.mxu3 }
 0x2b1   :  { %v359_v24 = vadd.f32 %v356_v23, %v336_v20 }
 0x2b3   :  { %1600 = vtanh.f32 %v359_v24  ;;  %v1463_v31 = vmul.f32 -1.442695, %v359_v24 }
 0x2b9   :  { %v1601_v25 = vpop.eup %1600 }
 0x2ba   :  { %386 = vrot.lane.b32.xlu1 %v1601_v25, %s1715_s30 }
 0x2c2   :  { %1550 = vperm.xlu1 %1548, %v1549_v36  }
 0x2d8   :  { %v275_v28 = vpop.f32.mrf.mxu2 }
 0x2d9   :  { %v278_v29 = vadd.f32 %v275_v28, %v255_v27 }
 0x2db   :  { %1602 = vtanh.f32 %v278_v29  ;;  %v1457_v43 = vmul.f32 -1.442695, %v278_v29 }
 0x2dc   :  { %1604 = vpow2.f32 %v1463_v31  ;;  %v498_v31 = vunpack.c.l.bf16 %v1852_v18 }
 0x2e1   :  { %v1603_v30 = vpop.eup %1602 }
 0x2e2   :  { %305 = vrot.lane.b32.xlu0 %v1603_v30, %s1715_s30  ;;  %v1605_v32 = vpop.eup %1604 }
 0x2e3   :  { %v367_v33 = vadd.f32 1.0, %v1605_v32 }
 0x2e5   :  { %1606 = vrcp.f32 %v367_v33  ;;  %v379_v42 = vand.u32 2147483648, %v367_v33  ;;  %vm373_vm14 = vweird.f32 %v367_v33  ;;  %v377_v44 = vand.u32 2147483647, %v367_v33 }
 0x2e6   :  { %1608 = vpow2.f32 %v1457_v43 }
 0x2e7   :  { %v380_v46 = vor.u32 1.1754944e-38, %v379_v42  ;;  %vm378_vm1 = vcmp.eq.f32.partialorder %v377_v44, 8.507059e+37 }
 0x2eb   :  { %v1607_v37 = vpop.eup %1606 }
 0x2ec   :  { %v369_v38 = vmul.f32 %v1607_v37, %v367_v33  ;;  %vm374_vm13 = vweird.f32 %v1607_v37  ;;  %v1609_v50 = vpop.eup %1608 }
 0x2ed   :  { %vm375_vm15 = vmor %vm373_vm14, %vm374_vm13  ;;  %v286_v51 = vadd.f32 1.0, %v1609_v50 }
 0x2ee   :  { %v370_v39 = vsub.f32 1.0, %v369_v38  ;;  %v1909_v38 = vsel %vm1473_vm7, 1.0, %v1712_v3 }
 0x2ef   :  { %1610 = vrcp.f32 %v286_v51  ;;  %v298_v57 = vand.u32 2147483648, %v286_v51  ;;  %vm292_vm3 = vweird.f32 %v286_v51  ;;  %v296_v58 = vand.u32 2147483647, %v286_v51 }
 0x2f0   :  { %v371_v40 = vmul.f32 %v1607_v37, %v370_v39  ;;  %v417_v39 = vunpack.c.h.bf16 %v1859_v26 }
 0x2f1   :  { %v299_v61 = vor.u32 1.1754944e-38, %v298_v57  ;;  %vm297_vm5 = vcmp.eq.f32.partialorder %v296_v58, 8.507059e+37 }
 0x2f2   :  { %v372_v41 = vadd.f32 %v1607_v37, %v371_v40 }
 0x2f4   :  { %v376_v45 = vsel %vm375_vm15, %v1607_v37, %v372_v41  ;;  %v1906_v37 = vsel %vm1467_vm6, 1.0, %v1712_v3 }
 0x2f5   :  { %v381_v47 = vsel %vm378_vm1, %v380_v46, %v376_v45  ;;  %v1611_v52 = vpop.eup %1610  ;;  %v1554_v18 = vpack.i.bf16 %v1909_v38, %v1906_v37  ;;  %vm1479_vm1 = vcmp.gt.s32.totalorder %v1810_v19, 3 }
 0x2f6   :  { %v288_v53 = vmul.f32 %v1611_v52, %v286_v51  ;;  %vm293_vm2 = vweird.f32 %v1611_v52  ;;  %v384_v7 = vmul.f32 %v381_v47, %v1828_v8 }
 0x2f7   :  { %vm294_vm4 = vmor %vm292_vm3, %vm293_vm2  ;;  %vm1485_vm2 = vcmp.gt.s32.totalorder %v1810_v19, 4 }
 0x2f8   :  { %v289_v54 = vsub.f32 1.0, %v288_v53 }
 0x2fa   :  { %v290_v55 = vmul.f32 %v1611_v52, %v289_v54 }
 0x2fc   :  { %v291_v56 = vadd.f32 %v1611_v52, %v290_v55 }
 0x2fe   :  { %v295_v59 = vsel %vm294_vm4, %v1611_v52, %v291_v56 }
 0x2ff   :  { %v300_v63 = vsel %vm297_vm5, %v299_v61, %v295_v59 }
 0x300   :  { %v303_v14 = vmul.f32 %v300_v63, %v1825_v60 }
 0x32c   :  { %v387_v48 = vpop.permute.xlu1 %386 }
 0x32d   :  { %v389_v49 = vmul.f32 %v387_v48, %v381_v47 }
 0x32f   :  { %391 = vrot.lane.b32.xlu0 %v389_v49, %s1713_s3 }
 0x334   :  { %v1551_v6 = vpop.permute.xlu1 %1550 }
 0x335   :  { %v1553_v9 = vunpack.i.h.bf16 %v1551_v6  ;;  %v1552_v16 = vunpack.i.l.bf16 %v1551_v6 }
 0x354   :  { %v306_v62 = vpop.permute.xlu0 %305 }
 0x355   :  { %v308_v5 = vmul.f32 %v306_v62, %v300_v63 }
 0x357   :  { %310 = vrot.lane.b32.xlu2 %v308_v5, %s1713_s3 }
 0x3a1   :  { %v392_v10 = vpop.permute.xlu0 %391 }
 0x3a2   :  { %v394_v11 = vadd.f32 %v392_v10, %v384_v7 }
 0x3a4   :  { %v1876_v12 = vmul.f32 %v1553_v9, %v394_v11 }
 0x3a6   :  { %1612 = vtanh.f32 %v1876_v12 }
 0x3ac   :  { %v1613_v13 = vpop.eup %1612 }
 0x3ad   :  { %403 = vrot.lane.b32.xlu0 %v1613_v13, %s1713_s3 }
 0x3b1   :  { %v311_v15 = vpop.permute.xlu2 %310 }
 0x3b2   :  { %v313_v17 = vadd.f32 %v311_v15, %v303_v14 }
 0x3b4   :  { %v1881_v20 = vmul.f32 %v1552_v16, %v313_v17 }
 0x3b6   :  { %1614 = vtanh.f32 %v1881_v20 }
 0x3bc   :  { %v1615_v8 = vpop.eup %1614 }
 0x3bd   :  { %322 = vrot.lane.b32.xlu2 %v1615_v8, %s1713_s3 }
 0x417   :  { %v323_v23 = vpop.permute.xlu2 %322 }
 0x418   :  { %v325_v24 = vmul.f32 %v323_v23, %v300_v63 }
 0x41a   :  { %v326_v25 = vmul.f32 %v1552_v16, %v325_v24 }
 0x41c   :  { %328 = vrot.lane.b32.xlu1 %v326_v25, %s1716_s0 }
 0x41f   :  { %v404_v27 = vpop.permute.xlu0 %403 }
 0x420   :  { %v406_v28 = vmul.f32 %v404_v27, %v381_v47 }
 0x422   :  { %v407_v29 = vmul.f32 %v1553_v9, %v406_v28 }
 0x424   :  { %409 = vrot.lane.b32.xlu2 %v407_v29, %s1716_s0 }
 0x47e   :  { %v410_v60 = vpop.permute.xlu2 %409 }
 0x47f   :  { %1464 = vst.msk [vmem:[%s2125_s5 + $0x30] sm:$0xff] %vm62_vm0, %v410_v60  ;;  %1472 = vmatmul.msk.f32.vlgmr.msrb.gmra.mxu1 %vm62_vm0, %v410_v60 }
 0x480   :  { %1163 = vmatpush.msrb.mxu1 %v1756_v1 }
 0x482   :  { %1164 = vmatpush.msrb.mxu1 %v1770_v4 }
 0x48e   :  { %v329_v30 = vpop.permute.xlu1 %328 }
 0x48f   :  { %1458 = vst.msk [vmem:[%s2126_s4 + $0x8] sm:$0xff] %vm62_vm0, %v329_v30  ;;  %1466 = vmatmul.msk.f32.vlgmr.msrb.gmra.mxu0 %vm62_vm0, %v329_v30 }
 0x490   :  { %1082 = vmatpush.msrb.mxu0 %v1751_v0 }
 0x492   :  { %1083 = vmatpush.msrb.mxu0 %v1761_v2 }
 0x4fc   :  { %v518_v32 = vpop.f32.mrf.mxu1 }
 0x4fd   :  { %v521_v33 = vadd.f32 %v518_v32, %v498_v31 }
 0x4ff   :  { %1616 = vtanh.f32 %v521_v33  ;;  %v1475_v43 = vmul.f32 -1.442695, %v521_v33 }
 0x505   :  { %v1617_v36 = vpop.eup %1616 }
 0x506   :  { %548 = vrot.lane.b32.xlu1 %v1617_v36, %s1715_s30 }
 0x50c   :  { %v437_v40 = vpop.f32.mrf.mxu0 }
 0x50d   :  { %v440_v41 = vadd.f32 %v437_v40, %v417_v39 }
 0x50e   :  { %1555 = vperm.xlu1 %1548, %v1554_v18  }
 0x50f   :  { %1618 = vtanh.f32 %v440_v41  ;;  %v1469_v46 = vmul.f32 -1.442695, %v440_v41 }
 0x510   :  { %1620 = vpow2.f32 %v1475_v43 }
 0x515   :  { %v1619_v42 = vpop.eup %1618 }
 0x516   :  { %467 = vrot.lane.b32.xlu0 %v1619_v42, %s1715_s30  ;;  %v1621_v44 = vpop.eup %1620  ;;  %v1946_v42 = vld [vmem:[%s2122_s1 + $0xc] sm:$0xff]  }
 0x517   :  { %v529_v45 = vadd.f32 1.0, %v1621_v44  ;;  %v1952_v44 = vld [vmem:[%s2123_s2 + $0x2c] sm:$0xff]  }
 0x519   :  { %1622 = vrcp.f32 %v529_v45  ;;  %v541_v54 = vand.u32 2147483648, %v529_v45  ;;  %vm535_vm9 = vweird.f32 %v529_v45  ;;  %v539_v55 = vand.u32 2147483647, %v529_v45 }
 0x51a   :  { %1624 = vpow2.f32 %v1469_v46 }
 0x51b   :  { %v542_v58 = vor.u32 1.1754944e-38, %v541_v54  ;;  %vm540_vm11 = vcmp.eq.f32.partialorder %v539_v55, 8.507059e+37 }
 0x51f   :  { %v1623_v47 = vpop.eup %1622 }
 0x520   :  { %v1625_v48 = vpop.eup %1624  ;;  %v531_v26 = vmul.f32 %v1623_v47, %v529_v45  ;;  %vm536_vm8 = vweird.f32 %v1623_v47  ;;  %v660_v45 = vunpack.c.h.bf16 %v1952_v44 }
 0x521   :  { %v448_v49 = vadd.f32 1.0, %v1625_v48  ;;  %vm537_vm10 = vmor %vm535_vm9, %vm536_vm8  ;;  %v1960_v48 = vsel %vm1479_vm1, 1.0, %v1712_v3 }
 0x522   :  { %v532_v50 = vsub.f32 1.0, %v531_v26  ;;  %v1963_v26 = vsel %vm1485_vm2, 1.0, %v1712_v3 }
 0x523   :  { %1626 = vrcp.f32 %v448_v49  ;;  %v460_v7 = vand.u32 2147483648, %v448_v49  ;;  %vm454_vm13 = vweird.f32 %v448_v49  ;;  %v458_v9 = vand.u32 2147483647, %v448_v49 }
 0x524   :  { %v533_v51 = vmul.f32 %v1623_v47, %v532_v50 }
 0x525   :  { %v461_v11 = vor.u32 1.1754944e-38, %v460_v7  ;;  %vm459_vm15 = vcmp.eq.f32.partialorder %v458_v9, 8.507059e+37 }
 0x526   :  { %v534_v52 = vadd.f32 %v1623_v47, %v533_v51 }
 0x528   :  { %v538_v56 = vsel %vm537_vm10, %v1623_v47, %v534_v52 }
 0x529   :  { %v1627_v53 = vpop.eup %1626  ;;  %v543_v61 = vsel %vm540_vm11, %v542_v58, %v538_v56 }
 0x52a   :  { %v450_v57 = vmul.f32 %v1627_v53, %v448_v49  ;;  %vm455_vm12 = vweird.f32 %v1627_v53  ;;  %v546_v27 = vmul.f32 %v543_v61, %v1876_v12  ;;  %v1559_v49 = vpack.i.bf16 %v1963_v26, %v1960_v48 }
 0x52b   :  { %vm456_vm14 = vmor %vm454_vm13, %vm455_vm12 }
 0x52c   :  { %v451_v63 = vsub.f32 1.0, %v450_v57 }
 0x52e   :  { %v452_v5 = vmul.f32 %v1627_v53, %v451_v63 }
 0x530   :  { %v453_v6 = vadd.f32 %v1627_v53, %v452_v5 }
 0x532   :  { %v457_v10 = vsel %vm456_vm14, %v1627_v53, %v453_v6 }
 0x533   :  { %v462_v14 = vsel %vm459_vm15, %v461_v11, %v457_v10 }
 0x534   :  { %v465_v17 = vmul.f32 %v462_v14, %v1881_v20 }
 0x578   :  { %v549_v59 = vpop.permute.xlu1 %548 }
 0x579   :  { %v551_v62 = vmul.f32 %v549_v59, %v543_v61 }
 0x57b   :  { %553 = vrot.lane.b32.xlu0 %v551_v62, %s1713_s3 }
 0x580   :  { %v1556_v16 = vpop.permute.xlu1 %1555 }
 0x581   :  { %v1557_v23 = vunpack.i.l.bf16 %v1556_v16  ;;  %v1558_v29 = vunpack.i.h.bf16 %v1556_v16 }
 0x588   :  { %v468_v13 = vpop.permute.xlu0 %467 }
 0x589   :  { %v470_v15 = vmul.f32 %v468_v13, %v462_v14 }
 0x58b   :  { %472 = vrot.lane.b32.xlu2 %v470_v15, %s1713_s3 }
 0x5e5   :  { %v473_v8 = vpop.permute.xlu2 %472 }
 0x5e6   :  { %v475_v24 = vadd.f32 %v473_v8, %v465_v17 }
 0x5e8   :  { %v1918_v25 = vmul.f32 %v1557_v23, %v475_v24 }
 0x5ea   :  { %1628 = vtanh.f32 %v1918_v25 }
 0x5ed   :  { %v554_v28 = vpop.permute.xlu0 %553 }
 0x5ee   :  { %v556_v60 = vadd.f32 %v554_v28, %v546_v27 }
 0x5f0   :  { %v1629_v30 = vpop.eup %1628  ;;  %v1922_v31 = vmul.f32 %v1558_v29, %v556_v60 }
 0x5f1   :  { %484 = vrot.lane.b32.xlu2 %v1629_v30, %s1713_s3 }
 0x5f2   :  { %1630 = vtanh.f32 %v1922_v31 }
 0x5f8   :  { %v1631_v20 = vpop.eup %1630 }
 0x5f9   :  { %565 = vrot.lane.b32.xlu0 %v1631_v20, %s1713_s3 }
 0x64b   :  { %v485_v32 = vpop.permute.xlu2 %484 }
 0x64c   :  { %v487_v33 = vmul.f32 %v485_v32, %v462_v14 }
 0x64e   :  { %v488_v36 = vmul.f32 %v1557_v23, %v487_v33 }
 0x650   :  { %490 = vrot.lane.b32.xlu1 %v488_v36, %s1716_s0 }
 0x66b   :  { %v566_v39 = vpop.permute.xlu0 %565 }
 0x66c   :  { %v568_v12 = vmul.f32 %v566_v39, %v543_v61 }
 0x66e   :  { %v569_v18 = vmul.f32 %v1558_v29, %v568_v12 }
 0x670   :  { %571 = vrot.lane.b32.xlu2 %v569_v18, %s1716_s0 }
 0x6c2   :  { %v491_v40 = vpop.permute.xlu1 %490 }
 0x6c3   :  { %1470 = vst.msk [vmem:[%s2126_s4 + $0x10] sm:$0xff] %vm62_vm0, %v491_v40  ;;  %1478 = vmatmul.msk.f32.vlgmr.msrb.gmra.mxu2 %vm62_vm0, %v491_v40 }
 0x6c4   :  { %1244 = vmatpush.msrb.mxu2 %v1751_v0  ;;  %v579_v0 = vunpack.c.l.bf16 %v1946_v42 }
 0x6c6   :  { %1245 = vmatpush.msrb.mxu2 %v1761_v2 }
 0x6ca   :  { %v572_v41 = vpop.permute.xlu2 %571 }
 0x6cb   :  { %1476 = vst.msk [vmem:[%s2125_s5 + $0x28] sm:$0xff] %vm62_vm0, %v572_v41  ;;  %1484 = vmatmul.msk.f32.vlgmr.msrb.gmra.mxu3 %vm62_vm0, %v572_v41 }
 0x6cc   :  { %1323 = vmatpush.msrb.mxu3 %v1756_v1 }
 0x6ce   :  { %1324 = vmatpush.msrb.mxu3 %v1770_v4 }
 0x746   :  { %v599_v2 = vpop.f32.mrf.mxu2 }
 0x747   :  { %v602_v43 = vadd.f32 %v599_v2, %v579_v0 }
 0x749   :  { %1632 = vtanh.f32 %v602_v43  ;;  %v1481_v50 = vmul.f32 -1.442695, %v602_v43 }
 0x74e   :  { %v680_v1 = vpop.f32.mrf.mxu3 }
 0x74f   :  { %v1633_v46 = vpop.eup %1632  ;;  %v683_v4 = vadd.f32 %v680_v1, %v660_v45 }
 0x750   :  { %629 = vrot.lane.b32.xlu0 %v1633_v46, %s1715_s30 }
 0x751   :  { %1634 = vtanh.f32 %v683_v4  ;;  %v1487_v51 = vmul.f32 -1.442695, %v683_v4  ;;  %v741_v4 = vunpack.c.h.bf16 %v1946_v42 }
 0x752   :  { %1636 = vpow2.f32 %v1481_v50 }
 0x753   :  { %1638 = vpow2.f32 %v1487_v51  ;;  %v822_v51 = vunpack.c.l.bf16 %v1952_v44 }
 0x757   :  { %v1635_v47 = vpop.eup %1634 }
 0x758   :  { %710 = vrot.lane.b32.xlu1 %v1635_v47, %s1715_s30  ;;  %v1637_v52 = vpop.eup %1636 }
 0x759   :  { %v610_v53 = vadd.f32 1.0, %v1637_v52  ;;  %v1639_v19 = vpop.eup %1638 }
 0x75a   :  { %v691_v54 = vadd.f32 1.0, %v1639_v19 }
 0x75b   :  { %1640 = vrcp.f32 %v610_v53  ;;  %v622_v63 = vand.u32 2147483648, %v610_v53  ;;  %vm616_vm4 = vweird.f32 %v610_v53  ;;  %v620_v5 = vand.u32 2147483647, %v610_v53 }
 0x75c   :  { %1642 = vrcp.f32 %v691_v54  ;;  %v703_v15 = vand.u32 2147483648, %v691_v54  ;;  %vm697_vm8 = vweird.f32 %v691_v54  ;;  %v701_v16 = vand.u32 2147483647, %v691_v54 }
 0x75d   :  { %v623_v9 = vor.u32 1.1754944e-38, %v622_v63  ;;  %vm621_vm6 = vcmp.eq.f32.partialorder %v620_v5, 8.507059e+37 }
 0x75e   :  { %v704_v8 = vor.u32 1.1754944e-38, %v703_v15  ;;  %vm702_vm10 = vcmp.eq.f32.partialorder %v701_v16, 8.507059e+37 }
 0x760   :  { %1560 = vperm.xlu1 %1548, %v1559_v49  }
 0x761   :  { %v1641_v55 = vpop.eup %1640 }
 0x762   :  { %v612_v56 = vmul.f32 %v1641_v55, %v610_v53  ;;  %v1643_v58 = vpop.eup %1642  ;;  %vm617_vm3 = vweird.f32 %v1641_v55 }
 0x763   :  { %v693_v59 = vmul.f32 %v1643_v58, %v691_v54  ;;  %vm618_vm5 = vmor %vm616_vm4, %vm617_vm3  ;;  %vm698_vm7 = vweird.f32 %v1643_v58  ;;  %v1564_v54 = vpack.i.bf16 %v1960_v48, %v1963_v26 }
 0x764   :  { %v613_v57 = vsub.f32 1.0, %v612_v56  ;;  %vm699_vm9 = vmor %vm697_vm8, %vm698_vm7 }
 0x765   :  { %v694_v62 = vsub.f32 1.0, %v693_v59 }
 0x766   :  { %v614_v3 = vmul.f32 %v1641_v55, %v613_v57 }
 0x767   :  { %v695_v7 = vmul.f32 %v1643_v58, %v694_v62 }
 0x768   :  { %v615_v61 = vadd.f32 %v1641_v55, %v614_v3 }
 0x769   :  { %v696_v14 = vadd.f32 %v1643_v58, %v695_v7 }
 0x76a   :  { %v619_v6 = vsel %vm618_vm5, %v1641_v55, %v615_v61 }
 0x76b   :  { %v624_v11 = vsel %vm621_vm6, %v623_v9, %v619_v6  ;;  %v700_v17 = vsel %vm699_vm9, %v1643_v58, %v696_v14 }
 0x76c   :  { %v705_v24 = vsel %vm702_vm10, %v704_v8, %v700_v17  ;;  %v627_v29 = vmul.f32 %v624_v11, %v1918_v25 }
 0x76d   :  { %v708_v36 = vmul.f32 %v705_v24, %v1922_v31 }
 0x7c2   :  { %v630_v10 = vpop.permute.xlu0 %629 }
 0x7c3   :  { %v632_v13 = vmul.f32 %v630_v10, %v624_v11 }
 0x7c5   :  { %634 = vrot.lane.b32.xlu2 %v632_v13, %s1713_s3 }
 0x7ca   :  { %v711_v23 = vpop.permute.xlu1 %710 }
 0x7cb   :  { %v713_v27 = vmul.f32 %v711_v23, %v705_v24 }
 0x7cd   :  { %715 = vrot.lane.b32.xlu0 %v713_v27, %s1713_s3 }
 0x7d2   :  { %v1561_v28 = vpop.permute.xlu1 %1560 }
 0x7d3   :  { %v1562_v30 = vunpack.i.l.bf16 %v1561_v28  ;;  %v1563_v12 = vunpack.i.h.bf16 %v1561_v28 }
 0x81f   :  { %v635_v60 = vpop.permute.xlu2 %634 }
 0x820   :  { %v637_v20 = vadd.f32 %v635_v60, %v627_v29 }
 0x822   :  { %v1970_v32 = vmul.f32 %v1562_v30, %v637_v20 }
 0x824   :  { %1644 = vtanh.f32 %v1970_v32 }
 0x82a   :  { %v1645_v33 = vpop.eup %1644 }
 0x82b   :  { %646 = vrot.lane.b32.xlu2 %v1645_v33, %s1713_s3 }
 0x83f   :  { %v716_v39 = vpop.permute.xlu0 %715 }
 0x840   :  { %v718_v18 = vadd.f32 %v716_v39, %v708_v36 }
 0x842   :  { %v1975_v40 = vmul.f32 %v1563_v12, %v718_v18 }
 0x844   :  { %1646 = vtanh.f32 %v1975_v40 }
 0x84a   :  { %v1647_v25 = vpop.eup %1646 }
 0x84b   :  { %727 = vrot.lane.b32.xlu0 %v1647_v25, %s1713_s3 }
 0x885   :  { %v647_v41 = vpop.permute.xlu2 %646 }
 0x886   :  { %v649_v0 = vmul.f32 %v647_v41, %v624_v11 }
 0x888   :  { %v650_v2 = vmul.f32 %v1562_v30, %v649_v0 }
 0x88a   :  { %652 = vrot.lane.b32.xlu1 %v650_v2, %s1716_s0 }
 0x8bd   :  { %v728_v43 = vpop.permute.xlu0 %727 }
 0x8be   :  { %v730_v45 = vmul.f32 %v728_v43, %v705_v24 }
 0x8c0   :  { %v731_v1 = vmul.f32 %v1563_v12, %v730_v45 }
 0x8c2   :  { %733 = vrot.lane.b32.xlu2 %v731_v1, %s1716_s0 }
 0x8fc   :  { %v653_v31 = vpop.permute.xlu1 %652 }
 0x8fd   :  { %1482 = vst.msk [vmem:[%s2126_s4 + $0x18] sm:$0xff] %vm62_vm0, %v653_v31  ;;  %1490 = vmatmul.msk.f32.vlgmr.msra.gmra.mxu0 %vm62_vm0, %v653_v31 }
 0x91c   :  { %v734_v46 = vpop.permute.xlu2 %733 }
 0x91d   :  { %1488 = vst.msk [vmem:[%s2125_s5 + $0x20] sm:$0xff] %vm62_vm0, %v734_v46  ;;  %1496 = vmatmul.msk.f32.vlgmr.msra.gmra.mxu1 %vm62_vm0, %v734_v46 }
 0x97a   :  { %v761_v47 = vpop.f32.mrf.mxu0 }
 0x97b   :  { %v764_v49 = vadd.f32 %v761_v47, %v741_v4 }
 0x97d   :  { %1648 = vtanh.f32 %v764_v49  ;;  %v1493_v55 = vmul.f32 -1.442695, %v764_v49  ;;  %v2024_v49 = vld [vmem:[%s2122_s1 + $0x14] sm:$0xff]  }
 0x983   :  { %v1649_v50 = vpop.eup %1648 }
 0x984   :  { %791 = vrot.lane.b32.xlu0 %v1649_v50, %s1715_s30  ;;  %v903_v50 = vunpack.c.l.bf16 %v2024_v49 }
 0x99a   :  { %v842_v52 = vpop.f32.mrf.mxu1 }
 0x99b   :  { %v845_v53 = vadd.f32 %v842_v52, %v822_v51 }
 0x99d   :  { %1650 = vtanh.f32 %v845_v53  ;;  %v1499_v59 = vmul.f32 -1.442695, %v845_v53 }
 0x99e   :  { %1652 = vpow2.f32 %v1493_v55 }
 0x9a3   :  { %v1651_v19 = vpop.eup %1650 }
 0x9a4   :  { %872 = vrot.lane.b32.xlu1 %v1651_v19, %s1715_s30  ;;  %v1653_v42 = vpop.eup %1652  ;;  %v2031_v19 = vld [vmem:[%s2123_s2 + $0x24] sm:$0xff]  }
 0x9a5   :  { %v772_v56 = vadd.f32 1.0, %v1653_v42 }
 0x9a7   :  { %1654 = vrcp.f32 %v772_v56  ;;  %v784_v62 = vand.u32 2147483648, %v772_v56  ;;  %vm778_vm12 = vweird.f32 %v772_v56  ;;  %v782_v63 = vand.u32 2147483647, %v772_v56 }
 0x9a8   :  { %1656 = vpow2.f32 %v1499_v59 }
 0x9a9   :  { %v785_v26 = vor.u32 1.1754944e-38, %v784_v62  ;;  %vm783_vm14 = vcmp.eq.f32.partialorder %v782_v63, 8.507059e+37 }
 0x9ac   :  { %1565 = vperm.xlu1 %1548, %v1564_v54   ;;  %v984_v54 = vunpack.c.h.bf16 %v2031_v19 }
 0x9ad   :  { %v1655_v57 = vpop.eup %1654 }
 0x9ae   :  { %v774_v58 = vmul.f32 %v1655_v57, %v772_v56  ;;  %vm779_vm11 = vweird.f32 %v1655_v57  ;;  %v1657_v5 = vpop.eup %1656 }
 0x9af   :  { %vm780_vm13 = vmor %vm778_vm12, %vm779_vm11  ;;  %v853_v6 = vadd.f32 1.0, %v1657_v5 }
 0x9b0   :  { %v775_v3 = vsub.f32 1.0, %v774_v58 }
 0x9b1   :  { %1658 = vrcp.f32 %v853_v6  ;;  %v865_v17 = vand.u32 2147483648, %v853_v6  ;;  %vm859_vm1 = vweird.f32 %v853_v6  ;;  %v863_v8 = vand.u32 2147483647, %v853_v6 }
 0x9b2   :  { %v776_v44 = vmul.f32 %v1655_v57, %v775_v3 }
 0x9b3   :  { %v866_v24 = vor.u32 1.1754944e-38, %v865_v17  ;;  %vm864_vm3 = vcmp.eq.f32.partialorder %v863_v8, 8.507059e+37 }
 0x9b4   :  { %v777_v61 = vadd.f32 %v1655_v57, %v776_v44 }
 0x9b6   :  { %v781_v48 = vsel %vm780_vm13, %v1655_v57, %v777_v61  ;;  %v1569_v57 = vpack.i.bf16 %v1906_v37, %v1909_v38 }
 0x9b7   :  { %v786_v9 = vsel %vm783_vm14, %v785_v26, %v781_v48  ;;  %v1659_v11 = vpop.eup %1658 }
 0x9b8   :  { %v855_v13 = vmul.f32 %v1659_v11, %v853_v6  ;;  %vm860_vm15 = vweird.f32 %v1659_v11  ;;  %v789_v30 = vmul.f32 %v786_v9, %v1970_v32 }
 0x9b9   :  { %vm861_vm2 = vmor %vm859_vm1, %vm860_vm15 }
 0x9ba   :  { %v856_v14 = vsub.f32 1.0, %v855_v13 }
 0x9bc   :  { %v857_v15 = vmul.f32 %v1659_v11, %v856_v14 }
 0x9be   :  { %v858_v16 = vadd.f32 %v1659_v11, %v857_v15 }
 0x9c0   :  { %v862_v23 = vsel %vm861_vm2, %v1659_v11, %v858_v16 }
 0x9c1   :  { %v867_v28 = vsel %vm864_vm3, %v866_v24, %v862_v23 }
 0x9c2   :  { %v870_v18 = vmul.f32 %v867_v28, %v1975_v40 }
 0x9f6   :  { %v792_v7 = vpop.permute.xlu0 %791 }
 0x9f7   :  { %v794_v10 = vmul.f32 %v792_v7, %v786_v9 }
 0x9f9   :  { %796 = vrot.lane.b32.xlu2 %v794_v10, %s1713_s3 }
 0xa16   :  { %v873_v27 = vpop.permute.xlu1 %872 }
 0xa17   :  { %v875_v29 = vmul.f32 %v873_v27, %v867_v28 }
 0xa19   :  { %877 = vrot.lane.b32.xlu0 %v875_v29, %s1713_s3 }
 0xa1e   :  { %v1566_v60 = vpop.permute.xlu1 %1565 }
 0xa1f   :  { %v1567_v33 = vunpack.i.l.bf16 %v1566_v60  ;;  %v1568_v41 = vunpack.i.h.bf16 %v1566_v60 }
 0xa53   :  { %v797_v20 = vpop.permute.xlu2 %796 }
 0xa54   :  { %v799_v36 = vadd.f32 %v797_v20, %v789_v30 }
 0xa56   :  { %v2000_v39 = vmul.f32 %v1567_v33, %v799_v36 }
 0xa58   :  { %1660 = vtanh.f32 %v2000_v39 }
 0xa5e   :  { %v1661_v12 = vpop.eup %1660 }
 0xa5f   :  { %808 = vrot.lane.b32.xlu2 %v1661_v12, %s1713_s3 }
 0xa8b   :  { %v878_v25 = vpop.permute.xlu0 %877 }
 0xa8c   :  { %v880_v0 = vadd.f32 %v878_v25, %v870_v18 }
 0xa8e   :  { %v2005_v2 = vmul.f32 %v1568_v41, %v880_v0 }
 0xa90   :  { %1662 = vtanh.f32 %v2005_v2 }
 0xa96   :  { %v1663_v32 = vpop.eup %1662 }
 0xa97   :  { %889 = vrot.lane.b32.xlu0 %v1663_v32, %s1713_s3 }
 0xab9   :  { %v809_v43 = vpop.permute.xlu2 %808 }
 0xaba   :  { %v811_v45 = vmul.f32 %v809_v43, %v786_v9 }
 0xabc   :  { %v812_v1 = vmul.f32 %v1567_v33, %v811_v45 }
 0xabe   :  { %814 = vrot.lane.b32.xlu1 %v812_v1, %s1716_s0 }
 0xb09   :  { %v890_v31 = vpop.permute.xlu0 %889 }
 0xb0a   :  { %v892_v46 = vmul.f32 %v890_v31, %v867_v28 }
 0xb0c   :  { %v893_v4 = vmul.f32 %v1568_v41, %v892_v46 }
 0xb0e   :  { %895 = vrot.lane.b32.xlu2 %v893_v4, %s1716_s0 }
 0xb30   :  { %v815_v40 = vpop.permute.xlu1 %814 }
 0xb31   :  { %1494 = vst.msk [vmem:[%s2126_s4 + $0x20] sm:$0xff] %vm62_vm0, %v815_v40  ;;  %1502 = vmatmul.msk.f32.vlgmr.msra.gmra.mxu2 %vm62_vm0, %v815_v40 }
 0xb68   :  { %v896_v47 = vpop.permute.xlu2 %895 }
 0xb69   :  { %1500 = vst.msk [vmem:[%s2125_s5 + $0x18] sm:$0xff] %vm62_vm0, %v896_v47  ;;  %1508 = vmatmul.msk.f32.vlgmr.msra.gmra.mxu3 %vm62_vm0, %v896_v47 }
 0xbb4   :  { %v923_v51 = vpop.f32.mrf.mxu2 }
 0xbb5   :  { %v926_v52 = vadd.f32 %v923_v51, %v903_v50 }
 0xbb7   :  { %1664 = vtanh.f32 %v926_v52  ;;  %v1505_v58 = vmul.f32 -1.442695, %v926_v52  ;;  %v1065_v52 = vunpack.c.h.bf16 %v2024_v49  ;;  %v1574_v49 = vpack.i.bf16 %v1866_v34, %v1869_v35 }
 0xbbd   :  { %v1665_v53 = vpop.eup %1664 }
 0xbbe   :  { %953 = vrot.lane.b32.xlu0 %v1665_v53, %s1715_s30 }
 0xbec   :  { %v1004_v55 = vpop.f32.mrf.mxu3 }
 0xbed   :  { %v1007_v42 = vadd.f32 %v1004_v55, %v984_v54 }
 0xbef   :  { %1666 = vtanh.f32 %v1007_v42  ;;  %v1511_v10 = vmul.f32 -1.442695, %v1007_v42  ;;  %v1146_v42 = vunpack.c.l.bf16 %v2031_v19 }
 0xbf0   :  { %1668 = vpow2.f32 %v1505_v58 }
 0xbf5   :  { %v1667_v56 = vpop.eup %1666 }
 0xbf6   :  { %1034 = vrot.lane.b32.xlu1 %v1667_v56, %s1715_s30  ;;  %v1669_v3 = vpop.eup %1668 }
 0xbf7   :  { %v934_v59 = vadd.f32 1.0, %v1669_v3 }
 0xbf9   :  { %1670 = vrcp.f32 %v934_v59  ;;  %v946_v48 = vand.u32 2147483648, %v934_v59  ;;  %vm940_vm5 = vweird.f32 %v934_v59  ;;  %v944_v26 = vand.u32 2147483647, %v934_v59 }
 0xbfa   :  { %1672 = vpow2.f32 %v1511_v10 }
 0xbfb   :  { %v947_v7 = vor.u32 1.1754944e-38, %v946_v48  ;;  %vm945_vm7 = vcmp.eq.f32.partialorder %v944_v26, 8.507059e+37 }
 0xbfe   :  { %1570 = vperm.xlu1 %1548, %v1569_v57  }
 0xbff   :  { %v1671_v44 = vpop.eup %1670 }
 0xc00   :  { %v936_v61 = vmul.f32 %v1671_v44, %v934_v59  ;;  %vm941_vm4 = vweird.f32 %v1671_v44  ;;  %v1673_v11 = vpop.eup %1672 }
 0xc01   :  { %vm942_vm6 = vmor %vm940_vm5, %vm941_vm4  ;;  %v1015_v13 = vadd.f32 1.0, %v1673_v11 }
 0xc02   :  { %v937_v62 = vsub.f32 1.0, %v936_v61 }
 0xc03   :  { %1674 = vrcp.f32 %v1015_v13  ;;  %v1027_v23 = vand.u32 2147483648, %v1015_v13  ;;  %vm1021_vm9 = vweird.f32 %v1015_v13  ;;  %v1025_v24 = vand.u32 2147483647, %v1015_v13 }
 0xc04   :  { %v938_v63 = vmul.f32 %v1671_v44, %v937_v62 }
 0xc05   :  { %v1028_v28 = vor.u32 1.1754944e-38, %v1027_v23  ;;  %vm1026_vm11 = vcmp.eq.f32.partialorder %v1025_v24, 8.507059e+37 }
 0xc06   :  { %v939_v5 = vadd.f32 %v1671_v44, %v938_v63 }
 0xc08   :  { %v943_v6 = vsel %vm942_vm6, %v1671_v44, %v939_v5 }
 0xc09   :  { %v948_v38 = vsel %vm945_vm7, %v947_v7, %v943_v6  ;;  %v1675_v14 = vpop.eup %1674 }
 0xc0a   :  { %v1017_v15 = vmul.f32 %v1675_v14, %v1015_v13  ;;  %vm1022_vm8 = vweird.f32 %v1675_v14  ;;  %v951_v33 = vmul.f32 %v948_v38, %v2000_v39 }
 0xc0b   :  { %vm1023_vm10 = vmor %vm1021_vm9, %vm1022_vm8 }
 0xc0c   :  { %v1018_v16 = vsub.f32 1.0, %v1017_v15 }
 0xc0e   :  { %v1019_v17 = vmul.f32 %v1675_v14, %v1018_v16 }
 0xc10   :  { %v1020_v8 = vadd.f32 %v1675_v14, %v1019_v17 }
 0xc12   :  { %v1024_v27 = vsel %vm1023_vm10, %v1675_v14, %v1020_v8 }
 0xc13   :  { %v1029_v60 = vsel %vm1026_vm11, %v1028_v28, %v1024_v27 }
 0xc14   :  { %v1032_v0 = vmul.f32 %v1029_v60, %v2005_v2 }
 0xc30   :  { %v954_v37 = vpop.permute.xlu0 %953 }
 0xc31   :  { %v956_v9 = vmul.f32 %v954_v37, %v948_v38 }
 0xc33   :  { %958 = vrot.lane.b32.xlu2 %v956_v9, %s1713_s3 }
 0xc68   :  { %v1035_v29 = vpop.permute.xlu1 %1034 }
 0xc69   :  { %v1037_v30 = vmul.f32 %v1035_v29, %v1029_v60 }
 0xc6b   :  { %1039 = vrot.lane.b32.xlu0 %v1037_v30, %s1713_s3 }
 0xc70   :  { %v1571_v20 = vpop.permute.xlu1 %1570 }
 0xc71   :  { %v1572_v12 = vunpack.i.l.bf16 %v1571_v20  ;;  %v1573_v43 = vunpack.i.h.bf16 %v1571_v20 }
 0xc8d   :  { %v959_v36 = vpop.permute.xlu2 %958 }
 0xc8e   :  { %v961_v18 = vadd.f32 %v959_v36, %v951_v33 }
 0xc90   :  { %v2040_v25 = vmul.f32 %v1572_v12, %v961_v18 }
 0xc92   :  { %1676 = vtanh.f32 %v2040_v25 }
 0xc98   :  { %v1677_v41 = vpop.eup %1676 }
 0xc99   :  { %970 = vrot.lane.b32.xlu2 %v1677_v41, %s1713_s3 }
 0xcdd   :  { %v1040_v32 = vpop.permute.xlu0 %1039 }
 0xcde   :  { %v1042_v45 = vadd.f32 %v1040_v32, %v1032_v0 }
 0xce0   :  { %v2045_v1 = vmul.f32 %v1573_v43, %v1042_v45 }
 0xce2   :  { %1678 = vtanh.f32 %v2045_v1 }
 0xce8   :  { %v1679_v39 = vpop.eup %1678 }
 0xce9   :  { %1051 = vrot.lane.b32.xlu0 %v1679_v39, %s1713_s3 }
 0xcf3   :  { %v971_v31 = vpop.permute.xlu2 %970 }
 0xcf4   :  { %v973_v46 = vmul.f32 %v971_v31, %v948_v38 }
 0xcf6   :  { %v974_v4 = vmul.f32 %v1572_v12, %v973_v46 }
 0xcf8   :  { %976 = vrot.lane.b32.xlu1 %v974_v4, %s1716_s0 }
 0xd5b   :  { %v1052_v40 = vpop.permute.xlu0 %1051 }
 0xd5c   :  { %v1054_v47 = vmul.f32 %v1052_v40, %v1029_v60 }
 0xd5e   :  { %v1055_v50 = vmul.f32 %v1573_v43, %v1054_v47 }
 0xd60   :  { %1057 = vrot.lane.b32.xlu2 %v1055_v50, %s1716_s0 }
 0xd6a   :  { %v977_v2 = vpop.permute.xlu1 %976 }
 0xd6b   :  { %1506 = vst.msk [vmem:[%s2126_s4 + $0x28] sm:$0xff] %vm62_vm0, %v977_v2  ;;  %1514 = vmatmul.msk.f32.vlgmr.msrb.gmra.mxu0 %vm62_vm0, %v977_v2  ;;  %v1525_v2 = vld [vmem:[%s2122_s1 + $0x1c] sm:$0xf]  ;;  %s1717_s1 = smov 112  }
 0xdba   :  { %v1058_v51 = vpop.permute.xlu2 %1057 }
 0xdbb   :  { %1512 = vst.msk [vmem:[%s2125_s5 + $0x10] sm:$0xff] %vm62_vm0, %v1058_v51  ;;  %1520 = vmatmul.msk.f32.vlgmr.msrb.gmra.mxu1 %vm62_vm0, %v1058_v51  ;;  %v1227_v51 = vunpack.c.l.bf16 %v1525_v2 }
 0xde8   :  { %v1085_v53 = vpop.f32.mrf.mxu0 }
 0xde9   :  { %v1088_v54 = vadd.f32 %v1085_v53, %v1065_v52 }
 0xdeb   :  { %1680 = vtanh.f32 %v1088_v54  ;;  %v1517_v56 = vmul.f32 -1.442695, %v1088_v54 }
 0xded   :  { %1682 = vpow2.f32 %v1517_v56 }
 0xdf1   :  { %v1681_v55 = vpop.eup %1680 }
 0xdf2   :  { %1115 = vrot.lane.b32.xlu0 %v1681_v55, %s1715_s30 }
 0xdf3   :  { %v1683_v3 = vpop.eup %1682 }
 0xdf4   :  { %v1096_v44 = vadd.f32 1.0, %v1683_v3 }
 0xdf6   :  { %v1108_v48 = vand.u32 2147483648, %v1096_v44  ;;  %vm1102_vm13 = vweird.f32 %v1096_v44  ;;  %v1106_v26 = vand.u32 2147483647, %v1096_v44 }
 0xdf8   :  { %v1109_v7 = vor.u32 1.1754944e-38, %v1108_v48  ;;  %vm1107_vm15 = vcmp.eq.f32.partialorder %v1106_v26, 8.507059e+37 }
 0xe38   :  { %v1166_v57 = vpop.f32.mrf.mxu1 }
 0xe39   :  { %v1169_v58 = vadd.f32 %v1166_v57, %v1146_v42  ;;  %v1531_v57 = vld [vmem:[%s2123_s2 + $0x20] sm:$0xf] }
 0xe3b   :  { %1684 = vtanh.f32 %v1169_v58  ;;  %v1523_v34 = vmul.f32 -1.442695, %v1169_v58  ;;  %v1306_v58 = vunpack.c.l.bf16 %v1531_v57 }
 0xe3c   :  { %1686 = vrcp.f32 %v1096_v44 }
 0xe3d   :  { %1688 = vpow2.f32 %v1523_v34 }
 0xe41   :  { %v1685_v59 = vpop.eup %1684 }
 0xe42   :  { %1196 = vrot.lane.b32.xlu1 %v1685_v59, %s1715_s30  ;;  %v1687_v61 = vpop.eup %1686 }
 0xe43   :  { %v1098_v62 = vmul.f32 %v1687_v61, %v1096_v44  ;;  %vm1103_vm12 = vweird.f32 %v1687_v61  ;;  %v1689_v35 = vpop.eup %1688 }
 0xe44   :  { %vm1104_vm14 = vmor %vm1102_vm13, %vm1103_vm12  ;;  %v1177_v10 = vadd.f32 1.0, %v1689_v35 }
 0xe45   :  { %v1099_v63 = vsub.f32 1.0, %v1098_v62 }
 0xe46   :  { %1690 = vrcp.f32 %v1177_v10  ;;  %v1189_v17 = vand.u32 2147483648, %v1177_v10  ;;  %vm1183_vm2 = vweird.f32 %v1177_v10  ;;  %v1187_v8 = vand.u32 2147483647, %v1177_v10 }
 0xe47   :  { %v1100_v5 = vmul.f32 %v1687_v61, %v1099_v63 }
 0xe48   :  { %v1190_v24 = vor.u32 1.1754944e-38, %v1189_v17  ;;  %vm1188_vm4 = vcmp.eq.f32.partialorder %v1187_v8, 8.507059e+37 }
 0xe49   :  { %v1101_v19 = vadd.f32 %v1687_v61, %v1100_v5 }
 0xe4a   :  { %1575 = vperm.xlu1 %1548, %v1574_v49  }
 0xe4b   :  { %v1105_v6 = vsel %vm1104_vm14, %v1687_v61, %v1101_v19  ;;  %v1579_v19 = vpack.i.bf16 %v1816_v21, %v1819_v22 }
 0xe4c   :  { %v1110_v38 = vsel %vm1107_vm15, %v1109_v7, %v1105_v6  ;;  %v1691_v11 = vpop.eup %1690 }
 0xe4d   :  { %v1179_v13 = vmul.f32 %v1691_v11, %v1177_v10  ;;  %vm1184_vm1 = vweird.f32 %v1691_v11  ;;  %v1113_v30 = vmul.f32 %v1110_v38, %v2040_v25 }
 0xe4e   :  { %vm1185_vm3 = vmor %vm1183_vm2, %vm1184_vm1 }
 0xe4f   :  { %v1180_v14 = vsub.f32 1.0, %v1179_v13 }
 0xe51   :  { %v1181_v15 = vmul.f32 %v1691_v11, %v1180_v14 }
 0xe53   :  { %v1182_v16 = vadd.f32 %v1691_v11, %v1181_v15 }
 0xe55   :  { %v1186_v23 = vsel %vm1185_vm3, %v1691_v11, %v1182_v16 }
 0xe56   :  { %v1191_v28 = vsel %vm1188_vm4, %v1190_v24, %v1186_v23 }
 0xe57   :  { %v1194_v32 = vmul.f32 %v1191_v28, %v2045_v1 }
 0xe64   :  { %v1116_v37 = vpop.permute.xlu0 %1115 }
 0xe65   :  { %v1118_v9 = vmul.f32 %v1116_v37, %v1110_v38 }
 0xe67   :  { %1120 = vrot.lane.b32.xlu2 %v1118_v9, %s1713_s3 }
 0xeb4   :  { %v1197_v27 = vpop.permute.xlu1 %1196 }
 0xeb5   :  { %v1199_v29 = vmul.f32 %v1197_v27, %v1191_v28 }
 0xeb7   :  { %1201 = vrot.lane.b32.xlu0 %v1199_v29, %s1713_s3 }
 0xebc   :  { %v1576_v60 = vpop.permute.xlu1 %1575 }
 0xebd   :  { %v1577_v33 = vunpack.i.l.bf16 %v1576_v60  ;;  %v1578_v45 = vunpack.i.h.bf16 %v1576_v60 }
 0xec1   :  { %v1121_v20 = vpop.permute.xlu2 %1120 }
 0xec2   :  { %v1123_v36 = vadd.f32 %v1121_v20, %v1113_v30 }
 0xec4   :  { %v2070_v12 = vmul.f32 %v1577_v33, %v1123_v36 }
 0xec6   :  { %1692 = vtanh.f32 %v2070_v12 }
 0xecc   :  { %v1693_v18 = vpop.eup %1692 }
 0xecd   :  { %1132 = vrot.lane.b32.xlu2 %v1693_v18, %s1713_s3 }
 0xf27   :  { %v1133_v41 = vpop.permute.xlu2 %1132 }
 0xf28   :  { %v1135_v0 = vmul.f32 %v1133_v41, %v1110_v38 }
 0xf29   :  { %v1202_v43 = vpop.permute.xlu0 %1201 }
 0xf2a   :  { %v1136_v39 = vmul.f32 %v1577_v33, %v1135_v0  ;;  %v1204_v31 = vadd.f32 %v1202_v43, %v1194_v32 }
 0xf2c   :  { %v2075_v46 = vmul.f32 %v1578_v45, %v1204_v31  ;;  %1138 = vrot.lane.b32.xlu1 %v1136_v39, %s1716_s0 }
 0xf2e   :  { %1694 = vtanh.f32 %v2075_v46 }
 0xf34   :  { %v1695_v25 = vpop.eup %1694 }
 0xf35   :  { %1213 = vrot.lane.b32.xlu0 %v1695_v25, %s1713_s3 }
 0xf9e   :  { %v1139_v4 = vpop.permute.xlu1 %1138 }
 0xf9f   :  { %1518 = vst.msk [vmem:[%s2126_s4 + $0x30] sm:$0xff] %vm62_vm0, %v1139_v4  ;;  %1526 = vmatmul.msk.f32.vlgmr.msrb.gmra.mxu2 %vm62_vm0, %v1139_v4 }
 0xfa7   :  { %v1214_v1 = vpop.permute.xlu0 %1213 }
 0xfa8   :  { %v1216_v40 = vmul.f32 %v1214_v1, %v1191_v28 }
 0xfaa   :  { %v1217_v47 = vmul.f32 %v1578_v45, %v1216_v40 }
 0xfac   :  { %1219 = vrot.lane.b32.xlu2 %v1217_v47, %s1716_s0 }
0x1006   :  { %v1220_v50 = vpop.permute.xlu2 %1219 }
0x1007   :  { %1524 = vst.msk [vmem:[%s2125_s5 + $0x8] sm:$0xff] %vm62_vm0, %v1220_v50  ;;  %1532 = vmatmul.msk.f32.vlgmr.msrb.gmra.mxu3 %vm62_vm0, %v1220_v50 }
0x1022   :  { %v1247_v52 = vpop.f32.mrf.mxu2 }
0x1023   :  { %v1250_v53 = vadd.f32 %v1247_v52, %v1227_v51 }
0x1025   :  { %1696 = vtanh.f32 %v1250_v53  ;;  %v1529_v55 = vmul.f32 -1.442695, %v1250_v53 }
0x1027   :  { %1698 = vpow2.f32 %v1529_v55 }
0x102b   :  { %v1697_v54 = vpop.eup %1696 }
0x102c   :  { %1277 = vrot.lane.b32.xlu0 %v1697_v54, %s1715_s30 }
0x102d   :  { %v1699_v42 = vpop.eup %1698 }
0x102e   :  { %v1258_v56 = vadd.f32 1.0, %v1699_v42 }
0x1030   :  { %1700 = vrcp.f32 %v1258_v56  ;;  %v1270_v48 = vand.u32 2147483648, %v1258_v56  ;;  %vm1264_vm6 = vweird.f32 %v1258_v56  ;;  %v1268_v26 = vand.u32 2147483647, %v1258_v56 }
0x1032   :  { %v1271_v7 = vor.u32 1.1754944e-38, %v1270_v48  ;;  %vm1269_vm8 = vcmp.eq.f32.partialorder %v1268_v26, 8.507059e+37 }
0x1036   :  { %v1701_v3 = vpop.eup %1700 }
0x1037   :  { %v1260_v49 = vmul.f32 %v1701_v3, %v1258_v56  ;;  %vm1265_vm5 = vweird.f32 %v1701_v3 }
0x1038   :  { %vm1266_vm7 = vmor %vm1264_vm6, %vm1265_vm5 }
0x1039   :  { %v1261_v61 = vsub.f32 1.0, %v1260_v49 }
0x103b   :  { %v1262_v63 = vmul.f32 %v1701_v3, %v1261_v61 }
0x103d   :  { %v1263_v5 = vadd.f32 %v1701_v3, %v1262_v63 }
0x103f   :  { %v1267_v6 = vsel %vm1266_vm7, %v1701_v3, %v1263_v5 }
0x1040   :  { %v1272_v38 = vsel %vm1269_vm8, %v1271_v7, %v1267_v6 }
0x1041   :  { %v1275_v29 = vmul.f32 %v1272_v38, %v2070_v12 }
0x108a   :  { %v1326_v59 = vpop.f32.mrf.mxu3 }
0x108b   :  { %v1329_v44 = vadd.f32 %v1326_v59, %v1306_v58 }
0x108d   :  { %1702 = vtanh.f32 %v1329_v44  ;;  %v1535_v34 = vmul.f32 -1.442695, %v1329_v44 }
0x108f   :  { %1704 = vpow2.f32 %v1535_v34 }
0x1093   :  { %v1703_v62 = vpop.eup %1702 }
0x1094   :  { %1356 = vrot.lane.b32.xlu1 %v1703_v62, %s1715_s30 }
0x1095   :  { %v1705_v35 = vpop.eup %1704 }
0x1096   :  { %v1337_v10 = vadd.f32 1.0, %v1705_v35 }
0x1098   :  { %1706 = vrcp.f32 %v1337_v10  ;;  %v1349_v15 = vand.u32 2147483648, %v1337_v10  ;;  %vm1343_vm10 = vweird.f32 %v1337_v10  ;;  %v1347_v16 = vand.u32 2147483647, %v1337_v10 }
0x109a   :  { %v1350_v8 = vor.u32 1.1754944e-38, %v1349_v15  ;;  %vm1348_vm12 = vcmp.eq.f32.partialorder %v1347_v16, 8.507059e+37 }
0x109c   :  { %1580 = vperm.xlu1 %1548, %v1579_v19  }
0x109e   :  { %v1278_v37 = vpop.permute.xlu0 %1277  ;;  %v1707_v11 = vpop.eup %1706 }
0x109f   :  { %v1280_v9 = vmul.f32 %v1278_v37, %v1272_v38  ;;  %v1339_v21 = vmul.f32 %v1707_v11, %v1337_v10  ;;  %vm1344_vm9 = vweird.f32 %v1707_v11 }
0x10a0   :  { %vm1345_vm11 = vmor %vm1343_vm10, %vm1344_vm9 }
0x10a1   :  { %1282 = vrot.lane.b32.xlu2 %v1280_v9, %s1713_s3  ;;  %v1340_v22 = vsub.f32 1.0, %v1339_v21 }
0x10a3   :  { %v1341_v13 = vmul.f32 %v1707_v11, %v1340_v22 }
0x10a5   :  { %v1342_v14 = vadd.f32 %v1707_v11, %v1341_v13 }
0x10a7   :  { %v1346_v17 = vsel %vm1345_vm11, %v1707_v11, %v1342_v14 }
0x10a8   :  { %v1351_v24 = vsel %vm1348_vm12, %v1350_v8, %v1346_v17 }
0x10a9   :  { %v1354_v32 = vmul.f32 %v1351_v24, %v2075_v46 }
0x10fb   :  { %v1283_v28 = vpop.permute.xlu2 %1282 }
0x10fc   :  { %v1285_v30 = vadd.f32 %v1283_v28, %v1275_v29 }
0x1106   :  { %v1357_v23 = vpop.permute.xlu1 %1356 }
0x1107   :  { %v1359_v27 = vmul.f32 %v1357_v23, %v1351_v24 }
0x1109   :  { %1361 = vrot.lane.b32.xlu0 %v1359_v27, %s1713_s3 }
0x110e   :  { %v1581_v60 = vpop.permute.xlu1 %1580 }
0x110f   :  { %v1582_v20 = vunpack.i.l.bf16 %v1581_v60  ;;  %v1583_v45 = vunpack.i.h.bf16 %v1581_v60 }
0x1111   :  { %v1291_v33 = vmul.f32 %v1582_v20, %v1285_v30 }
0x1113   :  { %1708 = vtanh.f32 %v1291_v33 }
0x1119   :  { %v1709_v36 = vpop.eup %1708 }
0x111a   :  { %1294 = vrot.lane.b32.xlu2 %v1709_v36, %s1713_s3 }
0x1174   :  { %v1295_v18 = vpop.permute.xlu2 %1294 }
0x1175   :  { %v1297_v41 = vmul.f32 %v1295_v18, %v1272_v38 }
0x1177   :  { %v1298_v0 = vmul.f32 %v1582_v20, %v1297_v41 }
0x1179   :  { %1300 = vrot.lane.b32.xlu1 %v1298_v0, %s1716_s0 }
0x117b   :  { %v1362_v43 = vpop.permute.xlu0 %1361 }
0x117c   :  { %v1364_v39 = vadd.f32 %v1362_v43, %v1354_v32 }
0x117e   :  { %v1370_v31 = vmul.f32 %v1583_v45, %v1364_v39 }
0x1180   :  { %1710 = vtanh.f32 %v1370_v31 }
0x1181   :  { %1391 = vrot.lane.b32.xlu1 %v1370_v31, %s1717_s1 }
0x1186   :  { %v1711_v12 = vpop.eup %1710 }
0x1187   :  { %1373 = vrot.lane.b32.xlu0 %v1711_v12, %s1713_s3 }
0x118f   :  { %1385 = vrot.lane.b32.xlu0 %v1291_v33, %s1717_s1 }
0x11eb   :  { %v1301_v25 = vpop.permute.xlu1 %1300 }
0x11ec   :  { %1530 = vst.msk [vmem:[%s2126_s4 + $0x38] sm:$0xff] %vm62_vm0, %v1301_v25 }
0x11ed   :  { %1383 = vst.msk [vmem:[#allocation2] sm:$0xff] %vm62_vm0, %v1301_v25 }
0x11f3   :  { %v1392_v46 = vpop.permute.xlu1 %1391 }
0x11f4   :  { %1394 = vst.msk [vmem:[#allocation3 + $0x8] sm:$0xff] %vm62_vm0, %v1392_v46 }
0x11f9   :  { %v1374_v4 = vpop.permute.xlu0 %1373 }
0x11fa   :  { %v1376_v1 = vmul.f32 %v1374_v4, %v1351_v24 }
0x11fc   :  { %v1377_v40 = vmul.f32 %v1583_v45, %v1376_v1 }
0x11fe   :  { %1379 = vrot.lane.b32.xlu2 %v1377_v40, %s1716_s0 }
0x1201   :  { %v1386_v47 = vpop.permute.xlu0 %1385 }
0x1202   :  { %1388 = vst.msk [vmem:[#allocation3] sm:$0xff] %vm62_vm0, %v1386_v47 }
0x1258   :  { %v1380_v50 = vpop.permute.xlu2 %1379 }
0x1259   :  { %1382 = vst.msk [vmem:[%s2125_s5] sm:$0xff] %vm62_vm0, %v1380_v50 }
0x125a   :  { %1389 = vst.msk [vmem:[#allocation2 + $0x8] sm:$0xff] %vm62_vm0, %v1380_v50 }

</bundles_post_ra>
